<compile_context>
chip_gen: v7x
topology: tpu7x:2x2x1
jax: 0.10.0
libtpu: 0.0.40
codegen_flags: <defaults>
</compile_context>

<pallas_src>
import numpy as np
import jax
import jax.numpy as jnp
from jax import lax
from jax.experimental import pallas as pl
from jax.experimental.pallas import tpu as pltpu

jax.config.update("jax_default_matmul_precision", "highest")  # keeps the pure-JAX reference exact

FOCAL_LENGTH = 5000.0
IMG_RES = 224
NUM_BETAS = 10
NUM_JOINTS = 24
NUM_VERTS = 128              # synthetic small mesh (real SMPL has 6890 vertices)
NUM_EXTRA_VSEL = 21          # VertexJointSelector extra keypoints -> 24 + 21 = 45 joints
NUM_EXTRA_REG = 9            # J_regressor_extra joints (SPIN)
POSE_FEAT = (NUM_JOINTS - 1) * 9   # 207
V3 = 3 * NUM_VERTS                 # 384 (flat coordinate-major width)
JSEL_PAD = 128                     # lane-padded width per coordinate for the 5-joint block

# real SMPL kinematic tree
SMPL_PARENTS = np.array([-1, 0, 0, 0, 1, 2, 3, 4, 5, 6, 7, 8, 9, 9, 9,
                         12, 13, 14, 16, 17, 18, 19, 20, 21], dtype=np.int32)


def _chain_levels(parents):
    """Group joints by tree depth so the kinematic chain composes level-by-level."""
    depth = np.zeros(len(parents), dtype=np.int64)
    for i in range(1, len(parents)):
        depth[i] = depth[parents[i]] + 1
    levels = []
    for d in range(1, int(depth.max()) + 1):
        idx = np.nonzero(depth == d)[0].astype(np.int32)
        levels.append((idx, parents[idx].astype(np.int32)))
    return levels


CHAIN_LEVELS = _chain_levels(SMPL_PARENTS)
_HIGHEST = lax.Precision.HIGHEST


# ----------------------------- Pallas kernel ----------------------------------

def _lbs_kernel(pf_ref, vsh_ref, a_ref, posedirs_ref, wt_ref, reg_ref,
                verts_ref, jsel_ref):
    """Pose blend-shapes + factored LBS skinning + hand/thorax joint regression.

    pf_ref:       (TB, 207)     pose feature (rotmat[:,1:] - I, flattened)
    vsh_ref:      (TB, 3V)      shaped template, coordinate-major (col k*V + v)
    a_ref:        (12, TB, 24)  rel. transforms, a_ref[4r+c, b, j] = A[b, j, r, c]
    posedirs_ref: (207, 3V)     pose blend shapes, coordinate-major
    wt_ref:       (24, V)       lbs_weights^T (the only skinning constant, ~12 KiB)
    reg_ref:      (V, 128)      cols 0..4 = [4 one-hot hand vertices; thorax regressor]^T
    verts_ref:    (TB, 3V)      skinned vertices, coordinate-major
    jsel_ref:     (TB, 3*128)   selected joints, col k*128 + s = coord k of joint s
    """
    V = NUM_VERTS
    f32 = jnp.float32

    # pose blend shapes, fused over all 3 coordinates: one (TB,207)x(207,384) matmul
    vposed = vsh_ref[...] + jnp.dot(pf_ref[...], posedirs_ref[...],
                                    preferred_element_type=f32, precision=_HIGHEST)
    vx = vposed[:, 0 * V:1 * V]
    vy = vposed[:, 1 * V:2 * V]
    vz = vposed[:, 2 * V:3 * V]

    wt = wt_ref[...]    # hoisted constant loads (used 12x / 3x below)
    reg = reg_ref[...]

    for k in range(3):
        # per-vertex transform row k, factored through lbs_weights^T:
        # T[b,v,k,c] = sum_j A[b,j,k,c] * W[v,j]  -> four (TB,24)x(24,V) dots
        t0 = jnp.dot(a_ref[4 * k + 0], wt, preferred_element_type=f32, precision=_HIGHEST)
        t1 = jnp.dot(a_ref[4 * k + 1], wt, preferred_element_type=f32, precision=_HIGHEST)
        t2 = jnp.dot(a_ref[4 * k + 2], wt, preferred_element_type=f32, precision=_HIGHEST)
        t3 = jnp.dot(a_ref[4 * k + 3], wt, preferred_element_type=f32, precision=_HIGHEST)
        row = t0 * vx + t1 * vy + t2 * vz + t3           # coord k of all vertices (vregs)
        verts_ref[:, k * V:(k + 1) * V] = row            # lane-aligned unmasked store
        # hand/thorax joints: consume `row` directly from vregs (no verts_ref reload);
        # output block padded to 128 lanes so the store is unmasked.
        jsel_ref[:, k * JSEL_PAD:(k + 1) * JSEL_PAD] = jnp.dot(
            row, reg, preferred_element_type=f32, precision=_HIGHEST)


# ----------------------------- pallas_call wrapper -----------------------------

def lbs_skinning(pose_feature, vsh_flat, a_perm, posedirs_cm, lbs_weights_T, reg_pad):
    """Single fused pallas_call; pads batch to a sublane tile and grids over batch."""
    B = pose_feature.shape[0]
    tile_b = min(128, 8 * pl.cdiv(B, 8))          # >=1 full sublane tile, MXU-sized at scale
    Bp = tile_b * pl.cdiv(B, tile_b)
    if Bp != B:
        pad = Bp - B
        pose_feature = jnp.pad(pose_feature, ((0, pad), (0, 0)))
        vsh_flat = jnp.pad(vsh_flat, ((0, pad), (0, 0)))
        a_perm = jnp.pad(a_perm, ((0, 0), (0, pad), (0, 0)))

    flops = 2 * Bp * (POSE_FEAT * V3 + 12 * NUM_JOINTS * NUM_VERTS + 3 * NUM_VERTS * JSEL_PAD) \
        + 8 * Bp * V3
    bytes_accessed = 4 * (POSE_FEAT * V3 + NUM_JOINTS * NUM_VERTS + NUM_VERTS * JSEL_PAD
                          + Bp * (POSE_FEAT + 2 * V3 + 12 * NUM_JOINTS + 3 * JSEL_PAD))

    verts, jsel = pl.pallas_call(
        _lbs_kernel,
        out_shape=(jax.ShapeDtypeStruct((Bp, V3), jnp.float32),
                   jax.ShapeDtypeStruct((Bp, 3 * JSEL_PAD), jnp.float32)),
        grid=(Bp // tile_b,),
        in_specs=[
            pl.BlockSpec((tile_b, POSE_FEAT), lambda i: (i, 0)),
            pl.BlockSpec((tile_b, V3), lambda i: (i, 0)),
            pl.BlockSpec((12, tile_b, NUM_JOINTS), lambda i: (0, i, 0)),
            pl.BlockSpec((POSE_FEAT, V3), lambda i: (0, 0)),
            pl.BlockSpec((NUM_JOINTS, NUM_VERTS), lambda i: (0, 0)),
            pl.BlockSpec((NUM_VERTS, JSEL_PAD), lambda i: (0, 0)),
        ],
        out_specs=(
            pl.BlockSpec((tile_b, V3), lambda i: (i, 0)),
            pl.BlockSpec((tile_b, 3 * JSEL_PAD), lambda i: (i, 0)),
        ),
        compiler_params=pltpu.CompilerParams(dimension_semantics=("parallel",)),
        cost_estimate=pl.CostEstimate(flops=int(flops), transcendentals=0,
                                      bytes_accessed=int(bytes_accessed)),
    )(pose_feature, vsh_flat, a_perm, posedirs_cm, lbs_weights_T, reg_pad)
    return verts[:B], jsel[:B]


# ----------------------------- plain-JAX glue ----------------------------------

def batch_rigid_transform(rot_mats, joints, parents):
    # Kinematic chain composed level-by-level: 8 batched einsums instead of 23
    # dependent (B,4,4) matmuls.  Shared by the Pallas path and the reference.
    B, N = joints.shape[0], joints.shape[1]
    rel_joints = joints.at[:, 1:].add(-joints[:, parents[1:]])
    top = jnp.concatenate([rot_mats, rel_joints[..., None]], axis=-1)          # (B,N,3,4)
    bottom = jnp.broadcast_to(jnp.array([0., 0., 0., 1.], jnp.float32), (B, N, 1, 4))
    transforms_mat = jnp.concatenate([top, bottom], axis=-2)                   # (B,N,4,4)
    transforms = transforms_mat                                                # root = local
    for idx, par in CHAIN_LEVELS:
        composed = jnp.einsum('bnij,bnjk->bnik',
                              transforms[:, par], transforms_mat[:, idx])
        transforms = transforms.at[:, idx].set(composed)
    posed_joints = transforms[:, :, :3, 3]
    joints_hom = jnp.concatenate([joints, jnp.zeros_like(joints[..., :1])], axis=-1)
    tj = jnp.einsum('bnij,bnj->bni', transforms, joints_hom)
    rel_transforms = transforms.at[:, :, :, 3].add(-tj)
    return posed_joints, rel_transforms


class SMPLHeadPallas:
    """Pallas implementation of SMPLHead.forward with synthetic SMPL parameters."""

    def __init__(self, focal_length=FOCAL_LENGTH, img_res=IMG_RES, seed=0):
        self.focal_length = focal_length
        self.img_res = img_res
        self.parents = SMPL_PARENTS

        keys = jax.random.split(jax.random.PRNGKey(seed), 7)
        f32 = jnp.float32
        self.v_template = 0.5 * jax.random.normal(keys[0], (NUM_VERTS, 3), f32)
        self.shapedirs = 0.03 * jax.random.normal(keys[1], (NUM_VERTS, 3, NUM_BETAS), f32)
        posedirs_raw = 0.01 * jax.random.normal(keys[2], (POSE_FEAT, NUM_VERTS, 3), f32)
        self.posedirs_flat = posedirs_raw.reshape(POSE_FEAT, NUM_VERTS * 3)    # torch layout
        jr = jnp.abs(jax.random.normal(keys[3], (NUM_JOINTS, NUM_VERTS), f32))
        self.J_regressor = jr / jnp.sum(jr, axis=1, keepdims=True)
        lw = jnp.abs(jax.random.normal(keys[4], (NUM_VERTS, NUM_JOINTS), f32))
        self.lbs_weights = lw / jnp.sum(lw, axis=1, keepdims=True)
        jre = jnp.abs(jax.random.normal(keys[5], (NUM_EXTRA_REG, NUM_VERTS), f32))
        self.J_regressor_extra = jre / jnp.sum(jre, axis=1, keepdims=True)
        self.vertex_ids = np.array([(i * 6 + 1) % NUM_VERTS
                                    for i in range(NUM_EXTRA_VSEL)], dtype=np.int32)

        # ---- kernel-side constant layouts (all small; dense wkron is gone) ----
        # pose blend shapes, coordinate-major: col k*V + v holds coord k of vertex v
        self.posedirs_cm = jnp.transpose(posedirs_raw, (0, 2, 1)).reshape(POSE_FEAT, V3)
        # factored skinning constant: lbs_weights^T, (24, V) ~ 12 KiB (scale-invariant in V)
        self.lbs_weights_T = jnp.transpose(self.lbs_weights)
        # 5-joint selector/regressor, padded to 128 output lanes:
        # joints 35, 37, 40, 42 of the 45-joint set (vertex-selected extras 11, 13, 16, 18)
        # plus the Thorax(MPII) row of J_regressor_extra (idx 5).
        reg5 = np.zeros((5, NUM_VERTS), dtype=np.float32)
        for r, ex in enumerate([11, 13, 16, 18]):
            reg5[r, self.vertex_ids[ex]] = 1.0
        reg5[4, :] = np.asarray(self.J_regressor_extra[5])
        reg_pad = np.zeros((NUM_VERTS, JSEL_PAD), dtype=np.float32)
        reg_pad[:, :5] = reg5.T
        self.reg_pad = jnp.asarray(reg_pad)

    def __call__(self, rotmat, betas, cam=None, normalize_joints2d=False):
        B = rotmat.shape[0]

        # shape blend shapes + 24-joint regression in glue (~100 KFLOP; XLA fuses it with
        # pose_feature and the kinematic chain -> one fewer pallas dispatch, no v_shaped
        # HBM round trip between kernels).
        v_shaped = self.v_template[None] + jnp.einsum('bl,vkl->bvk', betas, self.shapedirs)
        J = jnp.einsum('jv,bvk->bjk', self.J_regressor, v_shaped)
        vsh_flat = jnp.transpose(v_shaped, (0, 2, 1)).reshape(B, V3)       # coordinate-major

        ident = jnp.eye(3, dtype=jnp.float32)
        pose_feature = (rotmat[:, 1:] - ident).reshape(B, POSE_FEAT)

        # TODO(synk): tiny sequential kinematic chain stays in glue (level-batched einsums);
        # a per-joint dependent chain has no efficient in-kernel equivalent at this size.
        J_transformed, A = batch_rigid_transform(rotmat, J, self.parents)

        # relative transforms pre-permuted for the factored skinning kernel:
        # a_perm[r*4+c, b, j] = A[b, j, r, c]   (only the top 3 rows are needed)
        a_perm = jnp.transpose(A[:, :, :3, :].reshape(B, NUM_JOINTS, 12), (2, 0, 1))

        # pose blend + skinning + hand/thorax joint regression (single Pallas kernel)
        verts_flat, jsel_flat = lbs_skinning(pose_feature, vsh_flat, a_perm,
                                             self.posedirs_cm, self.lbs_weights_T,
                                             self.reg_pad)

        # single final transposes of the (small) outputs
        vertices = jnp.transpose(verts_flat.reshape(B, 3, NUM_VERTS), (0, 2, 1))     # (B,V,3)
        jsel = jnp.transpose(jsel_flat.reshape(B, 3, JSEL_PAD)[:, :, :5], (0, 2, 1)) # (B,5,3)

        # kinectv2 joint set: 24 skeleton joints + 2 left hand + 2 right hand + thorax
        joints3d = jnp.concatenate([J_transformed, jsel], axis=1)                    # (B,29,3)
        output = {'smpl_vertices': vertices, 'smpl_joints3d': joints3d}

        if cam is not None:
            # TODO(synk): projection kept in plain JAX glue — ~10 elementwise ops on a
            # (B,29,3) tensor, so a dedicated pallas_call would be pure launch overhead.
            tz = 2.0 * self.focal_length / (self.img_res * cam[:, 0] + 1e-9)
            cam_t = jnp.stack([cam[:, 1], cam[:, 2], tz], axis=-1)
            pts = joints3d + cam_t[:, None]
            inv_z = 1.0 / pts[..., 2:3]                 # one reciprocal shared by x and y
            joints2d = self.focal_length * pts[..., :2] * inv_z
            if normalize_joints2d:
                joints2d = joints2d / (self.img_res / 2.0)
            output['smpl_joints2d'] = joints2d
        return output

    # ------------------- pure-JAX reference (PyTorch semantics) ---------------

    def reference(self, rotmat, betas, cam=None, normalize_joints2d=False):
        B = rotmat.shape[0]
        v_shaped = self.v_template[None] + jnp.einsum('bl,vkl->bvk', betas, self.shapedirs)
        J = jnp.einsum('jv,bvk->bjk', self.J_regressor, v_shaped)
        ident = jnp.eye(3, dtype=jnp.float32)
        pose_feature = (rotmat[:, 1:] - ident).reshape(B, POSE_FEAT)
        pose_offsets = (pose_feature @ self.posedirs_flat).reshape(B, NUM_VERTS, 3)
        v_posed = v_shaped + pose_offsets
        J_transformed, A = batch_rigid_transform(rotmat, J, self.parents)
        T = jnp.einsum('vj,bjc->bvc', self.lbs_weights,
                       A.reshape(B, NUM_JOINTS, 16)).reshape(B, NUM_VERTS, 4, 4)
        hom = jnp.concatenate([v_posed, jnp.ones((B, NUM_VERTS, 1), jnp.float32)], axis=-1)
        verts = jnp.einsum('bvij,bvj->bvi', T, hom)[..., :3]
        extra_vsel = verts[:, self.vertex_ids]                                      # (B,21,3)
        joints45 = jnp.concatenate([J_transformed, extra_vsel], axis=1)             # (B,45,3)
        extra_joints = jnp.einsum('jv,bvk->bjk', self.J_regressor_extra, verts)     # (B,9,3)
        joints = jnp.concatenate([joints45[:, :24], joints45[:, [35, 37]],
                                  joints45[:, [40, 42]], extra_joints[:, 5:6]], axis=1)
        out = {'smpl_vertices': verts, 'smpl_joints3d': joints}
        if cam is not None:
            cam_t = jnp.stack([cam[:, 1], cam[:, 2],
                               2.0 * self.focal_length / (self.img_res * cam[:, 0] + 1e-9)],
                              axis=-1)
            pts = joints + cam_t[:, None]
            j2d = self.focal_length * pts[..., :2] / pts[..., 2:3]
            if normalize_joints2d:
                j2d = j2d / (self.img_res / 2.0)
            out['smpl_joints2d'] = j2d
        return out


# ----------------------------------- main -------------------------------------

if __name__ == "__main__":
    B = 2
    key = jax.random.PRNGKey(0)
    k_rot, k_betas, k_cam = jax.random.split(key, 3)

    rotmat = (jnp.eye(3, dtype=jnp.float32)
              + 0.05 * jax.random.normal(k_rot, (B, NUM_JOINTS, 3, 3), jnp.float32))
    betas = 0.5 * jax.random.normal(k_betas, (B, NUM_BETAS), jnp.float32)
    cam_noise = jax.random.normal(k_cam, (B, 3), jnp.float32)
    cam = jnp.stack([1.0 + 0.1 * cam_noise[:, 0],
                     0.1 * cam_noise[:, 1],
                     0.1 * cam_noise[:, 2]], axis=-1)

    head = SMPLHeadPallas(focal_length=FOCAL_LENGTH, img_res=IMG_RES, seed=0)

    fwd = jax.jit(lambda r, b, c: head(r, b, cam=c, normalize_joints2d=False))
    out = fwd(rotmat, betas, cam)
    jax.block_until_ready(out)

    ref = head.reference(rotmat, betas, cam=cam, normalize_joints2d=False)
    np.testing.assert_allclose(np.asarray(out['smpl_vertices']),
                               np.asarray(ref['smpl_vertices']), rtol=2e-3, atol=2e-3)
    np.testing.assert_allclose(np.asarray(out['smpl_joints3d']),
                               np.asarray(ref['smpl_joints3d']), rtol=2e-3, atol=2e-3)
    np.testing.assert_allclose(np.asarray(out['smpl_joints2d']),
                               np.asarray(ref['smpl_joints2d']), rtol=2e-3, atol=2e-2)

    assert out['smpl_vertices'].shape == (B, NUM_VERTS, 3)
    assert out['smpl_joints3d'].shape == (B, 29, 3)
    assert out['smpl_joints2d'].shape == (B, 29, 2)

    print("KERNEL_OK")
</pallas_src>

<mosaic_0001>
module attributes {stable_mosaic.version = 11 : i64} {
  func.func @_lbs_kernel(%arg0: i32, %arg1: memref<8x207xf32, #tpu.memory_space<vmem>>, %arg2: memref<8x384xf32, #tpu.memory_space<vmem>>, %arg3: memref<12x8x24xf32, #tpu.memory_space<vmem>>, %arg4: memref<207x384xf32, #tpu.memory_space<vmem>>, %arg5: memref<24x128xf32, #tpu.memory_space<vmem>>, %arg6: memref<128x128xf32, #tpu.memory_space<vmem>>, %arg7: memref<8x384xf32, #tpu.memory_space<vmem>>, %arg8: memref<8x384xf32, #tpu.memory_space<vmem>>) attributes {dimension_semantics = [#tpu.dimension_semantics<parallel>], iteration_bounds = array<i64: 1>, scalar_prefetch = 0 : i64, scratch_operands = 0 : i64, tpu.core_type = #tpu.core_type<tc>, window_params = [{transform_indices = @transform_0, window_bounds = array<i64: 8, 207>}, {transform_indices = @transform_1, window_bounds = array<i64: 8, 384>}, {transform_indices = @transform_2, window_bounds = array<i64: 12, 8, 24>}, {pipeline_mode = #tpu.pipeline_mode<synchronous>, transform_indices = @transform_3, window_bounds = array<i64: 207, 384>}, {pipeline_mode = #tpu.pipeline_mode<synchronous>, transform_indices = @transform_4, window_bounds = array<i64: 24, 128>}, {pipeline_mode = #tpu.pipeline_mode<synchronous>, transform_indices = @transform_5, window_bounds = array<i64: 128, 128>}, {transform_indices = @transform_6, window_bounds = array<i64: 8, 384>}, {transform_indices = @transform_7, window_bounds = array<i64: 8, 384>}]} {
    %c0 = arith.constant 0 : index
    %c0_0 = arith.constant 0 : index
    %0 = vector.load %arg2[%c0, %c0_0] : memref<8x384xf32, #tpu.memory_space<vmem>>, vector<8x384xf32>
    %c0_1 = arith.constant 0 : index
    %c0_2 = arith.constant 0 : index
    %1 = vector.load %arg1[%c0_1, %c0_2] : memref<8x207xf32, #tpu.memory_space<vmem>>, vector<8x207xf32>
    %c0_3 = arith.constant 0 : index
    %c0_4 = arith.constant 0 : index
    %2 = vector.load %arg4[%c0_3, %c0_4] : memref<207x384xf32, #tpu.memory_space<vmem>>, vector<207x384xf32>
    %cst = arith.constant dense<0.000000e+00> : vector<8x384xf32>
    %3 = tpu.matmul %1, %2, %cst {dimension_numbers = #tpu.dot_dimension_numbers<[1], [0], [0], [1], [0, 0, 1, 1], [], []>, precision = #tpu.contract_precision<fp32>} : vector<8x207xf32>, vector<207x384xf32>, vector<8x384xf32> -> vector<8x384xf32>
    %4 = arith.addf %0, %3 : vector<8x384xf32>
    %5 = vector.extract_strided_slice %4 {offsets = [0, 0], sizes = [8, 128], strides = [1, 1]} : vector<8x384xf32> to vector<8x128xf32>
    %6 = vector.extract_strided_slice %4 {offsets = [0, 128], sizes = [8, 128], strides = [1, 1]} : vector<8x384xf32> to vector<8x128xf32>
    %7 = vector.extract_strided_slice %4 {offsets = [0, 256], sizes = [8, 128], strides = [1, 1]} : vector<8x384xf32> to vector<8x128xf32>
    %c0_5 = arith.constant 0 : index
    %c0_6 = arith.constant 0 : index
    %8 = vector.load %arg5[%c0_5, %c0_6] : memref<24x128xf32, #tpu.memory_space<vmem>>, vector<24x128xf32>
    %c0_7 = arith.constant 0 : index
    %c0_8 = arith.constant 0 : index
    %9 = vector.load %arg6[%c0_7, %c0_8] : memref<128x128xf32, #tpu.memory_space<vmem>>, vector<128x128xf32>
    %c0_9 = arith.constant 0 : index
    %c0_10 = arith.constant 0 : index
    %c0_11 = arith.constant 0 : index
    %10 = vector.load %arg3[%c0_9, %c0_10, %c0_11] : memref<12x8x24xf32, #tpu.memory_space<vmem>>, vector<1x8x24xf32>
    %11 = vector.shape_cast %10 : vector<1x8x24xf32> to vector<8x24xf32>
    %cst_12 = arith.constant dense<0.000000e+00> : vector<8x128xf32>
    %12 = tpu.matmul %11, %8, %cst_12 {dimension_numbers = #tpu.dot_dimension_numbers<[1], [0], [0], [1], [0, 0, 1, 1], [], []>, precision = #tpu.contract_precision<fp32>} : vector<8x24xf32>, vector<24x128xf32>, vector<8x128xf32> -> vector<8x128xf32>
    %c1 = arith.constant 1 : index
    %c0_13 = arith.constant 0 : index
    %c0_14 = arith.constant 0 : index
    %13 = vector.load %arg3[%c1, %c0_13, %c0_14] : memref<12x8x24xf32, #tpu.memory_space<vmem>>, vector<1x8x24xf32>
    %14 = vector.shape_cast %13 : vector<1x8x24xf32> to vector<8x24xf32>
    %cst_15 = arith.constant dense<0.000000e+00> : vector<8x128xf32>
    %15 = tpu.matmul %14, %8, %cst_15 {dimension_numbers = #tpu.dot_dimension_numbers<[1], [0], [0], [1], [0, 0, 1, 1], [], []>, precision = #tpu.contract_precision<fp32>} : vector<8x24xf32>, vector<24x128xf32>, vector<8x128xf32> -> vector<8x128xf32>
    %c2 = arith.constant 2 : index
    %c0_16 = arith.constant 0 : index
    %c0_17 = arith.constant 0 : index
    %16 = vector.load %arg3[%c2, %c0_16, %c0_17] : memref<12x8x24xf32, #tpu.memory_space<vmem>>, vector<1x8x24xf32>
    %17 = vector.shape_cast %16 : vector<1x8x24xf32> to vector<8x24xf32>
    %cst_18 = arith.constant dense<0.000000e+00> : vector<8x128xf32>
    %18 = tpu.matmul %17, %8, %cst_18 {dimension_numbers = #tpu.dot_dimension_numbers<[1], [0], [0], [1], [0, 0, 1, 1], [], []>, precision = #tpu.contract_precision<fp32>} : vector<8x24xf32>, vector<24x128xf32>, vector<8x128xf32> -> vector<8x128xf32>
    %c3 = arith.constant 3 : index
    %c0_19 = arith.constant 0 : index
    %c0_20 = arith.constant 0 : index
    %19 = vector.load %arg3[%c3, %c0_19, %c0_20] : memref<12x8x24xf32, #tpu.memory_space<vmem>>, vector<1x8x24xf32>
    %20 = vector.shape_cast %19 : vector<1x8x24xf32> to vector<8x24xf32>
    %cst_21 = arith.constant dense<0.000000e+00> : vector<8x128xf32>
    %21 = tpu.matmul %20, %8, %cst_21 {dimension_numbers = #tpu.dot_dimension_numbers<[1], [0], [0], [1], [0, 0, 1, 1], [], []>, precision = #tpu.contract_precision<fp32>} : vector<8x24xf32>, vector<24x128xf32>, vector<8x128xf32> -> vector<8x128xf32>
    %22 = arith.mulf %12, %5 : vector<8x128xf32>
    %23 = arith.mulf %15, %6 : vector<8x128xf32>
    %24 = arith.addf %22, %23 : vector<8x128xf32>
    %25 = arith.mulf %18, %7 : vector<8x128xf32>
    %26 = arith.addf %24, %25 : vector<8x128xf32>
    %27 = arith.addf %26, %21 : vector<8x128xf32>
    %c0_22 = arith.constant 0 : index
    %c0_23 = arith.constant 0 : index
    %28 = vector.load %arg7[%c0_22, %c0_23] : memref<8x384xf32, #tpu.memory_space<vmem>>, vector<8x128xf32>
    tpu.vector_store %arg7[%c0_22, %c0_23], %27 {strides = array<i32>} : memref<8x384xf32, #tpu.memory_space<vmem>>, vector<8x128xf32>,
    %cst_24 = arith.constant dense<0.000000e+00> : vector<8x128xf32>
    %29 = tpu.matmul %27, %9, %cst_24 {dimension_numbers = #tpu.dot_dimension_numbers<[1], [0], [0], [1], [0, 0, 1, 1], [], []>, precision = #tpu.contract_precision<fp32>} : vector<8x128xf32>, vector<128x128xf32>, vector<8x128xf32> -> vector<8x128xf32>
    %c0_25 = arith.constant 0 : index
    %c0_26 = arith.constant 0 : index
    %30 = vector.load %arg8[%c0_25, %c0_26] : memref<8x384xf32, #tpu.memory_space<vmem>>, vector<8x128xf32>
    tpu.vector_store %arg8[%c0_25, %c0_26], %29 {strides = array<i32>} : memref<8x384xf32, #tpu.memory_space<vmem>>, vector<8x128xf32>,
    %c4 = arith.constant 4 : index
    %c0_27 = arith.constant 0 : index
    %c0_28 = arith.constant 0 : index
    %31 = vector.load %arg3[%c4, %c0_27, %c0_28] : memref<12x8x24xf32, #tpu.memory_space<vmem>>, vector<1x8x24xf32>
    %32 = vector.shape_cast %31 : vector<1x8x24xf32> to vector<8x24xf32>
    %cst_29 = arith.constant dense<0.000000e+00> : vector<8x128xf32>
    %33 = tpu.matmul %32, %8, %cst_29 {dimension_numbers = #tpu.dot_dimension_numbers<[1], [0], [0], [1], [0, 0, 1, 1], [], []>, precision = #tpu.contract_precision<fp32>} : vector<8x24xf32>, vector<24x128xf32>, vector<8x128xf32> -> vector<8x128xf32>
    %c5 = arith.constant 5 : index
    %c0_30 = arith.constant 0 : index
    %c0_31 = arith.constant 0 : index
    %34 = vector.load %arg3[%c5, %c0_30, %c0_31] : memref<12x8x24xf32, #tpu.memory_space<vmem>>, vector<1x8x24xf32>
    %35 = vector.shape_cast %34 : vector<1x8x24xf32> to vector<8x24xf32>
    %cst_32 = arith.constant dense<0.000000e+00> : vector<8x128xf32>
    %36 = tpu.matmul %35, %8, %cst_32 {dimension_numbers = #tpu.dot_dimension_numbers<[1], [0], [0], [1], [0, 0, 1, 1], [], []>, precision = #tpu.contract_precision<fp32>} : vector<8x24xf32>, vector<24x128xf32>, vector<8x128xf32> -> vector<8x128xf32>
    %c6 = arith.constant 6 : index
    %c0_33 = arith.constant 0 : index
    %c0_34 = arith.constant 0 : index
    %37 = vector.load %arg3[%c6, %c0_33, %c0_34] : memref<12x8x24xf32, #tpu.memory_space<vmem>>, vector<1x8x24xf32>
    %38 = vector.shape_cast %37 : vector<1x8x24xf32> to vector<8x24xf32>
    %cst_35 = arith.constant dense<0.000000e+00> : vector<8x128xf32>
    %39 = tpu.matmul %38, %8, %cst_35 {dimension_numbers = #tpu.dot_dimension_numbers<[1], [0], [0], [1], [0, 0, 1, 1], [], []>, precision = #tpu.contract_precision<fp32>} : vector<8x24xf32>, vector<24x128xf32>, vector<8x128xf32> -> vector<8x128xf32>
    %c7 = arith.constant 7 : index
    %c0_36 = arith.constant 0 : index
    %c0_37 = arith.constant 0 : index
    %40 = vector.load %arg3[%c7, %c0_36, %c0_37] : memref<12x8x24xf32, #tpu.memory_space<vmem>>, vector<1x8x24xf32>
    %41 = vector.shape_cast %40 : vector<1x8x24xf32> to vector<8x24xf32>
    %cst_38 = arith.constant dense<0.000000e+00> : vector<8x128xf32>
    %42 = tpu.matmul %41, %8, %cst_38 {dimension_numbers = #tpu.dot_dimension_numbers<[1], [0], [0], [1], [0, 0, 1, 1], [], []>, precision = #tpu.contract_precision<fp32>} : vector<8x24xf32>, vector<24x128xf32>, vector<8x128xf32> -> vector<8x128xf32>
    %43 = arith.mulf %33, %5 : vector<8x128xf32>
    %44 = arith.mulf %36, %6 : vector<8x128xf32>
    %45 = arith.addf %43, %44 : vector<8x128xf32>
    %46 = arith.mulf %39, %7 : vector<8x128xf32>
    %47 = arith.addf %45, %46 : vector<8x128xf32>
    %48 = arith.addf %47, %42 : vector<8x128xf32>
    %c0_39 = arith.constant 0 : index
    %c128 = arith.constant 128 : index
    %49 = vector.load %arg7[%c0_39, %c128] : memref<8x384xf32, #tpu.memory_space<vmem>>, vector<8x128xf32>
    tpu.vector_store %arg7[%c0_39, %c128], %48 {strides = array<i32>} : memref<8x384xf32, #tpu.memory_space<vmem>>, vector<8x128xf32>,
    %cst_40 = arith.constant dense<0.000000e+00> : vector<8x128xf32>
    %50 = tpu.matmul %48, %9, %cst_40 {dimension_numbers = #tpu.dot_dimension_numbers<[1], [0], [0], [1], [0, 0, 1, 1], [], []>, precision = #tpu.contract_precision<fp32>} : vector<8x128xf32>, vector<128x128xf32>, vector<8x128xf32> -> vector<8x128xf32>
    %c0_41 = arith.constant 0 : index
    %c128_42 = arith.constant 128 : index
    %51 = vector.load %arg8[%c0_41, %c128_42] : memref<8x384xf32, #tpu.memory_space<vmem>>, vector<8x128xf32>
    tpu.vector_store %arg8[%c0_41, %c128_42], %50 {strides = array<i32>} : memref<8x384xf32, #tpu.memory_space<vmem>>, vector<8x128xf32>,
    %c8 = arith.constant 8 : index
    %c0_43 = arith.constant 0 : index
    %c0_44 = arith.constant 0 : index
    %52 = vector.load %arg3[%c8, %c0_43, %c0_44] : memref<12x8x24xf32, #tpu.memory_space<vmem>>, vector<1x8x24xf32>
    %53 = vector.shape_cast %52 : vector<1x8x24xf32> to vector<8x24xf32>
    %cst_45 = arith.constant dense<0.000000e+00> : vector<8x128xf32>
    %54 = tpu.matmul %53, %8, %cst_45 {dimension_numbers = #tpu.dot_dimension_numbers<[1], [0], [0], [1], [0, 0, 1, 1], [], []>, precision = #tpu.contract_precision<fp32>} : vector<8x24xf32>, vector<24x128xf32>, vector<8x128xf32> -> vector<8x128xf32>
    %c9 = arith.constant 9 : index
    %c0_46 = arith.constant 0 : index
    %c0_47 = arith.constant 0 : index
    %55 = vector.load %arg3[%c9, %c0_46, %c0_47] : memref<12x8x24xf32, #tpu.memory_space<vmem>>, vector<1x8x24xf32>
    %56 = vector.shape_cast %55 : vector<1x8x24xf32> to vector<8x24xf32>
    %cst_48 = arith.constant dense<0.000000e+00> : vector<8x128xf32>
    %57 = tpu.matmul %56, %8, %cst_48 {dimension_numbers = #tpu.dot_dimension_numbers<[1], [0], [0], [1], [0, 0, 1, 1], [], []>, precision = #tpu.contract_precision<fp32>} : vector<8x24xf32>, vector<24x128xf32>, vector<8x128xf32> -> vector<8x128xf32>
    %c10 = arith.constant 10 : index
    %c0_49 = arith.constant 0 : index
    %c0_50 = arith.constant 0 : index
    %58 = vector.load %arg3[%c10, %c0_49, %c0_50] : memref<12x8x24xf32, #tpu.memory_space<vmem>>, vector<1x8x24xf32>
    %59 = vector.shape_cast %58 : vector<1x8x24xf32> to vector<8x24xf32>
    %cst_51 = arith.constant dense<0.000000e+00> : vector<8x128xf32>
    %60 = tpu.matmul %59, %8, %cst_51 {dimension_numbers = #tpu.dot_dimension_numbers<[1], [0], [0], [1], [0, 0, 1, 1], [], []>, precision = #tpu.contract_precision<fp32>} : vector<8x24xf32>, vector<24x128xf32>, vector<8x128xf32> -> vector<8x128xf32>
    %c11 = arith.constant 11 : index
    %c0_52 = arith.constant 0 : index
    %c0_53 = arith.constant 0 : index
    %61 = vector.load %arg3[%c11, %c0_52, %c0_53] : memref<12x8x24xf32, #tpu.memory_space<vmem>>, vector<1x8x24xf32>
    %62 = vector.shape_cast %61 : vector<1x8x24xf32> to vector<8x24xf32>
    %cst_54 = arith.constant dense<0.000000e+00> : vector<8x128xf32>
    %63 = tpu.matmul %62, %8, %cst_54 {dimension_numbers = #tpu.dot_dimension_numbers<[1], [0], [0], [1], [0, 0, 1, 1], [], []>, precision = #tpu.contract_precision<fp32>} : vector<8x24xf32>, vector<24x128xf32>, vector<8x128xf32> -> vector<8x128xf32>
    %64 = arith.mulf %54, %5 : vector<8x128xf32>
    %65 = arith.mulf %57, %6 : vector<8x128xf32>
    %66 = arith.addf %64, %65 : vector<8x128xf32>
    %67 = arith.mulf %60, %7 : vector<8x128xf32>
    %68 = arith.addf %66, %67 : vector<8x128xf32>
    %69 = arith.addf %68, %63 : vector<8x128xf32>
    %c0_55 = arith.constant 0 : index
    %c256 = arith.constant 256 : index
    %70 = vector.load %arg7[%c0_55, %c256] : memref<8x384xf32, #tpu.memory_space<vmem>>, vector<8x128xf32>
    tpu.vector_store %arg7[%c0_55, %c256], %69 {strides = array<i32>} : memref<8x384xf32, #tpu.memory_space<vmem>>, vector<8x128xf32>,
    %cst_56 = arith.constant dense<0.000000e+00> : vector<8x128xf32>
    %71 = tpu.matmul %69, %9, %cst_56 {dimension_numbers = #tpu.dot_dimension_numbers<[1], [0], [0], [1], [0, 0, 1, 1], [], []>, precision = #tpu.contract_precision<fp32>} : vector<8x128xf32>, vector<128x128xf32>, vector<8x128xf32> -> vector<8x128xf32>
    %c0_57 = arith.constant 0 : index
    %c256_58 = arith.constant 256 : index
    %72 = vector.load %arg8[%c0_57, %c256_58] : memref<8x384xf32, #tpu.memory_space<vmem>>, vector<8x128xf32>
    tpu.vector_store %arg8[%c0_57, %c256_58], %71 {strides = array<i32>} : memref<8x384xf32, #tpu.memory_space<vmem>>, vector<8x128xf32>,
    return
  }
  func.func @transform_0(%arg0: i32) -> (i32, i32) {
    %c0_i32 = arith.constant 0 : i32
    %c0_i32_0 = arith.constant 0 : i32
    return %arg0, %c0_i32 : i32, i32
  }
  func.func @transform_1(%arg0: i32) -> (i32, i32) {
    %c0_i32 = arith.constant 0 : i32
    %c0_i32_0 = arith.constant 0 : i32
    return %arg0, %c0_i32 : i32, i32
  }
  func.func @transform_2(%arg0: i32) -> (i32, i32, i32) {
    %c0_i32 = arith.constant 0 : i32
    %c0_i32_0 = arith.constant 0 : i32
    %c0_i32_1 = arith.constant 0 : i32
    return %c0_i32, %arg0, %c0_i32_0 : i32, i32, i32
  }
  func.func @transform_3(%arg0: i32) -> (i32, i32) {
    %c0_i32 = arith.constant 0 : i32
    %c0_i32_0 = arith.constant 0 : i32
    %c0_i32_1 = arith.constant 0 : i32
    return %c0_i32, %c0_i32_0 : i32, i32
  }
  func.func @transform_4(%arg0: i32) -> (i32, i32) {
    %c0_i32 = arith.constant 0 : i32
    %c0_i32_0 = arith.constant 0 : i32
    %c0_i32_1 = arith.constant 0 : i32
    return %c0_i32, %c0_i32_0 : i32, i32
  }
  func.func @transform_5(%arg0: i32) -> (i32, i32) {
    %c0_i32 = arith.constant 0 : i32
    %c0_i32_0 = arith.constant 0 : i32
    %c0_i32_1 = arith.constant 0 : i32
    return %c0_i32, %c0_i32_0 : i32, i32
  }
  func.func @transform_6(%arg0: i32) -> (i32, i32) {
    %c0_i32 = arith.constant 0 : i32
    %c0_i32_0 = arith.constant 0 : i32
    return %arg0, %c0_i32 : i32, i32
  }
  func.func @transform_7(%arg0: i32) -> (i32, i32) {
    %c0_i32 = arith.constant 0 : i32
    %c0_i32_0 = arith.constant 0 : i32
    return %arg0, %c0_i32 : i32, i32
  }
}

</mosaic_0001>

<bundles_post_ra>
// kernel: _lambda_.1
= control target key start
LH: loop header
LB: loop body
LE: loop exit
PB: predicated region body
PF: predicated region fallthrough
CT: control target
= control target key end

     0   :  { %vm112_vm0 = vcmask 1046528   ;;  %vm108_vm1 = vcmask 646144   ;;  %vm2057_vm2 = vcmask 195584   ;;  %vm12945_vm3 = vmmov 0   ;;  %s15902_s3 = inlined_call_operand.vmem [shape: f32[207,384], index: 3, kind: input, shape index: {}]   ;;  %s15903_s0 = inlined_call_operand.vmem [shape: f32[8,207], index: 0, kind: input, shape index: {}]   ;;  %s15904_s4 = inlined_call_operand.vmem [shape: f32[24,128], index: 4, kind: input, shape index: {}]   ;;  %s15905_s2 = inlined_call_operand.vmem [shape: f32[12,8,24], index: 2, kind: input, shape index: {}]   ;;  %s15906_s5 = inlined_call_operand.vmem [shape: f32[128,128], index: 5, kind: input, shape index: {}]   ;;  %s15907_s1 = inlined_call_operand.vmem [shape: f32[8,384], index: 1, kind: input, shape index: {}]   ;;  %s15908_s6 = inlined_call_operand.vmem [shape: f32[8,384], index: 6, kind: output, shape index: {0}]   ;;  %s15909_s7 = inlined_call_operand.vmem [shape: f32[8,384], index: 7, kind: output, shape index: {1}]  }
   0x1   :  { %v31_v0 = vld [vmem:[%s15902_s3 + $0x8] sm:$0xff]  ;;  %v34_v1 = vld [vmem:[%s15902_s3 + $0x20] sm:$0xff]  ;;  %v33_v5 = vld [vmem:[%s15902_s3 + $0x18] sm:$0xff] }
   0x2   :  { %v30_v2 = vld [vmem:[%s15902_s3] sm:$0xff]  ;;  %v122_v3 = vand.u32 4294901760, %v31_v0  ;;  %v126_v4 = vand.u32 4294901760, %v34_v1  ;;  %v37_v7 = vld [vmem:[%s15902_s3 + $0x38] sm:$0xff]  ;;  %v40_v8 = vld [vmem:[%s15902_s3 + $0x50] sm:$0xff]  ;;  %v128_v9 = vand.u32 4294901760, %v33_v5 }
   0x3   :  { %v124_v6 = vand.u32 4294901760, %v30_v2  ;;  %v130_v10 = vand.u32 4294901760, %v37_v7  ;;  %v134_v11 = vand.u32 4294901760, %v40_v8  ;;  %v36_v12 = vld [vmem:[%s15902_s3 + $0x30] sm:$0xff]  ;;  %v39_v17 = vld [vmem:[%s15902_s3 + $0x48] sm:$0xff]  ;;  %v46_v23 = vld [vmem:[%s15902_s3 + $0x80] sm:$0xff] }
   0x4   :  { %v13008_v13 = vpack.c.bf16 %v126_v4, %v122_v3  ;;  %v13010_v14 = vsub.f32 %v31_v0, %v122_v3  ;;  %v13012_v15 = vsub.f32 %v34_v1, %v126_v4  ;;  %v43_v18 = vld [vmem:[%s15902_s3 + $0x68] sm:$0xff]  ;;  %v13024_v20 = vsub.f32 %v33_v5, %v128_v9  ;;  %v42_v24 = vld [vmem:[%s15902_s3 + $0x60] sm:$0xff]  ;;  %v45_v28 = vld [vmem:[%s15902_s3 + $0x78] sm:$0xff] }
   0x5   :  { %v13014_v16 = vsub.f32 %v30_v2, %v124_v6  ;;  %v13022_v19 = vpack.c.bf16 %v128_v9, %v124_v6  ;;  %v13026_v21 = vpack.c.bf16 %v134_v11, %v130_v10  ;;  %v13028_v22 = vsub.f32 %v37_v7, %v130_v10  ;;  %v49_v32 = vld [vmem:[%s15902_s3 + $0x98] sm:$0xff]  ;;  %v52_v37 = vld [vmem:[%s15902_s3 + $0xb0] sm:$0xff]  ;;  %v51_v43 = vld [vmem:[%s15902_s3 + $0xa8] sm:$0xff] }
   0x6   :  { %16123 = vst [vmem:[#allocation2_spill] sm:$0xff] %v13008_v13  ;;  %16124 = vst [vmem:[#allocation3_spill] sm:$0xff] %v13010_v14  ;;  %11619 = vmatprep.subr.bf16.mxu1 %v13008_v13  ;;  %v11722_v25 = vpack.c.bf16 %v13012_v15, %v13010_v14  ;;  %v13039_v26 = vsub.f32 %v40_v8, %v134_v11  ;;  %v132_v27 = vand.u32 4294901760, %v36_v12  ;;  %v136_v30 = vand.u32 4294901760, %v39_v17  ;;  %v48_v42 = vld [vmem:[%s15902_s3 + $0x90] sm:$0xff]  ;;  %v55_v48 = vld [vmem:[%s15902_s3 + $0xc8] sm:$0xff] }
   0x7   :  { %16125 = vst [vmem:[#allocation4_spill] sm:$0xff] %v13012_v15  ;;  %16126 = vst [vmem:[#allocation5_spill] sm:$0xff] %v13014_v16  ;;  %11621 = vmatpush1.bf16.msra.mxu1 %v13022_v19  ;;  %v11724_v29 = vpack.c.bf16 %v13024_v20, %v13014_v16  ;;  %v138_v31 = vand.u32 4294901760, %v43_v18  ;;  %v142_v35 = vand.u32 4294901760, %v46_v23  ;;  %v140_v36 = vand.u32 4294901760, %v42_v24  ;;  %v58_v53 = vld [vmem:[%s15902_s3 + $0xe0] sm:$0xff] }
   0x8   :  { %16127 = vst [vmem:[#allocation6_spill] sm:$0xff] %v13022_v19  ;;  %16128 = vst [vmem:[#allocation7_spill] sm:$0xff] %v13024_v20  ;;  %11723 = vmatprep.subr.bf16.mxu0 %v11722_v25  ;;  %11623 = vmatprep.subr.bf16.mxu1 %v13026_v21  ;;  %v13051_v33 = vsub.f32 %v36_v12, %v132_v27  ;;  %v11726_v34 = vpack.c.bf16 %v13039_v26, %v13028_v22  ;;  %v144_v41 = vand.u32 4294901760, %v45_v28  ;;  %v54_v58 = vld [vmem:[%s15902_s3 + $0xc0] sm:$0xff]  ;;  %v57_v59 = vld [vmem:[%s15902_s3 + $0xd8] sm:$0xff] }
   0x9   :  { %16129 = vst [vmem:[#allocation8_spill] sm:$0xff] %v13026_v21  ;;  %16130 = vst [vmem:[#allocation9_spill] sm:$0xff] %v13028_v22  ;;  %11725 = vmatpush1.bf16.msra.mxu0 %v11724_v29  ;;  %v13058_v38 = vpack.c.bf16 %v136_v30, %v132_v27  ;;  %v13060_v39 = vsub.f32 %v39_v17, %v136_v30  ;;  %v13062_v40 = vsub.f32 %v43_v18, %v138_v31  ;;  %v61_v0 = vld [vmem:[%s15902_s3 + $0xf8] sm:$0xff]  ;;  %v64_v5 = vld [vmem:[%s15902_s3 + $0x110] sm:$0xff] }
   0xa   :  { %16131 = vst [vmem:[#allocation10_spill] sm:$0xff] %v13051_v33  ;;  %11727 = vmatprep.subr.bf16.mxu0 %v11726_v34  ;;  %v13070_v44 = vpack.c.bf16 %v142_v35, %v138_v31  ;;  %v13072_v45 = vsub.f32 %v46_v23, %v142_v35  ;;  %v13074_v46 = vsub.f32 %v42_v24, %v140_v36  ;;  %v146_v47 = vand.u32 4294901760, %v49_v32  ;;  %v60_v10 = vld [vmem:[%s15902_s3 + $0xf0] sm:$0xff]  ;;  %v63_v11 = vld [vmem:[%s15902_s3 + $0x108] sm:$0xff]  ;;  %v70_v29 = vld [vmem:[%s15902_s3 + $0x140] sm:$0xff] }
   0xb   :  { %16132 = vst [vmem:[#allocation11_spill] sm:$0xff] %v13058_v38  ;;  %16133 = vst [vmem:[#allocation12_spill] sm:$0xff] %v13060_v39  ;;  %11625 = vmatpush1.bf16.msra.mxu1 %v13058_v38  ;;  %v11728_v49 = vpack.c.bf16 %v13060_v39, %v13051_v33  ;;  %v13082_v50 = vpack.c.bf16 %v144_v41, %v140_v36  ;;  %v13084_v51 = vsub.f32 %v45_v28, %v144_v41  ;;  %v67_v23 = vld [vmem:[%s15902_s3 + $0x128] sm:$0xff]  ;;  %v66_v35 = vld [vmem:[%s15902_s3 + $0x120] sm:$0xff] }
   0xc   :  { %16134 = vst [vmem:[#allocation13_spill] sm:$0xff] %v13062_v40  ;;  %16135 = vst [vmem:[#allocation14_spill] sm:$0xff] %v13070_v44  ;;  %v150_v52 = vand.u32 4294901760, %v52_v37  ;;  %11627 = vmatprep.subr.bf16.mxu1 %v13070_v44  ;;  %v11730_v54 = vpack.c.bf16 %v13072_v45, %v13062_v40  ;;  %v13092_v55 = vsub.f32 %v49_v32, %v146_v47  ;;  %v148_v56 = vand.u32 4294901760, %v48_v42  ;;  %v69_v36 = vld [vmem:[%s15902_s3 + $0x138] sm:$0xff] }
   0xd   :  { %16136 = vst [vmem:[#allocation15_spill] sm:$0xff] %v13072_v45  ;;  %16137 = vst [vmem:[#allocation16_spill] sm:$0xff] %v13082_v50  ;;  %v152_v57 = vand.u32 4294901760, %v51_v43  ;;  %11729 = vmatpush1.bf16.msra.mxu0 %v11728_v49  ;;  %v11732_v60 = vpack.c.bf16 %v13084_v51, %v13074_v46  ;;  %v154_v63 = vand.u32 4294901760, %v55_v48  ;;  %v158_v4 = vand.u32 4294901760, %v58_v53 }
   0xe   :  { %v13102_v61 = vpack.c.bf16 %v150_v52, %v146_v47  ;;  %v13104_v62 = vsub.f32 %v52_v37, %v150_v52  ;;  %11731 = vmatprep.subr.bf16.mxu0 %v11730_v54  ;;  %v13111_v2 = vsub.f32 %v48_v42, %v148_v56  ;;  %v156_v8 = vand.u32 4294901760, %v54_v58 }
   0xf   :  { %v13109_v1 = vpack.c.bf16 %v152_v57, %v148_v56  ;;  %v13113_v3 = vsub.f32 %v51_v43, %v152_v57  ;;  %11629 = vmatpush1.bf16.msra.mxu1 %v13082_v50  ;;  %v13121_v7 = vsub.f32 %v55_v48, %v154_v63  ;;  %v160_v9 = vand.u32 4294901760, %v57_v59  ;;  %v73_v43 = vld [vmem:[%s15902_s3 + $0x158] sm:$0xff] }
  0x10   :  { %16138 = vst [vmem:[#allocation17_spill] sm:$0xff] %v13102_v61  ;;  %v11734_v6 = vpack.c.bf16 %v13104_v62, %v13092_v55  ;;  %11631 = vmatprep.subr.bf16.mxu1 %v13102_v61  ;;  %v13130_v12 = vpack.c.bf16 %v158_v4, %v154_v63  ;;  %v13132_v17 = vsub.f32 %v58_v53, %v158_v4  ;;  %v162_v18 = vand.u32 4294901760, %v61_v0  ;;  %v76_v53 = vld [vmem:[%s15902_s3 + $0x170] sm:$0xff] }
  0x11   :  { %16139 = vst [vmem:[#allocation18_spill] sm:$0xff] %v13109_v1  ;;  %11733 = vmatpush1.bf16.msra.mxu0 %v11732_v60  ;;  %v11736_v24 = vpack.c.bf16 %v13113_v3, %v13111_v2  ;;  %v13139_v25 = vsub.f32 %v54_v58, %v156_v8  ;;  %v13141_v27 = vsub.f32 %v57_v59, %v160_v9  ;;  %v166_v28 = vand.u32 4294901760, %v64_v5  ;;  %v72_v58 = vld [vmem:[%s15902_s3 + $0x150] sm:$0xff]  ;;  %v75_v59 = vld [vmem:[%s15902_s3 + $0x168] sm:$0xff] }
  0x12   :  { %16140 = vst [vmem:[#allocation19_spill] sm:$0xff] %v13130_v12  ;;  %11735 = vmatprep.subr.bf16.mxu0 %v11734_v6  ;;  %v11738_v30 = vpack.c.bf16 %v13132_v17, %v13121_v7  ;;  %v13148_v31 = vsub.f32 %v61_v0, %v162_v18  ;;  %v164_v32 = vand.u32 4294901760, %v60_v10  ;;  %v168_v34 = vand.u32 4294901760, %v63_v11 }
  0x13   :  { %11633 = vmatpush1.bf16.msra.mxu1 %v13109_v1  ;;  %v13157_v37 = vpack.c.bf16 %v160_v9, %v156_v8  ;;  %v13159_v41 = vsub.f32 %v64_v5, %v166_v28  ;;  %v170_v42 = vand.u32 4294901760, %v67_v23  ;;  %v13165_v47 = vpack.c.bf16 %v166_v28, %v162_v18  ;;  %v79_v5 = vld [vmem:[%s15902_s3 + $0x188] sm:$0xff] }
  0x14   :  { %11635 = vmatprep.subr.bf16.mxu1 %v13130_v12  ;;  %v13167_v48 = vsub.f32 %v60_v10, %v164_v32  ;;  %v13169_v49 = vsub.f32 %v63_v11, %v168_v34  ;;  %v174_v52 = vand.u32 4294901760, %v70_v29  ;;  %v11740_v54 = vpack.c.bf16 %v13141_v27, %v13139_v25  ;;  %v82_v11 = vld [vmem:[%s15902_s3 + $0x1a0] sm:$0xff] }
  0x15   :  { %16141 = vst [vmem:[#allocation20_spill] sm:$0xff] %v13157_v37  ;;  %16142 = vst [vmem:[#allocation21_spill] sm:$0xff] %v13165_v47  ;;  %11737 = vmatpush1.bf16.msra.mxu0 %v11736_v24  ;;  %v172_v56 = vand.u32 4294901760, %v66_v35  ;;  %v176_v57 = vand.u32 4294901760, %v69_v36  ;;  %v11742_v60 = vpack.c.bf16 %v13159_v41, %v13148_v31  ;;  %v13184_v63 = vsub.f32 %v67_v23, %v170_v42 }
  0x16   :  { %16143 = vst [vmem:[#allocation22_spill] sm:$0xff] %v13169_v49  ;;  %11739 = vmatprep.subr.bf16.mxu0 %v11738_v30  ;;  %v13186_v0 = vsub.f32 %v70_v29, %v174_v52  ;;  %v178_v4 = vand.u32 4294901760, %v73_v43  ;;  %v13193_v8 = vpack.c.bf16 %v168_v34, %v164_v32  ;;  %v11744_v9 = vpack.c.bf16 %v13169_v49, %v13167_v48  ;;  %v78_v29 = vld [vmem:[%s15902_s3 + $0x180] sm:$0xff]  ;;  %v81_v30 = vld [vmem:[%s15902_s3 + $0x198] sm:$0xff] }
  0x17   :  { %16144 = vst [vmem:[#allocation23_spill] sm:$0xff] %v13184_v63  ;;  %11637 = vmatpush1.bf16.msra.mxu1 %v13157_v37  ;;  %v182_v10 = vand.u32 4294901760, %v76_v53  ;;  %v13201_v18 = vpack.c.bf16 %v174_v52, %v170_v42  ;;  %v13203_v23 = vsub.f32 %v66_v35, %v172_v56  ;;  %v180_v24 = vand.u32 4294901760, %v72_v58  ;;  %v13220_v35 = vld [vmem:[%s15902_s3 + $0x1b8] sm:$0xff] }
  0x18   :  { %16145 = vst [vmem:[#allocation24_spill] sm:$0xff] %v13186_v0  ;;  %16146 = vst [vmem:[#allocation25_spill] sm:$0xff] %v13193_v8  ;;  %11639 = vmatprep.subr.bf16.mxu1 %v13165_v47  ;;  %v184_v28 = vand.u32 4294901760, %v75_v59  ;;  %v13211_v32 = vsub.f32 %v69_v36, %v176_v57  ;;  %v13213_v34 = vsub.f32 %v73_v43, %v178_v4  ;;  %v186_v42 = vand.u32 4294901760, %v79_v5  ;;  %v88_v43 = vld [vmem:[%s15902_s3 + $0x1d0] sm:$0xff] }
  0x19   :  { %16147 = vst [vmem:[#allocation26_spill] sm:$0xff] %v13201_v18  ;;  %16148 = vst [vmem:[#allocation27_spill] sm:$0xff] %v13203_v23  ;;  %11741 = vmatpush1.bf16.msra.mxu0 %v11740_v54  ;;  %v13215_v6 = vsub.f32 %v76_v53, %v182_v10  ;;  %v13223_v47 = vpack.c.bf16 %v176_v57, %v172_v56  ;;  %v11746_v54 = vpack.c.bf16 %v13186_v0, %v13184_v63  ;;  %v84_v56 = vld [vmem:[%s15902_s3 + $0x1b0] sm:$0xff]  ;;  %v87_v57 = vld [vmem:[%s15902_s3 + $0x1c8] sm:$0xff] }
  0x1a   :  { %16149 = vst [vmem:[#allocation28_spill] sm:$0xff] %v13211_v32  ;;  %16150 = vst [vmem:[#allocation29_spill] sm:$0xff] %v13213_v34  ;;  %11743 = vmatprep.subr.bf16.mxu0 %v11742_v60  ;;  %v190_v36 = vand.u32 4294901760, %v82_v11  ;;  %v13231_v53 = vsub.f32 %v72_v58, %v180_v24  ;;  %v13233_v37 = vsub.f32 %v75_v59, %v184_v28  ;;  %v188_v12 = vand.u32 4294901760, %v78_v29 }
  0x1b   :  { %16151 = vst [vmem:[#allocation30_spill] sm:$0xff] %v13215_v6  ;;  %16152 = vst [vmem:[#allocation31_spill] sm:$0xff] %v13223_v47  ;;  %11641 = vmatpush1.bf16.msra.mxu1 %v13193_v8  ;;  %v192_v52 = vand.u32 4294901760, %v81_v30  ;;  %v13242_v60 = vpack.c.bf16 %v182_v10, %v178_v4  ;;  %v13244_v1 = vsub.f32 %v79_v5, %v186_v42  ;;  %v194_v59 = vand.u32 4294901760, %v13220_v35  ;;  %v91_v8 = vld [vmem:[%s15902_s3 + $0x1e8] sm:$0xff]  ;;  %v94_v5 = vld [vmem:[%s15902_s3 + $0x200] sm:$0xff] }
  0x1c   :  { %16153 = vst [vmem:[#allocation32_spill] sm:$0xff] %v13231_v53  ;;  %16154 = vst [vmem:[#allocation33_spill] sm:$0xff] %v13233_v37  ;;  %11643 = vmatprep.subr.bf16.mxu1 %v13201_v18  ;;  %v13246_v58 = vsub.f32 %v82_v11, %v190_v36  ;;  %v11748_v61 = vpack.c.bf16 %v13211_v32, %v13203_v23  ;;  %v13254_v50 = vpack.c.bf16 %v184_v28, %v180_v24  ;;  %v90_v24 = vld [vmem:[%s15902_s3 + $0x1e0] sm:$0xff]  ;;  %v93_v28 = vld [vmem:[%s15902_s3 + $0x1f8] sm:$0xff] }
  0x1d   :  { %16155 = vst [vmem:[#allocation34_spill] sm:$0xff] %v13242_v60  ;;  %16156 = vst [vmem:[#allocation35_spill] sm:$0xff] %v13244_v1  ;;  %11745 = vmatpush1.bf16.msra.mxu0 %v11744_v9  ;;  %v11750_v4 = vpack.c.bf16 %v13215_v6, %v13213_v34  ;;  %v198_v10 = vand.u32 4294901760, %v88_v43  ;;  %v13261_v11 = vsub.f32 %v78_v29, %v188_v12  ;;  %v196_v9 = vand.u32 4294901760, %v84_v56  ;;  %v97_v34 = vld [vmem:[%s15902_s3 + $0x218] sm:$0xff] }
  0x1e   :  { %16157 = vst [vmem:[#allocation36_spill] sm:$0xff] %v13246_v58  ;;  %16158 = vst [vmem:[#allocation37_spill] sm:$0xff] %v13254_v50  ;;  %11747 = vmatprep.subr.bf16.mxu0 %v11746_v54  ;;  %v13263_v18 = vsub.f32 %v81_v30, %v192_v52  ;;  %v200_v44 = vand.u32 4294901760, %v87_v57  ;;  %v11752_v6 = vpack.c.bf16 %v13233_v37, %v13231_v53  ;;  %v202_v54 = vand.u32 4294901760, %v91_v8 }
  0x1f   :  { %16159 = vst [vmem:[#allocation38_spill] sm:$0xff] %v13261_v11  ;;  %11645 = vmatpush1.bf16.msra.mxu1 %v13223_v47  ;;  %v13275_v29 = vsub.f32 %v13220_v35, %v194_v59  ;;  %v13277_v30 = vsub.f32 %v88_v43, %v198_v10  ;;  %v13283_v32 = vpack.c.bf16 %v190_v36, %v186_v42  ;;  %v206_v37 = vand.u32 4294901760, %v94_v5  ;;  %v100_v35 = vld [vmem:[%s15902_s3 + $0x230] sm:$0xff]  ;;  %v99_v42 = vld [vmem:[%s15902_s3 + $0x228] sm:$0xff] }
  0x20   :  { %16160 = vst [vmem:[#allocation39_spill] sm:$0xff] %v13263_v18  ;;  %11647 = vmatprep.subr.bf16.mxu1 %v13242_v60  ;;  %v13285_v23 = vpack.c.bf16 %v192_v52, %v188_v12  ;;  %v11754_v47 = vpack.c.bf16 %v13246_v58, %v13244_v1  ;;  %v13292_v43 = vsub.f32 %v84_v56, %v196_v9  ;;  %v204_v38 = vand.u32 4294901760, %v90_v24  ;;  %v96_v12 = vld [vmem:[%s15902_s3 + $0x210] sm:$0xff] }
  0x21   :  { %16161 = vst [vmem:[#allocation40_spill] sm:$0xff] %v13275_v29  ;;  %16162 = vst [vmem:[#allocation41_spill] sm:$0xff] %v13277_v30  ;;  %11749 = vmatpush1.bf16.msra.mxu0 %v11748_v61  ;;  %v13294_v53 = vsub.f32 %v87_v57, %v200_v44  ;;  %v208_v0 = vand.u32 4294901760, %v93_v28  ;;  %v11756_v52 = vpack.c.bf16 %v13263_v18, %v13261_v11  ;;  %v210_v56 = vand.u32 4294901760, %v97_v34  ;;  %v106_v57 = vld [vmem:[%s15902_s3 + $0x260] sm:$0x7f] }
  0x22   :  { %16163 = vst [vmem:[#allocation42_spill] sm:$0xff] %v13283_v32  ;;  %16164 = vst [vmem:[#allocation43_spill] sm:$0xff] %v13285_v23  ;;  %11751 = vmatprep.subr.bf16.mxu0 %v11750_v4  ;;  %v13304_v36 = vsub.f32 %v91_v8, %v202_v54  ;;  %v13306_v61 = vsub.f32 %v94_v5, %v206_v37  ;;  %v13312_v60 = vpack.c.bf16 %v198_v10, %v194_v59  ;;  %v103_v8 = vld [vmem:[%s15902_s3 + $0x248] sm:$0xff] }
  0x23   :  { %16165 = vst [vmem:[#allocation44_spill] sm:$0xff] %v13292_v43  ;;  %16166 = vst [vmem:[#allocation45_spill] sm:$0xff] %v13294_v53  ;;  %11649 = vmatpush1.bf16.msra.mxu1 %v13254_v50  ;;  %v13314_v58 = vpack.c.bf16 %v200_v44, %v196_v9  ;;  %v11758_v4 = vpack.c.bf16 %v13277_v30, %v13275_v29  ;;  %v214_v1 = vand.u32 4294901760, %v100_v35  ;;  %v212_v11 = vand.u32 4294901760, %v96_v12  ;;  %v105_v44 = vld [vmem:[%s15902_s3 + $0x258] sm:$0x7f] }
  0x24   :  { %16167 = vst [vmem:[#allocation46_spill] sm:$0xff] %v13304_v36  ;;  %16168 = vst [vmem:[#allocation47_spill] sm:$0xff] %v13306_v61  ;;  %11651 = vmatprep.subr.bf16.mxu1 %v13283_v32  ;;  %v13322_v5 = vsub.f32 %v90_v24, %v204_v38  ;;  %v13324_v18 = vsub.f32 %v93_v28, %v208_v0  ;;  %v216_v50 = vand.u32 4294901760, %v99_v42  ;;  %v117_v32 = vsel %vm112_vm0, %v106_v57, 0  ;;  %v102_v24 = vld [vmem:[%s15902_s3 + $0x240] sm:$0xff]  ;;  %v29_v28 = vld [vmem:[%s15903_s0 + $0x8] sm:$0xff] }
  0x25   :  { %16169 = vst [vmem:[#allocation48_spill] sm:$0xff] %v13312_v60  ;;  %16170 = vst [vmem:[#allocation49_spill] sm:$0xff] %v13314_v58  ;;  %11753 = vmatpush1.bf16.msra.mxu0 %v11752_v6  ;;  %v11760_v59 = vpack.c.bf16 %v13294_v53, %v13292_v43  ;;  %v13331_v10 = vsub.f32 %v97_v34, %v210_v56  ;;  %v13333_v9 = vsub.f32 %v100_v35, %v214_v1 }
  0x26   :  { %11755 = vmatprep.subr.bf16.mxu0 %v11754_v47  ;;  %v13342_v30 = vpack.c.bf16 %v206_v37, %v202_v54  ;;  %v13344_v6 = vpack.c.bf16 %v208_v0, %v204_v38  ;;  %v11762_v34 = vpack.c.bf16 %v13306_v61, %v13304_v36  ;;  %v218_v35 = vand.u32 4294901760, %v103_v8  ;;  %v28_v54 = vld [vmem:[%s15903_s0] sm:$0xff] }
  0x27   :  { %11653 = vmatpush1.bf16.msra.mxu1 %v13285_v23  ;;  %v13349_v57 = vsub.f32 %v96_v12, %v212_v11  ;;  %v13351_v53 = vsub.f32 %v99_v42, %v216_v50  ;;  %v222_v43 = vand.u32 4294901760, %v117_v32  ;;  %v114_v29 = vsel %vm112_vm0, %v105_v44, 0 }
  0x28   :  { %16171 = vst [vmem:[#allocation50_spill] sm:$0xff] %v13342_v30  ;;  %11655 = vmatprep.subr.bf16.mxu1 %v13312_v60  ;;  %v11764_v37 = vpack.c.bf16 %v13324_v18, %v13322_v5  ;;  %v13357_v38 = vpack.c.bf16 %v214_v1, %v210_v56  ;;  %v220_v47 = vand.u32 4294901760, %v102_v24  ;;  %v110_v0 = vsel %vm108_vm1, %v29_v28, 0 }
  0x29   :  { %16172 = vst [vmem:[#allocation51_spill] sm:$0xff] %v13351_v53  ;;  %11757 = vmatpush1.bf16.msra.mxu0 %v11756_v52  ;;  %v13363_v12 = vpack.c.bf16 %v216_v50, %v212_v11  ;;  %v11766_v42 = vpack.c.bf16 %v13333_v9, %v13331_v10  ;;  %v13367_v44 = vsub.f32 %v103_v8, %v218_v35  ;;  %v13369_v60 = vand.u32 4294901760, %v110_v0 }
  0x2a   :  { %11759 = vmatprep.subr.bf16.mxu0 %v11758_v4  ;;  %v13371_v1 = vsub.f32 %v117_v32, %v222_v43  ;;  %v224_v56 = vand.u32 4294901760, %v114_v29  ;;  %v15978_v28 = vand.u32 4294901760, %v13010_v14  ;;  %v15979_v23 = vand.u32 4294901760, %v13012_v15 }
  0x2b   :  { %11657 = vmatpush1.bf16.msra.mxu1 %v13314_v58  ;;  %v11768_v50 = vpack.c.bf16 %v13351_v53, %v13349_v57  ;;  %v13378_v11 = vpack.c.bf16 %v222_v43, %v218_v35  ;;  %v13381_v52 = vsub.f32 %v110_v0, %v13369_v60  ;;  %v13383_v8 = vand.u32 4294901760, %v28_v54 }
  0x2c   :  { %11659 = vmatprep.subr.bf16.mxu1 %v13342_v30  ;;  %v13386_v32 = vsub.f32 %v102_v24, %v220_v47  ;;  %v258_v4 = vsub.f32 %v13010_v14, %v15978_v28  ;;  %v270_v58 = vsub.f32 %v13012_v15, %v15979_v23  ;;  %v16176_v43 = vand.u32 4294901760, %v13014_v16 }
  0x2d   :  { %16173 = vst [vmem:[#allocation52_spill] sm:$0xff] %v13378_v11  ;;  %16174 = vst [vmem:[#allocation53_spill] sm:$0xff] %v13381_v52  ;;  %11761 = vmatpush1.bf16.msra.mxu0 %v11760_v59  ;;  %v13398_v0 = vand.u32 4294901760, %v13381_v52  ;;  %v13401_v30 = vsub.f32 %v28_v54, %v13383_v8  ;;  %v16179_v24 = vand.u32 4294901760, %v13024_v20  ;;  %758 = vmatprep.mubr.f32.mxu0 %v13381_v52  ;;  %v15987_v28 = vand.u32 4294901760, %v13028_v22 }
  0x2e   :  { %16175 = vst [vmem:[#allocation54_spill] sm:$0xff] %v13383_v8  ;;  %v264_v35 = vsub.f32 %v13014_v16, %v16176_v43  ;;  %11763 = vmatprep.subr.bf16.mxu0 %v11762_v34  ;;  %v13408_v23 = vpack.c.bf16 %v224_v56, %v220_v47  ;;  %v13410_v15 = vsub.f32 %v114_v29, %v224_v56  ;;  %v15989_v43 = vand.u32 4294901760, %v13039_v26 }
  0x2f   :  { %16177 = vst [vmem:[#allocation55_spill] sm:$0xff] %v13398_v0  ;;  %16178 = vst [vmem:[#allocation56_spill] sm:$0xff] %v13401_v30  ;;  %v276_v53 = vsub.f32 %v13024_v20, %v16179_v24  ;;  %v11770_v59 = vpack.c.bf16 %v13371_v1, %v13367_v44  ;;  %11661 = vmatpush1.bf16.msra.mxu1 %v13344_v6  ;;  %v241_v54 = vsub.f32 %v13381_v52, %v13398_v0 }
  0x30   :  { %16180 = vst [vmem:[#allocation57_spill] sm:$0xff] %v13408_v23  ;;  %v13419_v24 = vand.u32 4294901760, %v13401_v30  ;;  %v282_v34 = vsub.f32 %v13028_v22, %v15987_v28  ;;  %11663 = vmatprep.subr.bf16.mxu1 %v13357_v38  ;;  %v259_v47 = vand.u32 4294901760, %v258_v4  ;;  %v271_v56 = vand.u32 4294901760, %v270_v58 }
  0x31   :  { %v294_v8 = vsub.f32 %v13039_v26, %v15989_v43  ;;  %v15990_v20 = vand.u32 4294901760, %v13060_v39  ;;  %11765 = vmatpush1.bf16.msra.mxu0 %v11764_v37  ;;  %v13430_v52 = vand.u32 4294901760, %v241_v54  ;;  %v265_v14 = vand.u32 4294901760, %v264_v35 }
  0x32   :  { %16181 = vst [vmem:[#allocation58_spill] sm:$0xff] %v13419_v24  ;;  %v247_v16 = vsub.f32 %v13401_v30, %v13419_v24  ;;  %v277_v28 = vand.u32 4294901760, %v276_v53  ;;  %11767 = vmatprep.subr.bf16.mxu0 %v11766_v42  ;;  %v283_v29 = vand.u32 4294901760, %v282_v34  ;;  %v16182_v22 = vand.u32 4294901760, %v13051_v33 }
  0x33   :  { %v15993_v4 = vand.u32 4294901760, %v13062_v40  ;;  %v15995_v43 = vand.u32 4294901760, %v13072_v45  ;;  %11665 = vmatpush1.bf16.msra.mxu1 %v13363_v12  ;;  %243 = vmatprep.mubr.f32.mxu1 %v13430_v52  ;;  %v295_v37 = vand.u32 4294901760, %v294_v8  ;;  %v300_v35 = vsub.f32 %v13060_v39, %v15990_v20 }
  0x34   :  { %v288_v58 = vsub.f32 %v13051_v33, %v16182_v22  ;;  %v15997_v53 = vand.u32 4294901760, %v13074_v46  ;;  %v15998_v42 = vand.u32 4294901760, %v13084_v51  ;;  %11667 = vmatprep.subr.bf16.mxu1 %v13378_v11  ;;  %v11772_v22 = vpack.c.bf16 %v13410_v15, %v13386_v32 }
  0x35   :  { %v11670_v54 = vpack.c.bf16 %v271_v56, %v259_v47  ;;  %v306_v34 = vsub.f32 %v13062_v40, %v15993_v4  ;;  %v318_v8 = vsub.f32 %v13072_v45, %v15995_v43  ;;  %11769 = vmatpush1.bf16.msra.mxu0 %v11768_v50  ;;  %v16006_v33 = vand.u32 4294901760, %v13092_v55 }
  0x36   :  { %v312_v20 = vsub.f32 %v13074_v46, %v15997_v53  ;;  %v324_v39 = vsub.f32 %v13084_v51, %v15998_v42  ;;  %v15999_v47 = vand.u32 4294901760, %v13104_v62  ;;  %11771 = vmatprep.subr.bf16.mxu0 %v11770_v59  ;;  %v13463_v56 = vand.u32 4294901760, %v247_v16 }
  0x37   :  { %v11672_v4 = vpack.c.bf16 %v277_v28, %v265_v14  ;;  %v289_v40 = vand.u32 4294901760, %v288_v58  ;;  %11669 = vmatpush1.bf16.msra.mxu1 %v13408_v23  ;;  %v11674_v50 = vpack.c.bf16 %v295_v37, %v283_v29  ;;  %v301_v45 = vand.u32 4294901760, %v300_v35 }
  0x38   :  { %16183 = vst [vmem:[#allocation59_spill] sm:$0xff] %v13463_v56  ;;  %v330_v53 = vsub.f32 %v13092_v55, %v16006_v33  ;;  %v342_v42 = vsub.f32 %v13104_v62, %v15999_v47  ;;  %11671 = vmatprep.subr.bf16.mxu1 %v11670_v54  ;;  %v307_v59 = vand.u32 4294901760, %v306_v34  ;;  %v319_v16 = vand.u32 4294901760, %v318_v8  ;;  %v16187_v33 = vld [vmem:[#allocation27_spill] sm:$0xff] }
  0x39   :  { %v16002_v14 = vand.u32 4294901760, %v13113_v3  ;;  %v16000_v28 = vand.u32 4294901760, %v13121_v7  ;;  %11773 = vmatpush1.bf16.msra.mxu0 %v11772_v22  ;;  %v313_v58 = vand.u32 4294901760, %v312_v20  ;;  %v325_v43 = vand.u32 4294901760, %v324_v39 }
  0x3a   :  { %v16001_v29 = vand.u32 4294901760, %v13132_v17  ;;  %249 = vmatmul.mubr.f32.vlgmr.msra.gmra.mrb[0].mxu1 %v13463_v56  ;;  %11775 = vmatprep.subr.bf16.mxu0 %v13008_v13  ;;  %v331_v37 = vand.u32 4294901760, %v330_v53  ;;  %v343_v35 = vand.u32 4294901760, %v342_v42  ;;  %v16184_v47 = vand.u32 4294901760, %v13111_v2  ;;  %v16190_v13 = vld [vmem:[#allocation29_spill] sm:$0xff]  ;;  %v16192_v56 = vld [vmem:[#allocation16_spill] sm:$0xff] }
  0x3b   :  { %v348_v34 = vsub.f32 %v13113_v3, %v16002_v14  ;;  %11673 = vmatpush1.bf16.msra.mxu1 %v11672_v4  ;;  %v11676_v22 = vpack.c.bf16 %v301_v45, %v289_v40  ;;  %v16003_v20 = vand.u32 4294901760, %v13139_v25  ;;  %v16004_v39 = vand.u32 4294901760, %v13141_v27  ;;  %580 = vmatprep.mubr.f32.mxu1 %v13369_v60 }
  0x3c   :  { %v336_v54 = vsub.f32 %v13111_v2, %v16184_v47  ;;  %v16005_v8 = vand.u32 4294901760, %v13148_v31  ;;  %761 = vmatmul.mubr.f32.vlgmr.msra.gmra.mrb[0].mxu0 %v13401_v30  ;;  %11675 = vmatprep.subr.bf16.mxu1 %v11674_v50  ;;  %v11678_v53 = vpack.c.bf16 %v319_v16, %v307_v59  ;;  %v354_v42 = vsub.f32 %v13121_v7, %v16000_v28  ;;  %v16189_v30 = vld [vmem:[#allocation28_spill] sm:$0xff] }
  0x3d   :  { %v366_v40 = vsub.f32 %v13132_v17, %v16001_v29  ;;  %v16008_v45 = vand.u32 4294901760, %v13159_v41  ;;  %11777 = vmatpush1.bf16.msra.mxu0 %v13022_v19  ;;  %v11680_v4 = vpack.c.bf16 %v325_v43, %v313_v58  ;;  %v16010_v47 = vand.u32 4294901760, %v13167_v48  ;;  %886 = vmatprep.mubr.f32.mxu0 %v13398_v0 }
  0x3e   :  { %11779 = vmatprep.subr.bf16.mxu0 %v13026_v21  ;;  %v11682_v50 = vpack.c.bf16 %v343_v35, %v331_v37  ;;  %v337_v59 = vand.u32 4294901760, %v336_v54  ;;  %v349_v16 = vand.u32 4294901760, %v348_v34  ;;  %v16013_v28 = vand.u32 4294901760, %v13169_v49 }
  0x3f   :  { %11677 = vmatpush1.bf16.msra.mxu1 %v11676_v22  ;;  %v360_v29 = vsub.f32 %v13139_v25, %v16003_v20  ;;  %v372_v43 = vsub.f32 %v13141_v27, %v16004_v39  ;;  %v378_v58 = vsub.f32 %v13148_v31, %v16005_v8  ;;  %v390_v37 = vsub.f32 %v13159_v41, %v16008_v45  ;;  %v16185_v22 = vld [vmem:[#allocation24_spill] sm:$0xff]  ;;  %v16186_v20 = vld [vmem:[#allocation11_spill] sm:$0xff]  ;;  %v16188_v45 = vld [vmem:[#allocation14_spill] sm:$0xff] }
  0x40   :  { %11679 = vmatprep.subr.bf16.mxu1 %v11678_v53  ;;  %v355_v35 = vand.u32 4294901760, %v354_v42  ;;  %v367_v54 = vand.u32 4294901760, %v366_v40  ;;  %v16016_v34 = vand.u32 4294901760, %v13184_v63  ;;  %v16019_v14 = vand.u32 4294901760, %v16185_v22 }
  0x41   :  { %11781 = vmatpush1.bf16.msra.mxu0 %v16186_v20  ;;  %v384_v39 = vsub.f32 %v13167_v48, %v16010_v47  ;;  %v396_v8 = vsub.f32 %v13169_v49, %v16013_v28  ;;  %v11684_v53 = vpack.c.bf16 %v349_v16, %v337_v59  ;;  %v361_v47 = vand.u32 4294901760, %v360_v29  ;;  %v16191_v59 = vld [vmem:[#allocation30_spill] sm:$0xff]  ;;  %v16194_v20 = vld [vmem:[#allocation32_spill] sm:$0xff]  ;;  %v16195_v29 = vld [vmem:[#allocation17_spill] sm:$0xff] }
  0x42   :  { %11783 = vmatprep.subr.bf16.mxu0 %v16188_v45  ;;  %v402_v42 = vsub.f32 %v13184_v63, %v16016_v34  ;;  %v414_v40 = vsub.f32 %v16185_v22, %v16019_v14  ;;  %v373_v21 = vand.u32 4294901760, %v372_v43  ;;  %v379_v19 = vand.u32 4294901760, %v378_v58  ;;  %v16213_v22 = vld [vmem:[#allocation21_spill] sm:$0xff] }
  0x43   :  { %11681 = vmatpush1.bf16.msra.mxu1 %v11680_v4  ;;  %v391_v28 = vand.u32 4294901760, %v390_v37  ;;  %v11686_v0 = vpack.c.bf16 %v367_v54, %v355_v35  ;;  %v16021_v45 = vand.u32 4294901760, %v16190_v13  ;;  %v385_v34 = vand.u32 4294901760, %v384_v39  ;;  %v16197_v35 = vld [vmem:[#allocation33_spill] sm:$0xff] }
  0x44   :  { %11683 = vmatprep.subr.bf16.mxu1 %v11682_v50  ;;  %v397_v63 = vand.u32 4294901760, %v396_v8  ;;  %v16193_v49 = vand.u32 4294901760, %v16187_v33  ;;  %v403_v43 = vand.u32 4294901760, %v402_v42  ;;  %v415_v58 = vand.u32 4294901760, %v414_v40  ;;  %v16199_v42 = vld [vmem:[#allocation35_spill] sm:$0xff] }
  0x45   :  { %11785 = vmatpush1.bf16.msra.mxu0 %v16192_v56  ;;  %v16196_v50 = vand.u32 4294901760, %v16189_v30  ;;  %v16027_v54 = vand.u32 4294901760, %v16197_v35  ;;  %v11688_v16 = vpack.c.bf16 %v373_v21, %v361_v47  ;;  %v11690_v39 = vpack.c.bf16 %v391_v28, %v379_v19  ;;  %v16205_v56 = vld [vmem:[#allocation39_spill] sm:$0xff] }
  0x46   :  { %v408_v14 = vsub.f32 %v16187_v33, %v16193_v49  ;;  %11787 = vmatprep.subr.bf16.mxu0 %v16195_v29  ;;  %v426_v49 = vsub.f32 %v16190_v13, %v16021_v45  ;;  %v16198_v8 = vand.u32 4294901760, %v16191_v59  ;;  %v16200_v29 = vld [vmem:[#allocation36_spill] sm:$0xff]  ;;  %v16201_v33 = vld [vmem:[#allocation18_spill] sm:$0xff]  ;;  %v11692_v28 = vpack.c.bf16 %v397_v63, %v385_v34  ;;  %v16212_v13 = vld [vmem:[#allocation45_spill] sm:$0xff] }
  0x47   :  { %v420_v37 = vsub.f32 %v16189_v30, %v16196_v50  ;;  %11685 = vmatpush1.bf16.msra.mxu1 %v11684_v53  ;;  %v16202_v50 = vand.u32 4294901760, %v16194_v20  ;;  %v444_v19 = vsub.f32 %v16197_v35, %v16027_v54  ;;  %v11694_v47 = vpack.c.bf16 %v415_v58, %v403_v43  ;;  %v16204_v45 = vld [vmem:[#allocation38_spill] sm:$0xff]  ;;  %v16207_v30 = vld [vmem:[#allocation41_spill] sm:$0xff]  ;;  %v16210_v34 = vld [vmem:[#allocation20_spill] sm:$0xff] }
  0x48   :  { %11687 = vmatprep.subr.bf16.mxu1 %v11686_v0  ;;  %v438_v4 = vsub.f32 %v16191_v59, %v16198_v8  ;;  %v16203_v0 = vld [vmem:[#allocation19_spill] sm:$0xff]  ;;  %v409_v53 = vand.u32 4294901760, %v408_v14  ;;  %v16028_v40 = vand.u32 4294901760, %v16204_v45  ;;  %v16208_v54 = vand.u32 4294901760, %v16199_v42  ;;  %v16211_v58 = vld [vmem:[#allocation44_spill] sm:$0xff] }
  0x49   :  { %11789 = vmatpush1.bf16.msra.mxu0 %v16201_v33  ;;  %v432_v21 = vsub.f32 %v16194_v20, %v16202_v50  ;;  %v421_v8 = vand.u32 4294901760, %v420_v37  ;;  %v16206_v33 = vld [vmem:[#allocation40_spill] sm:$0xff]  ;;  %v427_v50 = vand.u32 4294901760, %v426_v49  ;;  %v16209_v63 = vand.u32 4294901760, %v16200_v29 }
  0x4a   :  { %11791 = vmatprep.subr.bf16.mxu0 %v16203_v0  ;;  %v439_v20 = vand.u32 4294901760, %v438_v4  ;;  %v450_v0 = vsub.f32 %v16199_v42, %v16208_v54  ;;  %v445_v43 = vand.u32 4294901760, %v444_v19  ;;  %v456_v54 = vsub.f32 %v16204_v45, %v16028_v40  ;;  %v16217_v4 = vld [vmem:[#allocation25_spill] sm:$0xff] }
  0x4b   :  { %11689 = vmatpush1.bf16.msra.mxu1 %v11688_v16  ;;  %v462_v14 = vsub.f32 %v16200_v29, %v16209_v63  ;;  %v433_v16 = vand.u32 4294901760, %v432_v21  ;;  %v16214_v63 = vand.u32 4294901760, %v16205_v56  ;;  %v16215_v19 = vand.u32 4294901760, %v16206_v33 }
  0x4c   :  { %11691 = vmatprep.subr.bf16.mxu1 %v11690_v39  ;;  %v11696_v39 = vpack.c.bf16 %v421_v8, %v409_v53  ;;  %v16216_v37 = vand.u32 4294901760, %v16207_v30  ;;  %v11698_v8 = vpack.c.bf16 %v439_v20, %v427_v50  ;;  %v451_v49 = vand.u32 4294901760, %v450_v0 }
  0x4d   :  { %11793 = vmatpush1.bf16.msra.mxu0 %v16210_v34  ;;  %v468_v21 = vsub.f32 %v16205_v56, %v16214_v63  ;;  %v474_v59 = vsub.f32 %v16206_v33, %v16215_v19  ;;  %v16218_v40 = vand.u32 4294901760, %v16211_v58  ;;  %v16219_v63 = vand.u32 4294901760, %v16212_v13  ;;  %v16220_v19 = vld [vmem:[#allocation26_spill] sm:$0xff] }
  0x4e   :  { %11795 = vmatprep.subr.bf16.mxu0 %v16213_v22  ;;  %v486_v53 = vsub.f32 %v16207_v30, %v16216_v37  ;;  %v11700_v22 = vpack.c.bf16 %v445_v43, %v433_v16  ;;  %v16221_v33 = vand.u32 4294901760, %v13304_v36  ;;  %v16222_v20 = vand.u32 4294901760, %v13306_v61 }
  0x4f   :  { %11693 = vmatpush1.bf16.msra.mxu1 %v11692_v28  ;;  %v463_v28 = vand.u32 4294901760, %v462_v14  ;;  %v480_v34 = vsub.f32 %v16211_v58, %v16218_v40  ;;  %v492_v56 = vsub.f32 %v16212_v13, %v16219_v63  ;;  %v16036_v14 = vand.u32 4294901760, %v13324_v18 }
  0x50   :  { %11695 = vmatprep.subr.bf16.mxu1 %v11694_v47  ;;  %v498_v47 = vsub.f32 %v13304_v36, %v16221_v33  ;;  %v510_v0 = vsub.f32 %v13306_v61, %v16222_v20  ;;  %v457_v40 = vand.u32 4294901760, %v456_v54  ;;  %v469_v16 = vand.u32 4294901760, %v468_v21  ;;  %v16223_v33 = vld [vmem:[#allocation31_spill] sm:$0xff]  ;;  %v16224_v20 = vld [vmem:[#allocation34_spill] sm:$0xff] }
  0x51   :  { %11797 = vmatpush1.bf16.msra.mxu0 %v16217_v4  ;;  %v475_v43 = vand.u32 4294901760, %v474_v59  ;;  %v487_v37 = vand.u32 4294901760, %v486_v53  ;;  %v11702_v63 = vpack.c.bf16 %v463_v28, %v451_v49  ;;  %v16034_v4 = vand.u32 4294901760, %v13333_v9 }
  0x52   :  { %11799 = vmatprep.subr.bf16.mxu0 %v16220_v19  ;;  %v16035_v19 = vand.u32 4294901760, %v13331_v10  ;;  %v481_v36 = vand.u32 4294901760, %v480_v34  ;;  %v493_v13 = vand.u32 4294901760, %v492_v56  ;;  %v499_v50 = vand.u32 4294901760, %v498_v47 }
  0x53   :  { %11697 = vmatpush1.bf16.msra.mxu1 %v11696_v39  ;;  %v511_v61 = vand.u32 4294901760, %v510_v0  ;;  %v16225_v39 = vand.u32 4294901760, %v13322_v5  ;;  %v516_v59 = vsub.f32 %v13324_v18, %v16036_v14  ;;  %v11704_v49 = vpack.c.bf16 %v469_v16, %v457_v40  ;;  %v16228_v40 = vld [vmem:[#allocation42_spill] sm:$0xff] }
  0x54   :  { %11699 = vmatprep.subr.bf16.mxu1 %v11698_v8  ;;  %v11706_v21 = vpack.c.bf16 %v487_v37, %v475_v43  ;;  %v16038_v53 = vand.u32 4294901760, %v13349_v57  ;;  %v16226_v8 = vld [vmem:[#allocation51_spill] sm:$0xff]  ;;  %v522_v56 = vsub.f32 %v13331_v10, %v16035_v19  ;;  %v534_v28 = vsub.f32 %v13333_v9, %v16034_v4 }
  0x55   :  { %11801 = vmatpush1.bf16.msra.mxu0 %v16223_v33  ;;  %v504_v54 = vsub.f32 %v13322_v5, %v16225_v39  ;;  %v16037_v34 = vand.u32 4294901760, %v16226_v8  ;;  %v11708_v16 = vpack.c.bf16 %v493_v13, %v481_v36  ;;  %v11710_v43 = vpack.c.bf16 %v511_v61, %v499_v50 }
  0x56   :  { %11803 = vmatprep.subr.bf16.mxu0 %v16224_v20  ;;  %v528_v39 = vsub.f32 %v13349_v57, %v16038_v53  ;;  %v16040_v19 = vand.u32 4294901760, %v13386_v32  ;;  %v16039_v14 = vand.u32 4294901760, %v13410_v15  ;;  %v523_v0 = vand.u32 4294901760, %v522_v56 }
  0x57   :  { %11701 = vmatpush1.bf16.msra.mxu1 %v11700_v22  ;;  %v16227_v22 = vld [vmem:[#allocation37_spill] sm:$0xff]  ;;  %v505_v37 = vand.u32 4294901760, %v504_v54  ;;  %v540_v4 = vsub.f32 %v16226_v8, %v16037_v34  ;;  %v535_v47 = vand.u32 4294901760, %v534_v28  ;;  %v16229_v13 = vand.u32 4294901760, %v13367_v44  ;;  %v16231_v54 = vld [vmem:[#allocation43_spill] sm:$0xff] }
  0x58   :  { %11703 = vmatprep.subr.bf16.mxu1 %v11702_v63  ;;  %v517_v63 = vand.u32 4294901760, %v516_v59  ;;  %v16230_v61 = vand.u32 4294901760, %v13371_v1  ;;  %v16232_v59 = vld [vmem:[#allocation48_spill] sm:$0xff]  ;;  %v529_v34 = vand.u32 4294901760, %v528_v39  ;;  %v564_v56 = vsub.f32 %v13410_v15, %v16039_v14  ;;  %v16244_v14 = vld [vmem:[#allocation54_spill] sm:$0xff] }
  0x59   :  { %11805 = vmatpush1.bf16.msra.mxu0 %v16227_v22  ;;  %v546_v36 = vsub.f32 %v13367_v44, %v16229_v13  ;;  %v541_v53 = vand.u32 4294901760, %v540_v4  ;;  %v11714_v28 = vpack.c.bf16 %v535_v47, %v523_v0  ;;  %v13652_v39 = vld [vmem:[%s15902_s3 + $0x10] sm:$0xff]  ;;  %v13657_v47 = vld [vmem:[%s15902_s3 + $0x28] sm:$0xff] }
  0x5a   :  { %11807 = vmatprep.subr.bf16.mxu0 %v16228_v40  ;;  %v558_v50 = vsub.f32 %v13371_v1, %v16230_v61  ;;  %v16233_v40 = vld [vmem:[#allocation49_spill] sm:$0xff]  ;;  %v565_v4 = vand.u32 4294901760, %v564_v56  ;;  %v16041_v0 = vand.u32 4294901760, %v13657_v47 }
  0x5b   :  { %11705 = vmatpush1.bf16.msra.mxu1 %v11704_v49  ;;  %v11712_v49 = vpack.c.bf16 %v517_v63, %v505_v37  ;;  %v547_v13 = vand.u32 4294901760, %v546_v36  ;;  %v13671_v36 = vld [vmem:[%s15902_s3 + $0x58] sm:$0xff] }
  0x5c   :  { %11707 = vmatprep.subr.bf16.mxu1 %v11706_v21  ;;  %v552_v21 = vsub.f32 %v13386_v32, %v16040_v19  ;;  %v559_v61 = vand.u32 4294901760, %v558_v50  ;;  %v16235_v50 = vld [vmem:[#allocation3_spill] sm:$0xff]  ;;  %v16245_v19 = vld [vmem:[#allocation9_spill] sm:$0xff] }
  0x5d   :  { %11809 = vmatpush1.bf16.msra.mxu0 %v16231_v54  ;;  %v16234_v54 = vld [vmem:[#allocation50_spill] sm:$0xff] }
  0x5e   :  { %11811 = vmatprep.subr.bf16.mxu0 %v16232_v59  ;;  %v553_v37 = vand.u32 4294901760, %v552_v21  ;;  %v11718_v63 = vpack.c.bf16 %v559_v61, %v547_v13  ;;  %v16237_v21 = vld [vmem:[#allocation4_spill] sm:$0xff] }
  0x5f   :  { %11709 = vmatpush1.bf16.msra.mxu1 %v11708_v16  ;;  %v11716_v16 = vpack.c.bf16 %v541_v53, %v529_v34  ;;  %v16042_v34 = vand.u32 4294901760, %v13652_v39  ;;  %v16238_v56 = vand.u32 4294901760, %v16237_v21 }
  0x60   :  { %11711 = vmatprep.subr.bf16.mxu1 %v11710_v43  ;;  %v11720_v53 = vpack.c.bf16 %v565_v4, %v553_v37  ;;  %v13666_v43 = vld [vmem:[%s15902_s3 + $0x40] sm:$0xff]  ;;  %v16043_v37 = vmov 0.0|0.0   ;;  %v13691_v4 = vld [vmem:[%s15902_s3 + $0x70] sm:$0xff] }
  0x61   :  { %11813 = vmatpush1.bf16.msra.mxu0 %v16233_v40  ;;  %v13683_v13 = vpack.c.bf16 %v16041_v0, %v16042_v34  ;;  %v16047_v61 = vand.u32 4294901760, %v13666_v43  ;;  %v16246_v0 = vand.u32 4294901760, %v16245_v19  ;;  %v16247_v34 = vand.u32 4294901760, %v13039_v26  ;;  %v13723_v26 = vld [vmem:[%s15902_s3 + $0xa0] sm:$0xff] }
  0x62   :  { %11815 = vmatprep.subr.bf16.mxu0 %v16234_v54  ;;  %v16249_v19 = vmov 0.0|0.0  }
  0x63   :  { %11713 = vmatpush1.bf16.msra.mxu1 %v11712_v49  ;;  %v16236_v49 = vand.u32 4294901760, %v16235_v50  ;;  %16239 = vst [vmem:[#allocation33_spill] sm:$0xff] %v13683_v13 }
  0x64   :  { %11715 = vmatprep.subr.bf16.mxu1 %v11714_v28 }
  0x65   :  { %11817 = vmatpush1.bf16.msra.mxu0 %v13344_v6  ;;  %v11826_v28 = vpack.c.bf16 %v16238_v56, %v16236_v49  ;;  %v16242_v49 = vld [vmem:[#allocation7_spill] sm:$0xff] }
  0x66   :  { %11819 = vmatprep.subr.bf16.mxu0 %v13357_v38  ;;  %v16243_v21 = vand.u32 4294901760, %v16242_v49  ;;  %v16252_v49 = vld [vmem:[#allocation12_spill] sm:$0xff] }
  0x67   :  { %11717 = vmatpush1.bf16.msra.mxu1 %v11716_v16  ;;  %v16046_v16 = vand.u32 4294901760, %v13671_v36 }
  0x68   :  { %11719 = vmatprep.subr.bf16.mxu1 %v11718_v63  ;;  %v13696_v63 = vld [vmem:[%s15902_s3 + $0x88] sm:$0xff] }
  0x69   :  { %11821 = vmatpush1.bf16.msra.mxu0 %v13363_v12 }
  0x6a   :  { %11823 = vmatprep.subr.bf16.mxu0 %v13378_v11  ;;  %v16259_v11 = vand.u32 4294901760, %v13696_v63 }
  0x6b   :  { %11721 = vmatpush1.bf16.msra.mxu1 %v11720_v53  ;;  %v16240_v53 = vld [vmem:[#allocation5_spill] sm:$0xff] }
  0x6c   :  { %11930 = vmatprep.subr.bf16.mxu1 %v16043_v37  ;;  %v16241_v50 = vand.u32 4294901760, %v16240_v53  ;;  %v11830_v37 = vpack.c.bf16 %v16247_v34, %v16246_v0  ;;  %v13728_v34 = vld [vmem:[%s15902_s3 + $0xb8] sm:$0xff]  ;;  %v16250_v0 = vld [vmem:[#allocation10_spill] sm:$0xff] }
  0x6d   :  { %11825 = vmatpush1.bf16.msra.mxu0 %v13408_v23  ;;  %v13713_v23 = vpack.c.bf16 %v16046_v16, %v16047_v61  ;;  %v16254_v16 = vld [vmem:[#allocation13_spill] sm:$0xff] }
  0x6e   :  { %v11828_v56 = vpack.c.bf16 %v16243_v21, %v16241_v50  ;;  %582 = vmatmul.mubr.f32.vlgmr.msra.gmra.mrb[0].mxu1 %v16244_v14  ;;  %11827 = vmatprep.subr.bf16.mxu0 %v11826_v28  ;;  %v16251_v28 = vand.u32 4294901760, %v16250_v0  ;;  %v16253_v21 = vand.u32 4294901760, %v16252_v49  ;;  %v16255_v61 = vand.u32 4294901760, %v16254_v16  ;;  %v16256_v50 = vld [vmem:[#allocation15_spill] sm:$0xff]  ;;  %v13752_v16 = vld [vmem:[%s15902_s3 + $0xd0] sm:$0xff] }
  0x6f   :  { %11932 = vmatpush1.bf16.msra.mxu1 %v13683_v13  ;;  %16248 = vst [vmem:[#allocation35_spill] sm:$0xff] %v13713_v23  ;;  %1345 = vmatprep.mubr.f32.mxu1 %v13430_v52  ;;  %v16257_v53 = vand.u32 4294901760, %v16256_v50  ;;  %v16258_v13 = vand.u32 4294901760, %v13691_v4  ;;  %v16057_v0 = vand.u32 4294901760, %v13723_v26  ;;  %v16264_v50 = vand.u32 4294901760, %v13104_v62 }
  0x70   :  { %890 = vmatmul.mubr.f32.vlgmr.msra.gmra.mrb[0].mxu0 %v13419_v24  ;;  %11933 = vmatprep.subr.bf16.mxu1 %v16249_v19  ;;  %v11832_v52 = vpack.c.bf16 %v16253_v21, %v16251_v28  ;;  %v16052_v28 = vand.u32 4294901760, %v13728_v34  ;;  %v16266_v62 = vand.u32 4294901760, %v13111_v2 }
  0x71   :  { %11829 = vmatpush1.bf16.msra.mxu0 %v11828_v56  ;;  %1117 = vmatprep.mubr.f32.mxu0 %v13369_v60  ;;  %v11834_v24 = vpack.c.bf16 %v16257_v53, %v16255_v61  ;;  %v13744_v56 = vpack.c.bf16 %v16259_v11, %v16258_v13  ;;  %v13757_v61 = vld [vmem:[%s15902_s3 + $0xe8] sm:$0xff]  ;;  %v16261_v11 = vand.u32 4294901760, %v13074_v46  ;;  %v16262_v13 = vand.u32 4294901760, %v13084_v51  ;;  %v13780_v51 = vld [vmem:[%s15902_s3 + $0x100] sm:$0xff] }
  0x72   :  { %11831 = vmatprep.subr.bf16.mxu0 %v11830_v37  ;;  %v16263_v53 = vand.u32 4294901760, %v13092_v55  ;;  %v13772_v21 = vpack.c.bf16 %v16052_v28, %v16057_v0  ;;  %v16053_v46 = vand.u32 4294901760, %v13757_v61  ;;  %v13785_v55 = vld [vmem:[%s15902_s3 + $0x118] sm:$0xff] }
  0x73   :  { %11935 = vmatpush1.bf16.msra.mxu1 %v13713_v23  ;;  %16260 = vst [vmem:[#allocation36_spill] sm:$0xff] %v13744_v56  ;;  %v11836_v37 = vpack.c.bf16 %v16262_v13, %v16261_v11  ;;  %v16268_v13 = vand.u32 4294901760, %v13121_v7  ;;  %v16054_v2 = vand.u32 4294901760, %v13785_v55  ;;  %v13813_v7 = vld [vmem:[%s15902_s3 + $0x148] sm:$0xff] }
  0x74   :  { %11936 = vmatprep.subr.bf16.mxu1 %v16249_v19  ;;  %v11838_v49 = vpack.c.bf16 %v16264_v50, %v16263_v53  ;;  %16265 = vst [vmem:[#allocation38_spill] sm:$0xff] %v13772_v21  ;;  %v16269_v53 = vand.u32 4294901760, %v13132_v17  ;;  %v16271_v17 = vand.u32 4294901760, %v13139_v25  ;;  %v16058_v25 = vand.u32 4294901760, %v13813_v7 }
  0x75   :  { %11833 = vmatpush1.bf16.msra.mxu0 %v11832_v52  ;;  %v16056_v52 = vand.u32 4294901760, %v13752_v16 }
  0x76   :  { %11835 = vmatprep.subr.bf16.mxu0 %v11834_v24  ;;  %v16267_v24 = vand.u32 4294901760, %v13113_v3  ;;  %v11842_v50 = vpack.c.bf16 %v16269_v53, %v16268_v13  ;;  %v13808_v3 = vld [vmem:[%s15902_s3 + $0x130] sm:$0xff]  ;;  %v16274_v13 = vand.u32 4294901760, %v13159_v41  ;;  %v16276_v41 = vand.u32 4294901760, %v13167_v48 }
  0x77   :  { %11938 = vmatpush1.bf16.msra.mxu1 %v13744_v56  ;;  %v13800_v28 = vpack.c.bf16 %v16053_v46, %v16056_v52 }
  0x78   :  { %11939 = vmatprep.subr.bf16.mxu1 %v16249_v19  ;;  %v11840_v11 = vpack.c.bf16 %v16267_v24, %v16266_v62  ;;  %v16273_v24 = vand.u32 4294901760, %v13148_v31  ;;  %v13841_v31 = vld [vmem:[%s15902_s3 + $0x178] sm:$0xff] }
  0x79   :  { %11837 = vmatpush1.bf16.msra.mxu0 %v11836_v37  ;;  %16270 = vst [vmem:[#allocation41_spill] sm:$0xff] %v13800_v28  ;;  %v16055_v37 = vand.u32 4294901760, %v13780_v51 }
  0x7a   :  { %11839 = vmatprep.subr.bf16.mxu0 %v11838_v49  ;;  %v16272_v49 = vand.u32 4294901760, %v13141_v27  ;;  %v11846_v53 = vpack.c.bf16 %v16274_v13, %v16273_v24  ;;  %v13836_v27 = vld [vmem:[%s15902_s3 + $0x160] sm:$0xff]  ;;  %v16279_v24 = vld [vmem:[#allocation23_spill] sm:$0xff] }
  0x7b   :  { %11941 = vmatpush1.bf16.msra.mxu1 %v13772_v21  ;;  %v13828_v46 = vpack.c.bf16 %v16054_v2, %v16055_v37  ;;  %v16280_v13 = vand.u32 4294901760, %v16279_v24  ;;  %v16281_v2 = vld [vmem:[#allocation24_spill] sm:$0xff] }
  0x7c   :  { %11942 = vmatprep.subr.bf16.mxu1 %v16249_v19  ;;  %v11844_v62 = vpack.c.bf16 %v16272_v49, %v16271_v17  ;;  %v16282_v37 = vand.u32 4294901760, %v16281_v2  ;;  %v16284_v2 = vld [vmem:[#allocation27_spill] sm:$0xff] }
  0x7d   :  { %11841 = vmatpush1.bf16.msra.mxu0 %v11840_v11  ;;  %16275 = vst [vmem:[#allocation44_spill] sm:$0xff] %v13828_v46  ;;  %v16059_v11 = vand.u32 4294901760, %v13808_v3 }
  0x7e   :  { %11843 = vmatprep.subr.bf16.mxu0 %v11842_v50  ;;  %v16277_v50 = vld [vmem:[#allocation22_spill] sm:$0xff]  ;;  %v11850_v52 = vpack.c.bf16 %v16282_v37, %v16280_v13  ;;  %v13869_v37 = vld [vmem:[%s15902_s3 + $0x1a8] sm:$0xff]  ;;  %v16288_v13 = vld [vmem:[#allocation29_spill] sm:$0xff] }
  0x7f   :  { %11944 = vmatpush1.bf16.msra.mxu1 %v13800_v28  ;;  %v16278_v17 = vand.u32 4294901760, %v16277_v50  ;;  %v13856_v0 = vpack.c.bf16 %v16058_v25, %v16059_v11  ;;  %v16286_v50 = vld [vmem:[#allocation28_spill] sm:$0xff]  ;;  %v16289_v25 = vand.u32 4294901760, %v16288_v13  ;;  %v16290_v11 = vld [vmem:[#allocation30_spill] sm:$0xff]  ;;  %v16293_v28 = vand.u32 4294901760, %v13841_v31 }
  0x80   :  { %11945 = vmatprep.subr.bf16.mxu1 %v16249_v19  ;;  %v16291_v48 = vand.u32 4294901760, %v16290_v11  ;;  %v13897_v11 = vld [vmem:[%s15902_s3 + $0x1d8] sm:$0xff] }
  0x81   :  { %11845 = vmatpush1.bf16.msra.mxu0 %v11844_v62  ;;  %v11848_v49 = vpack.c.bf16 %v16278_v17, %v16276_v41  ;;  %16283 = vst [vmem:[#allocation31_spill] sm:$0xff] %v13856_v0  ;;  %v16285_v41 = vand.u32 4294901760, %v16284_v2  ;;  %v16287_v17 = vand.u32 4294901760, %v16286_v50  ;;  %v16066_v2 = vand.u32 4294901760, %v13869_v37 }
  0x82   :  { %11847 = vmatprep.subr.bf16.mxu0 %v11846_v53  ;;  %v13864_v53 = vld [vmem:[%s15902_s3 + $0x190] sm:$0xff]  ;;  %v11854_v62 = vpack.c.bf16 %v16291_v48, %v16289_v25  ;;  %v16299_v50 = vand.u32 4294901760, %v16200_v29  ;;  %v13925_v29 = vld [vmem:[%s15902_s3 + $0x208] sm:$0xff] }
  0x83   :  { %11947 = vmatpush1.bf16.msra.mxu1 %v13828_v46  ;;  %v11852_v24 = vpack.c.bf16 %v16287_v17, %v16285_v41  ;;  %v16292_v46 = vand.u32 4294901760, %v13836_v27  ;;  %v16295_v25 = vld [vmem:[#allocation32_spill] sm:$0xff]  ;;  %v16298_v41 = vand.u32 4294901760, %v16199_v42  ;;  %v16301_v42 = vand.u32 4294901760, %v16204_v45 }
  0x84   :  { %11948 = vmatprep.subr.bf16.mxu1 %v16249_v19 }
  0x85   :  { %11849 = vmatpush1.bf16.msra.mxu0 %v11848_v49  ;;  %v13884_v21 = vpack.c.bf16 %v16293_v28, %v16292_v46  ;;  %v16067_v49 = vand.u32 4294901760, %v13864_v53  ;;  %v16296_v28 = vand.u32 4294901760, %v16295_v25  ;;  %v16297_v46 = vand.u32 4294901760, %v16197_v35  ;;  %v13920_v35 = vld [vmem:[%s15902_s3 + $0x1f0] sm:$0xff] }
  0x86   :  { %11851 = vmatprep.subr.bf16.mxu0 %v11850_v52  ;;  %v13892_v52 = vld [vmem:[%s15902_s3 + $0x1c0] sm:$0xff]  ;;  %v11858_v17 = vpack.c.bf16 %v16299_v50, %v16298_v41  ;;  %v16304_v41 = vand.u32 4294901760, %v13652_v39  ;;  %v16307_v25 = vand.u32 4294901760, %v16207_v30 }
  0x87   :  { %11950 = vmatpush1.bf16.msra.mxu1 %v13856_v0  ;;  %16294 = vst [vmem:[#allocation34_spill] sm:$0xff] %v13884_v21  ;;  %v11856_v48 = vpack.c.bf16 %v16297_v46, %v16296_v28  ;;  %v13912_v13 = vpack.c.bf16 %v16066_v2, %v16067_v49  ;;  %v16305_v2 = vld [vmem:[#allocation40_spill] sm:$0xff]  ;;  %v16309_v45 = vand.u32 4294901760, %v13892_v52  ;;  %v13957_v30 = vld [vmem:[%s15902_s3 + $0x220] sm:$0xff]  ;;  %v16318_v0 = vld [vmem:[#allocation47_spill] sm:$0xff] }
  0x88   :  { %11951 = vmatprep.subr.bf16.mxu1 %v16249_v19  ;;  %v13934_v50 = vsub.f32 %v13652_v39, %v16304_v41  ;;  %v16306_v49 = vand.u32 4294901760, %v16305_v2  ;;  %v16316_v39 = vld [vmem:[#allocation46_spill] sm:$0xff]  ;;  %v16319_v56 = vand.u32 4294901760, %v16318_v0 }
  0x89   :  { %11853 = vmatpush1.bf16.msra.mxu0 %v11852_v24  ;;  %16300 = vst [vmem:[#allocation51_spill] sm:$0xff] %v13912_v13 }
  0x8a   :  { %11855 = vmatprep.subr.bf16.mxu0 %v11854_v62  ;;  %v16302_v62 = vld [vmem:[#allocation39_spill] sm:$0xff]  ;;  %v11862_v24 = vpack.c.bf16 %v16307_v25, %v16306_v49  ;;  %v16311_v49 = vand.u32 4294901760, %v13666_v43  ;;  %v16312_v25 = vand.u32 4294901760, %v16211_v58  ;;  %v16320_v58 = vand.u32 4294901760, %v13920_v35 }
  0x8b   :  { %11953 = vmatpush1.bf16.msra.mxu1 %v13884_v21  ;;  %v16303_v28 = vand.u32 4294901760, %v16302_v62  ;;  %v16308_v21 = vand.u32 4294901760, %v13657_v47 }
  0x8c   :  { %11954 = vmatprep.subr.bf16.mxu1 %v16249_v19 }
  0x8d   :  { %11857 = vmatpush1.bf16.msra.mxu0 %v11856_v48  ;;  %v11860_v46 = vpack.c.bf16 %v16303_v28, %v16301_v42  ;;  %v13943_v48 = vsub.f32 %v13657_v47, %v16308_v21  ;;  %v16310_v42 = vand.u32 4294901760, %v13897_v11  ;;  %v13962_v47 = vld [vmem:[%s15902_s3 + $0x238] sm:$0xff]  ;;  %v107_v21 = vld [vmem:[%s15902_s3 + $0x268] sm:$0x7f] }
  0x8e   :  { %11859 = vmatprep.subr.bf16.mxu0 %v11858_v17  ;;  %v13971_v17 = vsub.f32 %v13666_v43, %v16311_v49  ;;  %v16313_v28 = vld [vmem:[#allocation45_spill] sm:$0xff]  ;;  %v16078_v43 = vand.u32 4294901760, %v13957_v30  ;;  %v16321_v49 = vand.u32 4294901760, %v13925_v29  ;;  %v14001_v0 = vsel %vm112_vm0, %v107_v21, 0 }
  0x8f   :  { %11956 = vmatpush1.bf16.msra.mxu1 %v13912_v13  ;;  %v13950_v62 = vpack.c.bf16 %v16310_v42, %v16309_v45  ;;  %v16314_v41 = vand.u32 4294901760, %v16313_v28  ;;  %v16315_v42 = vand.u32 4294901760, %v13671_v36  ;;  %v16317_v13 = vand.u32 4294901760, %v16316_v39 }
  0x90   :  { %11957 = vmatprep.subr.bf16.mxu1 %v16249_v19  ;;  %v16323_v28 = vand.u32 4294901760, %v13696_v63  ;;  %v16324_v21 = vand.u32 4294901760, %v13322_v5  ;;  %v16328_v5 = vand.u32 4294901760, %v13962_v47 }
  0x91   :  { %11861 = vmatpush1.bf16.msra.mxu0 %v11860_v46  ;;  %v11864_v45 = vpack.c.bf16 %v16314_v41, %v16312_v25  ;;  %v13980_v2 = vsub.f32 %v13671_v36, %v16315_v42  ;;  %v11866_v23 = vpack.c.bf16 %v16319_v56, %v16317_v13  ;;  %v13993_v25 = vpack.c.bf16 %v16321_v49, %v16320_v58  ;;  %v13998_v36 = vld [vmem:[%s15902_s3 + $0x250] sm:$0xff] }
  0x92   :  { %11863 = vmatprep.subr.bf16.mxu0 %v11862_v24  ;;  %v16322_v24 = vand.u32 4294901760, %v13691_v4  ;;  %v14014_v41 = vsub.f32 %v13696_v63, %v16323_v28  ;;  %v16325_v42 = vand.u32 4294901760, %v13324_v18  ;;  %v16326_v49 = vand.u32 4294901760, %v13331_v10 }
  0x93   :  { %11959 = vmatpush1.bf16.msra.mxu1 %v13950_v62  ;;  %v16327_v13 = vand.u32 4294901760, %v13333_v9  ;;  %v1373_v46 = vand.u32 4294901760, %v13971_v17  ;;  %v14032_v18 = vpack.c.bf16 %v16328_v5, %v16078_v43  ;;  %v16330_v9 = vand.u32 4294901760, %v13943_v48 }
  0x94   :  { %11960 = vmatprep.subr.bf16.mxu1 %v16249_v19  ;;  %v14009_v39 = vsub.f32 %v13691_v4, %v16322_v24  ;;  %v11868_v58 = vpack.c.bf16 %v16325_v42, %v16324_v21  ;;  %v1323_v4 = vand.u32 4294901760, %v13998_v36  ;;  %v1326_v24 = vand.u32 4294901760, %v14001_v0 }
  0x95   :  { %11865 = vmatpush1.bf16.msra.mxu0 %v11864_v45  ;;  %v11870_v56 = vpack.c.bf16 %v16327_v13, %v16326_v49  ;;  %v1367_v63 = vsub.f32 %v13943_v48, %v16330_v9  ;;  %v16079_v45 = vand.u32 4294901760, %v13980_v2  ;;  %v16331_v13 = vand.u32 4294901760, %v13723_v26 }
  0x96   :  { %11867 = vmatprep.subr.bf16.mxu0 %v11866_v23  ;;  %v16329_v23 = vand.u32 4294901760, %v13934_v50  ;;  %v16332_v21 = vand.u32 4294901760, %v13728_v34  ;;  %v16333_v49 = vand.u32 4294901760, %v13349_v57  ;;  %v16334_v5 = vand.u32 4294901760, %v16226_v8 }
  0x97   :  { %11962 = vmatpush1.bf16.msra.mxu1 %v13993_v25  ;;  %v14045_v28 = vsub.f32 %v13723_v26, %v16331_v13  ;;  %v14060_v9 = vpack.c.bf16 %v1326_v24, %v1323_v4  ;;  %v16335_v26 = vand.u32 4294901760, %v13367_v44  ;;  %v16336_v13 = vand.u32 4294901760, %v13371_v1 }
  0x98   :  { %v1360_v10 = vsub.f32 %v13934_v50, %v16329_v23  ;;  %11963 = vmatprep.subr.bf16.mxu1 %v16249_v19  ;;  %v14050_v42 = vsub.f32 %v13728_v34, %v16332_v21  ;;  %v11872_v23 = vpack.c.bf16 %v16334_v5, %v16333_v49  ;;  %v1374_v34 = vsub.f32 %v13971_v17, %v1373_v46 }
  0x99   :  { %11869 = vmatpush1.bf16.msra.mxu0 %v11868_v58  ;;  %v11874_v43 = vpack.c.bf16 %v16336_v13, %v16335_v26  ;;  %v1387_v57 = vand.u32 4294901760, %v14009_v39  ;;  %v1381_v58 = vsub.f32 %v13980_v2, %v16079_v45  ;;  %v1394_v21 = vand.u32 4294901760, %v14014_v41 }
  0x9a   :  { %11871 = vmatprep.subr.bf16.mxu0 %v11870_v56  ;;  %v1361_v8 = vand.u32 4294901760, %v1360_v10  ;;  %v1368_v56 = vand.u32 4294901760, %v1367_v63  ;;  %v16337_v44 = vand.u32 4294901760, %v13752_v16  ;;  %v16338_v49 = vand.u32 4294901760, %v13386_v32 }
  0x9b   :  { %11965 = vmatpush1.bf16.msra.mxu1 %v14032_v18  ;;  %v16339_v5 = vand.u32 4294901760, %v13410_v15  ;;  %v16340_v63 = vand.u32 4294901760, %v13757_v61  ;;  %v1388_v13 = vsub.f32 %v14009_v39, %v1387_v57  ;;  %v16081_v45 = vand.u32 4294901760, %v14045_v28 }
  0x9c   :  { %11966 = vmatprep.subr.bf16.mxu1 %v16249_v19  ;;  %v14079_v1 = vsub.f32 %v13752_v16, %v16337_v44  ;;  %v16080_v16 = vand.u32 4294901760, %v14050_v42  ;;  %v11970_v32 = vpack.c.bf16 %v1368_v56, %v1361_v8  ;;  %v1382_v15 = vand.u32 4294901760, %v1381_v58  ;;  %v16343_v8 = vld [vmem:[#allocation59_spill] sm:$0xff] }
  0x9d   :  { %11873 = vmatpush1.bf16.msra.mxu0 %v11872_v23  ;;  %v11876_v10 = vpack.c.bf16 %v16339_v5, %v16338_v49  ;;  %v14088_v26 = vsub.f32 %v13757_v61, %v16340_v63  ;;  %v1375_v23 = vand.u32 4294901760, %v1374_v34  ;;  %v1395_v44 = vsub.f32 %v14014_v41, %v1394_v21  ;;  %v16344_v34 = vld [vmem:[#allocation2_spill] sm:$0xff] }
  0x9e   :  { %11875 = vmatprep.subr.bf16.mxu0 %v11874_v43  ;;  %v16341_v61 = vand.u32 4294901760, %v13780_v51  ;;  %v16342_v49 = vand.u32 4294901760, %v13785_v55  ;;  %v1402_v56 = vsub.f32 %v14045_v28, %v16081_v45  ;;  %v1409_v58 = vsub.f32 %v14050_v42, %v16080_v16 }
  0x9f   :  { %11968 = vmatpush1.bf16.msra.mxu1 %v14060_v9  ;;  %v1389_v63 = vand.u32 4294901760, %v1388_v13  ;;  %v16347_v13 = vand.u32 4294901760, %v13813_v7 }
  0xa0   :  { %11969 = vmatprep.subr.bf16.mxu1 %v16249_v19  ;;  %v14103_v43 = vsub.f32 %v13780_v51, %v16341_v61  ;;  %v14108_v5 = vsub.f32 %v13785_v55, %v16342_v49  ;;  %v16083_v51 = vand.u32 4294901760, %v14079_v1  ;;  %v1396_v61 = vand.u32 4294901760, %v1395_v44 }
  0xa1   :  { %11877 = vmatpush1.bf16.msra.mxu0 %v11876_v10  ;;  %v11973_v10 = vpack.c.bf16 %v1382_v15, %v1375_v23  ;;  %v16082_v55 = vand.u32 4294901760, %v14088_v26  ;;  %v16345_v49 = vand.u32 4294901760, %v13808_v3  ;;  %v16348_v23 = vld [vmem:[#allocation8_spill] sm:$0xff]  ;;  %v1403_v15 = vand.u32 4294901760, %v1402_v56 }
  0xa2   :  { %1351 = vmatmul.mubr.f32.vlgmr.msra.gmra.mrb[2].mxu1 %v16343_v8  ;;  %11879 = vmatprep.subr.bf16.mxu0 %v16344_v34  ;;  %v16346_v34 = vld [vmem:[#allocation6_spill] sm:$0xff]  ;;  %v1410_v44 = vand.u32 4294901760, %v1409_v58  ;;  %v1416_v16 = vsub.f32 %v14079_v1, %v16083_v51  ;;  %v16084_v45 = vand.u32 4294901760, %v14108_v5  ;;  %v16350_v58 = vld [vmem:[#allocation11_spill] sm:$0xff] }
  0xa3   :  { %11971 = vmatpush1.bf16.msra.mxu1 %v11970_v32  ;;  %1551 = vmatprep.mubr.f32.mxu1 %v13369_v60  ;;  %v14126_v8 = vsub.f32 %v13808_v3, %v16345_v49  ;;  %v14133_v32 = vsub.f32 %v13813_v7, %v16347_v13  ;;  %v11976_v3 = vpack.c.bf16 %v1396_v61, %v1389_v63  ;;  %v16349_v7 = vand.u32 4294901760, %v13836_v27  ;;  %v16352_v61 = vld [vmem:[#allocation14_spill] sm:$0xff] }
  0xa4   :  { %1119 = vmatmul.mubr.f32.vlgmr.msra.gmra.mrb[0].mxu0 %v16244_v14  ;;  %11972 = vmatprep.subr.bf16.mxu1 %v16249_v19  ;;  %v1423_v49 = vsub.f32 %v14088_v26, %v16082_v55  ;;  %v11979_v13 = vpack.c.bf16 %v1410_v44, %v1403_v15  ;;  %v16354_v15 = vld [vmem:[#allocation16_spill] sm:$0xff]  ;;  %v16355_v44 = vand.u32 4294901760, %v13869_v37 }
  0xa5   :  { %11881 = vmatpush1.bf16.msra.mxu0 %v16346_v34  ;;  %1242 = vmatprep.mubr.f32.mxu0 %v13369_v60  ;;  %v16085_v34 = vand.u32 4294901760, %v14103_v43  ;;  %v14148_v56 = vsub.f32 %v13836_v27, %v16349_v7  ;;  %v16086_v55 = vand.u32 4294901760, %v14126_v8  ;;  %v1437_v7 = vsub.f32 %v14108_v5, %v16084_v45 }
  0xa6   :  { %11883 = vmatprep.subr.bf16.mxu0 %v16348_v23  ;;  %v1417_v23 = vand.u32 4294901760, %v1416_v16  ;;  %v1424_v51 = vand.u32 4294901760, %v1423_v49  ;;  %v16356_v49 = vld [vmem:[#allocation17_spill] sm:$0xff] }
  0xa7   :  { %11974 = vmatpush1.bf16.msra.mxu1 %v11973_v10  ;;  %v16351_v10 = vand.u32 4294901760, %v13841_v31  ;;  %v1430_v27 = vsub.f32 %v14103_v43, %v16085_v34  ;;  %v1438_v34 = vand.u32 4294901760, %v1437_v7 }
  0xa8   :  { %11975 = vmatprep.subr.bf16.mxu1 %v16249_v19 }
  0xa9   :  { %11885 = vmatpush1.bf16.msra.mxu0 %v16350_v58  ;;  %v14154_v63 = vsub.f32 %v13841_v31, %v16351_v10  ;;  %v16087_v58 = vand.u32 4294901760, %v14133_v32  ;;  %v16353_v31 = vand.u32 4294901760, %v13864_v53  ;;  %v1444_v10 = vsub.f32 %v14126_v8, %v16086_v55 }
  0xaa   :  { %11887 = vmatprep.subr.bf16.mxu0 %v16352_v61  ;;  %v16088_v61 = vand.u32 4294901760, %v14148_v56  ;;  %v16359_v55 = vand.u32 4294901760, %v13897_v11 }
  0xab   :  { %11977 = vmatpush1.bf16.msra.mxu1 %v11976_v3  ;;  %v14169_v16 = vsub.f32 %v13864_v53, %v16353_v31  ;;  %v14175_v3 = vsub.f32 %v13869_v37, %v16355_v44  ;;  %v16089_v45 = vand.u32 4294901760, %v14154_v63  ;;  %v11982_v53 = vpack.c.bf16 %v1424_v51, %v1417_v23  ;;  %v16360_v51 = vld [vmem:[#allocation19_spill] sm:$0xff] }
  0xac   :  { %11978 = vmatprep.subr.bf16.mxu1 %v16249_v19  ;;  %v1431_v31 = vand.u32 4294901760, %v1430_v27  ;;  %v16357_v37 = vand.u32 4294901760, %v13892_v52  ;;  %v1458_v23 = vsub.f32 %v14148_v56, %v16088_v61  ;;  %v16363_v61 = vand.u32 4294901760, %v13925_v29 }
  0xad   :  { %11889 = vmatpush1.bf16.msra.mxu0 %v16354_v15  ;;  %v1451_v15 = vsub.f32 %v14133_v32, %v16087_v58  ;;  %v1465_v27 = vsub.f32 %v14154_v63, %v16089_v45  ;;  %v16090_v58 = vand.u32 4294901760, %v14175_v3 }
  0xae   :  { %11891 = vmatprep.subr.bf16.mxu0 %v16356_v49  ;;  %v14190_v44 = vsub.f32 %v13892_v52, %v16357_v37  ;;  %v16358_v49 = vld [vmem:[#allocation18_spill] sm:$0xff]  ;;  %v16091_v52 = vand.u32 4294901760, %v14169_v16  ;;  %v11985_v7 = vpack.c.bf16 %v1438_v34, %v1431_v31  ;;  %v1445_v37 = vand.u32 4294901760, %v1444_v10 }
  0xaf   :  { %11980 = vmatpush1.bf16.msra.mxu1 %v11979_v13  ;;  %v14196_v13 = vsub.f32 %v13897_v11, %v16359_v55  ;;  %v16361_v11 = vand.u32 4294901760, %v13920_v35  ;;  %v14217_v45 = vsub.f32 %v13925_v29, %v16363_v61  ;;  %v1459_v34 = vand.u32 4294901760, %v1458_v23  ;;  %v16366_v23 = vld [vmem:[#allocation25_spill] sm:$0xff] }
  0xb0   :  { %11981 = vmatprep.subr.bf16.mxu1 %v16249_v19  ;;  %v1466_v10 = vand.u32 4294901760, %v1465_v27  ;;  %v1472_v31 = vsub.f32 %v14169_v16, %v16091_v52  ;;  %v16365_v29 = vand.u32 4294901760, %v13957_v30  ;;  %v16367_v27 = vand.u32 4294901760, %v13962_v47 }
  0xb1   :  { %11893 = vmatpush1.bf16.msra.mxu0 %v16358_v49  ;;  %v1452_v49 = vand.u32 4294901760, %v1451_v15  ;;  %v14211_v55 = vsub.f32 %v13920_v35, %v16361_v11  ;;  %v1479_v35 = vsub.f32 %v14175_v3, %v16090_v58  ;;  %v1485_v11 = vand.u32 4294901760, %v14190_v44 }
  0xb2   :  { %11895 = vmatprep.subr.bf16.mxu0 %v16360_v51  ;;  %v16362_v51 = vld [vmem:[#allocation20_spill] sm:$0xff]  ;;  %v14232_v61 = vsub.f32 %v13957_v30, %v16365_v29 }
  0xb3   :  { %11983 = vmatpush1.bf16.msra.mxu1 %v11982_v53  ;;  %v16364_v53 = vld [vmem:[#allocation21_spill] sm:$0xff]  ;;  %v11988_v15 = vpack.c.bf16 %v1452_v49, %v1445_v37  ;;  %v16368_v37 = vld [vmem:[#allocation26_spill] sm:$0xff]  ;;  %v11991_v49 = vpack.c.bf16 %v1466_v10, %v1459_v34  ;;  %v16098_v58 = vand.u32 4294901760, %v14211_v55  ;;  %v1480_v52 = vand.u32 4294901760, %v1479_v35 }
  0xb4   :  { %11984 = vmatprep.subr.bf16.mxu1 %v16249_v19  ;;  %v1486_v30 = vsub.f32 %v14190_v44, %v1485_v11  ;;  %v14259_v34 = vsub.f32 %v14001_v0, %v1326_v24 }
  0xb5   :  { %11897 = vmatpush1.bf16.msra.mxu0 %v16362_v51  ;;  %v16099_v51 = vand.u32 4294901760, %v14196_v13  ;;  %v1500_v10 = vsub.f32 %v14211_v55, %v16098_v58  ;;  %v16391_v58 = vand.u32 4294901760, %v13980_v2 }
  0xb6   :  { %11899 = vmatprep.subr.bf16.mxu0 %v16364_v53  ;;  %v1473_v53 = vand.u32 4294901760, %v1472_v31  ;;  %v16093_v31 = vand.u32 4294901760, %v14232_v61 }
  0xb7   :  { %11986 = vmatpush1.bf16.msra.mxu1 %v11985_v7  ;;  %v14238_v7 = vsub.f32 %v13962_v47, %v16367_v27  ;;  %v1493_v29 = vsub.f32 %v14196_v13, %v16099_v51  ;;  %v14253_v47 = vsub.f32 %v13998_v36, %v1323_v4  ;;  %v1487_v4 = vand.u32 4294901760, %v1486_v30  ;;  %v2038_v30 = vld [vmem:[%s15904_s4 + $0x8] sm:$0xff] }
  0xb8   :  { %11987 = vmatprep.subr.bf16.mxu1 %v16249_v19  ;;  %v11994_v36 = vpack.c.bf16 %v1480_v52, %v1473_v53  ;;  %v1514_v0 = vsub.f32 %v14232_v61, %v16093_v31  ;;  %v16096_v53 = vand.u32 4294901760, %v14259_v34  ;;  %v2065_v31 = vand.u32 4294901760, %v2038_v30 }
  0xb9   :  { %11901 = vmatpush1.bf16.msra.mxu0 %v16366_v23  ;;  %v16094_v23 = vand.u32 4294901760, %v14217_v45  ;;  %v1494_v35 = vand.u32 4294901760, %v1493_v29  ;;  %v16097_v52 = vand.u32 4294901760, %v14253_v47  ;;  %v2056_v29 = vld [vmem:[%s15905_s2] sm:$0xff]  ;;  %v12090_v51 = vpack.c.bf16 %v16391_v58, %v1373_v46 }
  0xba   :  { %11903 = vmatprep.subr.bf16.mxu0 %v16368_v37  ;;  %v1501_v37 = vand.u32 4294901760, %v1500_v10  ;;  %v1515_v10 = vand.u32 4294901760, %v1514_v0  ;;  %v16394_v58 = vand.u32 4294901760, %v14079_v1 }
  0xbb   :  { %11989 = vmatpush1.bf16.msra.mxu1 %v11988_v15  ;;  %v16092_v15 = vand.u32 4294901760, %v14238_v7  ;;  %v11997_v27 = vpack.c.bf16 %v1494_v35, %v1487_v4  ;;  %v1528_v35 = vsub.f32 %v14253_v47, %v16097_v52  ;;  %v16390_v52 = vld [vmem:[#allocation58_spill] sm:$0xff] }
  0xbc   :  { %11990 = vmatprep.subr.bf16.mxu1 %v16249_v19 }
  0xbd   :  { %11905 = vmatpush1.bf16.msra.mxu0 %v16223_v33  ;;  %v1507_v33 = vsub.f32 %v14217_v45, %v16094_v23  ;;  %v1521_v24 = vsub.f32 %v14238_v7, %v16092_v15  ;;  %v1535_v15 = vsub.f32 %v14259_v34, %v16096_v53  ;;  %v2059_v23 = vsel %vm2057_vm2, %v2056_v29, 0  ;;  %v2039_v29 = vld [vmem:[%s15904_s4 + $0x10] sm:$0xff] }
  0xbe   :  { %11907 = vmatprep.subr.bf16.mxu0 %v16224_v20  ;;  %v16369_v20 = vld [vmem:[#allocation42_spill] sm:$0xff]  ;;  %v14303_v0 = vand.u32 4294901760, %v2059_v23 }
  0xbf   :  { %11992 = vmatpush1.bf16.msra.mxu1 %v11991_v49  ;;  %v1508_v49 = vand.u32 4294901760, %v1507_v33  ;;  %v1522_v4 = vand.u32 4294901760, %v1521_v24 }
  0xc0   :  { %11993 = vmatprep.subr.bf16.mxu1 %v16249_v19 }
  0xc1   :  { %11909 = vmatpush1.bf16.msra.mxu0 %v16227_v22  ;;  %v2037_v22 = vld [vmem:[%s15904_s4] sm:$0xff]  ;;  %v12003_v24 = vpack.c.bf16 %v1522_v4, %v1515_v10 }
  0xc2   :  { %11911 = vmatprep.subr.bf16.mxu0 %v16369_v20  ;;  %v2062_v33 = vand.u32 4294901760, %v2037_v22  ;;  %v12000_v20 = vpack.c.bf16 %v1508_v49, %v1501_v37  ;;  %v14307_v49 = vsub.f32 %v2038_v30, %v2065_v31 }
  0xc3   :  { %11995 = vmatpush1.bf16.msra.mxu1 %v11994_v36  ;;  %v16370_v36 = vld [vmem:[#allocation43_spill] sm:$0xff] }
  0xc4   :  { %11996 = vmatprep.subr.bf16.mxu1 %v16249_v19  ;;  %v14305_v37 = vsub.f32 %v2037_v22, %v2062_v33  ;;  %v2149_v30 = vand.u32 4294901760, %v14307_v49 }
  0xc5   :  { %11913 = vmatpush1.bf16.msra.mxu0 %v16370_v36  ;;  %v16371_v36 = vld [vmem:[#allocation52_spill] sm:$0xff] }
  0xc6   :  { %11915 = vmatprep.subr.bf16.mxu0 %v16232_v59  ;;  %v1529_v59 = vand.u32 4294901760, %v1528_v35  ;;  %v2142_v22 = vand.u32 4294901760, %v14305_v37  ;;  %v2150_v10 = vsub.f32 %v14307_v49, %v2149_v30  ;;  %v14339_v35 = vpack.c.bf16 %v2065_v31, %v2062_v33 }
  0xc7   :  { %11998 = vmatpush1.bf16.msra.mxu1 %v11997_v27  ;;  %v1536_v27 = vand.u32 4294901760, %v1535_v15  ;;  %v14318_v15 = vand.u32 4294901760, %v2039_v29  ;;  %v12946_v31 = vmov 0.0  }
  0xc8   :  { %11999 = vmatprep.subr.bf16.mxu1 %v16249_v19 }
  0xc9   :  { %11917 = vmatpush1.bf16.msra.mxu0 %v16233_v40  ;;  %v14316_v40 = vsub.f32 %v2059_v23, %v14303_v0  ;;  %v2143_v23 = vsub.f32 %v14305_v37, %v2142_v22  ;;  %v14335_v4 = vsub.f32 %v2039_v29, %v14318_v15 }
  0xca   :  { %11919 = vmatprep.subr.bf16.mxu0 %v16234_v54  ;;  %v12006_v54 = vpack.c.bf16 %v1536_v27, %v1529_v59  ;;  %v12012_v59 = vpack.c.bf16 %v13980_v2, %v13971_v17  ;;  %v2151_v27 = vand.u32 4294901760, %v2150_v10  ;;  %v12018_v10 = vpack.c.bf16 %v14050_v42, %v14045_v28 }
  0xcb   :  { %12001 = vmatpush1.bf16.msra.mxu1 %v12000_v20  ;;  %16372 = vst [vmem:[#allocation37_spill] sm:$0xff] %v14335_v4  ;;  %v14349_v29 = vand.u32 4294901760, %v14335_v4  ;;  %v16392_v2 = vand.u32 4294901760, %v14045_v28  ;;  %v16393_v17 = vand.u32 4294901760, %v14050_v42  ;;  %v16398_v28 = vand.u32 4294901760, %v14126_v8 }
  0xcc   :  { %12002 = vmatprep.subr.bf16.mxu1 %v16249_v19  ;;  %v16399_v42 = vand.u32 4294901760, %v14133_v32 }
  0xcd   :  { %11921 = vmatpush1.bf16.msra.mxu0 %v13344_v6  ;;  %v2131_v6 = vand.u32 4294901760, %v14316_v40  ;;  %16374 = vst [vmem:[#allocation48_spill] sm:$0xff] %v14349_v29  ;;  %v12096_v46 = vpack.c.bf16 %v16393_v17, %v16392_v2 }
  0xce   :  { %11923 = vmatprep.subr.bf16.mxu0 %v13357_v38  ;;  %v12009_v38 = vpack.c.bf16 %v13943_v48, %v13934_v50 }
  0xcf   :  { %12004 = vmatpush1.bf16.msra.mxu1 %v12003_v24  ;;  %v2132_v20 = vsub.f32 %v14316_v40, %v2131_v6  ;;  %v2144_v24 = vand.u32 4294901760, %v2143_v23  ;;  %v2157_v23 = vsub.f32 %v14335_v4, %v14349_v29 }
  0xd0   :  { %12005 = vmatprep.subr.bf16.mxu1 %v16249_v19 }
  0xd1   :  { %11925 = vmatpush1.bf16.msra.mxu0 %v13363_v12  ;;  %v16373_v12 = vld [vmem:[#allocation57_spill] sm:$0xff]  ;;  %v2133_v33 = vand.u32 4294901760, %v2132_v20  ;;  %v12021_v20 = vpack.c.bf16 %v14088_v26, %v14079_v1  ;;  %v16400_v1 = vand.u32 4294901760, %v14148_v56 }
  0xd2   :  { %11927 = vmatprep.subr.bf16.mxu0 %v16371_v36  ;;  %v12015_v36 = vpack.c.bf16 %v14014_v41, %v14009_v39  ;;  %v16396_v39 = vand.u32 4294901760, %v14103_v43  ;;  %v16397_v41 = vand.u32 4294901760, %v14108_v5 }
  0xd3   :  { %12007 = vmatpush1.bf16.msra.mxu1 %v12006_v54  ;;  %v16375_v54 = vld [vmem:[#allocation53_spill] sm:$0xff] }
  0xd4   :  { %12008 = vmatprep.subr.bf16.mxu1 %v16249_v19 }
  0xd5   :  { %11929 = vmatpush1.bf16.msra.mxu0 %v16373_v12  ;;  %v14370_v12 = vand.u32 4294901760, %v2157_v23  ;;  %v9735_v23 = vld [vmem:[%s15905_s2 + $0x8] sm:$0xff] }
  0xd6   :  { %1553 = vmatmul.mubr.f32.vlgmr.msra.gmra.mrb[4].mxu1 %v16244_v14  ;;  %12164 = vmatprep.subr.bf16.mxu0 %v16249_v19 }
  0xd7   :  { %12010 = vmatpush1.bf16.msra.mxu1 %v12009_v38  ;;  %1676 = vmatprep.mubr.f32.mxu1 %v16375_v54  ;;  %v14360_v38 = vpack.c.bf16 %v2151_v27, %v2144_v24  ;;  %v12024_v24 = vpack.c.bf16 %v14108_v5, %v14103_v43  ;;  %v12027_v27 = vpack.c.bf16 %v14133_v32, %v14126_v8  ;;  %v16402_v43 = vand.u32 4294901760, %v14169_v16 }
  0xd8   :  { %1244 = vmatmul.mubr.f32.vlgmr.msra.gmra.mrb[0].mxu0 %v16244_v14  ;;  %12011 = vmatprep.subr.bf16.mxu1 %v16249_v19  ;;  %v12030_v54 = vpack.c.bf16 %v14154_v63, %v14148_v56  ;;  %v16403_v5 = vand.u32 4294901760, %v14175_v3  ;;  %v16404_v8 = vand.u32 4294901760, %v14196_v13  ;;  %v16405_v56 = vand.u32 4294901760, %v14211_v55 }
  0xd9   :  { %12166 = vmatpush3.bf16.msra.mxu0 %v14339_v35  ;;  %10346 = vmatprep.mubr.msk.f32.mxu0 %vm12945_vm3, %v12946_v31 }
  0xda   :  { %10344 = vmatprep.subr.mxu0 %v12946_v31  ;;  %v12114_v32 = vpack.c.bf16 %v16404_v8, %v1485_v11  ;;  %v14807_v8 = vld [vmem:[%s15906_s5] sm:$0xff] }
  0xdb   :  { %12013 = vmatpush1.bf16.msra.mxu1 %v12012_v59  ;;  %v14381_v59 = vpack.c.bf16 %v14307_v49, %v14305_v37  ;;  %v12036_v37 = vpack.c.bf16 %v14196_v13, %v14190_v44  ;;  %v16409_v44 = vand.u32 4294901760, %v14253_v47  ;;  %v16410_v13 = vand.u32 4294901760, %v14259_v34 }
  0xdc   :  { %12014 = vmatprep.subr.bf16.mxu1 %v16249_v19 }
  0xdd   :  { %10345 = vmatpush3.msra.mxu0 %v14318_v15  ;;  %v12123_v11 = vpack.c.bf16 %v16410_v13, %v16409_v44 }
  0xde   :  { %10347 = vmatmul.mubr.f32.vlgmr.msra.gmra.mrb[2].mxu0 %v2133_v33  ;;  %12167 = vmatprep.subr.bf16.mxu0 %v16249_v19  ;;  %v12033_v33 = vpack.c.bf16 %v14175_v3, %v14169_v16  ;;  %v16407_v16 = vand.u32 4294901760, %v14232_v61  ;;  %v16408_v3 = vand.u32 4294901760, %v14238_v7 }
  0xdf   :  { %12016 = vmatpush1.bf16.msra.mxu1 %v12015_v36  ;;  %12169 = vmatpush3.bf16.msra.mxu0 %v14360_v38  ;;  %v14413_v36 = vpack.c.bf16 %v2149_v30, %v2142_v22  ;;  %v12039_v22 = vpack.c.bf16 %v14217_v45, %v14211_v55 }
  0xe0   :  { %12017 = vmatprep.subr.bf16.mxu1 %v16249_v19  ;;  %10353 = vmatprep.subr.mxu0 %v12946_v31 }
  0xe1   :  { %10355 = vmatprep.mubr.msk.f32.mxu0 %vm12945_vm3, %v12946_v31  ;;  %16376 = vst [vmem:[#allocation49_spill] sm:$0xff] %v14413_v36 }
  0xe3   :  { %12019 = vmatpush1.bf16.msra.mxu1 %v12018_v10  ;;  %10354 = vmatpush3.msra.mxu0 %v14370_v12  ;;  %v2536_v10 = vsel %vm2057_vm2, %v9735_v23, 0 }
  0xe4   :  { %12020 = vmatprep.subr.bf16.mxu1 %v16249_v19  ;;  %12170 = vmatprep.subr.bf16.mxu0 %v16249_v19  ;;  %v14430_v49 = vand.u32 4294901760, %v2536_v10 }
  0xe6   :  { %10356 = vmatmul.mubr.f32.vlgmr.msra.gmra.mrb[2].mxu0 %v14303_v0 }
  0xe7   :  { %12022 = vmatpush1.bf16.msra.mxu1 %v12021_v20  ;;  %12172 = vmatpush3.bf16.msra.mxu0 %v14381_v59  ;;  %v12042_v20 = vpack.c.bf16 %v14238_v7, %v14232_v61  ;;  %v9737_v7 = vld [vmem:[%s15905_s2 + $0x18] sm:$0xff] }
  0xe8   :  { %12023 = vmatprep.subr.bf16.mxu1 %v16249_v19  ;;  %10362 = vmatprep.subr.mxu0 %v12946_v31 }
  0xe9   :  { %10364 = vmatprep.mubr.msk.f32.mxu0 %vm12945_vm3, %v12946_v31 }
  0xeb   :  { %12025 = vmatpush1.bf16.msra.mxu1 %v12024_v24  ;;  %10363 = vmatpush3.msra.mxu0 %v14335_v4 }
  0xec   :  { %12026 = vmatprep.subr.bf16.mxu1 %v16249_v19  ;;  %12173 = vmatprep.subr.bf16.mxu0 %v16249_v19 }
  0xee   :  { %10365 = vmatmul.mubr.f32.vlgmr.msra.gmra.mrb[2].mxu0 %v14316_v40  ;;  %v9736_v40 = vld [vmem:[%s15905_s2 + $0x10] sm:$0xff] }
  0xef   :  { %12028 = vmatpush1.bf16.msra.mxu1 %v12027_v27  ;;  %12175 = vmatpush3.bf16.msra.mxu0 %v14339_v35  ;;  %v3013_v30 = vsel %vm2057_vm2, %v9736_v40, 0  ;;  %v16377_v40 = vld [vmem:[#allocation56_spill] sm:$0xff] }
  0xf0   :  { %12029 = vmatprep.subr.bf16.mxu1 %v16249_v19  ;;  %10371 = vmatprep.subr.mxu0 %v12946_v31  ;;  %v14448_v24 = vand.u32 4294901760, %v3013_v30 }
  0xf1   :  { %10373 = vmatprep.mubr.msk.f32.mxu0 %vm12945_vm3, %v12946_v31 }
  0xf3   :  { %12031 = vmatpush1.bf16.msra.mxu1 %v12030_v54  ;;  %10372 = vmatpush3.msra.mxu0 %v14318_v15  ;;  %v12045_v54 = vpack.c.bf16 %v14259_v34, %v14253_v47  ;;  %v3490_v47 = vsel %vm2057_vm2, %v9737_v7, 0  ;;  %v14882_v7 = vld [vmem:[%s15906_s5 + $0x38] sm:$0xff] }
  0xf4   :  { %12032 = vmatprep.subr.bf16.mxu1 %v16249_v19  ;;  %12176 = vmatprep.subr.bf16.mxu0 %v16249_v19 }
  0xf6   :  { %10374 = vmatmul.mubr.f32.vlgmr.msra.gmra.mrb[2].mxu0 %v2131_v6  ;;  %v14442_v6 = vsub.f32 %v2536_v10, %v14430_v49 }
  0xf7   :  { %12034 = vmatpush1.bf16.msra.mxu1 %v12033_v33  ;;  %12178 = vmatpush3.bf16.msra.mxu0 %v14413_v36  ;;  %v3084_v33 = vsub.f32 %v3013_v30, %v14448_v24  ;;  %v16379_v30 = vld [vmem:[#allocation55_spill] sm:$0xff] }
  0xf8   :  { %12035 = vmatprep.subr.bf16.mxu1 %v16249_v19  ;;  %10380 = vmatprep.subr.mxu0 %v12946_v31  ;;  %v16095_v27 = vand.u32 4294901760, %v14442_v6  ;;  %v16411_v34 = vand.u32 4294901760, %v14442_v6 }
  0xf9   :  { %10382 = vmatprep.mubr.msk.f32.mxu0 %vm12945_vm3, %v12946_v31  ;;  %v3085_v10 = vand.u32 4294901760, %v3084_v33 }
  0xfa   :  { %v2609_v23 = vsub.f32 %v14442_v6, %v16095_v27  ;;  %v16387_v27 = vld [vmem:[#allocation51_spill] sm:$0xff] }
  0xfb   :  { %12037 = vmatpush1.bf16.msra.mxu1 %v12036_v37  ;;  %10381 = vmatpush3.msra.mxu0 %v14349_v29 }
  0xfc   :  { %12038 = vmatprep.subr.bf16.mxu1 %v16249_v19  ;;  %12179 = vmatprep.subr.bf16.mxu0 %v16249_v19  ;;  %v2610_v37 = vand.u32 4294901760, %v2609_v23  ;;  %v16381_v23 = vld [vmem:[#allocation36_spill] sm:$0xff] }
  0xfe   :  { %10383 = vmatmul.mubr.f32.vlgmr.msra.gmra.mrb[2].mxu0 %v14303_v0 }
  0xff   :  { %12040 = vmatpush1.bf16.msra.mxu1 %v12039_v22  ;;  %12181 = vmatpush3.bf16.msra.mxu0 %v14339_v35  ;;  %v16378_v22 = vld [vmem:[#allocation33_spill] sm:$0xff] }
 0x100   :  { %12041 = vmatprep.subr.bf16.mxu1 %v16249_v19  ;;  %10389 = vmatprep.subr.mxu0 %v12946_v31 }
 0x101   :  { %10391 = vmatprep.mubr.msk.f32.mxu0 %vm12945_vm3, %v12946_v31 }
 0x103   :  { %12043 = vmatpush1.bf16.msra.mxu1 %v12042_v20  ;;  %10390 = vmatpush3.msra.mxu0 %v14318_v15  ;;  %v3086_v20 = vsub.f32 %v3084_v33, %v3085_v10 }
 0x104   :  { %12044 = vmatprep.subr.bf16.mxu1 %v16249_v19  ;;  %12182 = vmatprep.subr.bf16.mxu0 %v16249_v19 }
 0x106   :  { %10392 = vmatmul.mubr.f32.vlgmr.msra.gmra.mrb[2].mxu0 %v14303_v0  ;;  %v16380_v0 = vld [vmem:[#allocation35_spill] sm:$0xff] }
 0x107   :  { %12046 = vmatpush1.bf16.msra.mxu1 %v12045_v54  ;;  %12184 = vmatpush3.bf16.msra.mxu0 %v14339_v35  ;;  %v3087_v54 = vand.u32 4294901760, %v3086_v20  ;;  %v16385_v20 = vld [vmem:[#allocation31_spill] sm:$0xff] }
 0x108   :  { %12047 = vmatprep.subr.bf16.mxu1 %v16249_v19  ;;  %10398 = vmatprep.subr.mxu0 %v12946_v31 }
 0x109   :  { %10400 = vmatprep.mubr.msk.f32.mxu0 %vm12945_vm3, %v12946_v31 }
 0x10a   :  { %1679 = vmatmul.mubr.f32.vlgmr.msra.gmra.mrb[6].mxu1 %v16377_v40  ;;  %v16383_v40 = vld [vmem:[#allocation41_spill] sm:$0xff] }
 0x10b   :  { %12049 = vmatpush1.bf16.msra.mxu1 %v16378_v22  ;;  %1777 = vmatprep.mubr.f32.mxu1 %v16379_v30  ;;  %v16384_v30 = vld [vmem:[#allocation44_spill] sm:$0xff] }
 0x10c   :  { %12050 = vmatprep.subr.bf16.mxu1 %v16249_v19  ;;  %10399 = vmatpush3.msra.mxu0 %v14318_v15 }
 0x10d   :  { %12200 = vmatprep.subr.bf16.mxu0 %v16249_v19  ;;  %10401 = vmatmul.mubr.f32.vlgmr.msra.gmra.mrb[4].mxu0 %v2610_v37  ;;  %v16382_v37 = vld [vmem:[#allocation38_spill] sm:$0xff] }
 0x10e   :  { %12202 = vmatpush3.bf16.msra.mxu0 %v14339_v35  ;;  %10454 = vmatprep.mubr.msk.f32.mxu0 %vm12945_vm3, %v12946_v31 }
 0x10f   :  { %12052 = vmatpush1.bf16.msra.mxu1 %v16380_v0  ;;  %10452 = vmatprep.subr.mxu0 %v12946_v31 }
 0x110   :  { %12053 = vmatprep.subr.bf16.mxu1 %v16249_v19 }
 0x112   :  { %10453 = vmatpush3.msra.mxu0 %v14318_v15 }
 0x113   :  { %12055 = vmatpush1.bf16.msra.mxu1 %v16381_v23  ;;  %10455 = vmatmul.mubr.f32.vlgmr.msra.gmra.mrb[6].mxu0 %v3087_v54  ;;  %v16386_v54 = vld [vmem:[#allocation34_spill] sm:$0xff] }
 0x114   :  { %12056 = vmatprep.subr.bf16.mxu1 %v16249_v19  ;;  %12203 = vmatprep.subr.bf16.mxu0 %v16249_v19 }
 0x115   :  { %12205 = vmatpush3.bf16.msra.mxu0 %v14360_v38  ;;  %10463 = vmatprep.mubr.msk.f32.mxu0 %vm12945_vm3, %v12946_v31 }
 0x116   :  { %10461 = vmatprep.subr.mxu0 %v12946_v31 }
 0x117   :  { %12058 = vmatpush1.bf16.msra.mxu1 %v16382_v37 }
 0x118   :  { %12059 = vmatprep.subr.bf16.mxu1 %v16249_v19 }
 0x119   :  { %10462 = vmatpush3.msra.mxu0 %v14370_v12 }
 0x11a   :  { %12206 = vmatprep.subr.bf16.mxu0 %v16249_v19 }
 0x11b   :  { %12061 = vmatpush1.bf16.msra.mxu1 %v16383_v40  ;;  %10464 = vmatmul.mubr.f32.vlgmr.msra.gmra.mrb[6].mxu0 %v14448_v24 }
 0x11c   :  { %12062 = vmatprep.subr.bf16.mxu1 %v16249_v19  ;;  %12208 = vmatpush3.bf16.msra.mxu0 %v14381_v59 }
 0x11d   :  { %10470 = vmatprep.subr.mxu0 %v12946_v31  ;;  %10472 = vmatprep.mubr.msk.f32.mxu0 %vm12945_vm3, %v12946_v31 }
 0x11f   :  { %12064 = vmatpush1.bf16.msra.mxu1 %v16384_v30 }
 0x120   :  { %12065 = vmatprep.subr.bf16.mxu1 %v16249_v19  ;;  %10471 = vmatpush3.msra.mxu0 %v14335_v4 }
 0x121   :  { %12209 = vmatprep.subr.bf16.mxu0 %v16249_v19 }
 0x123   :  { %12067 = vmatpush1.bf16.msra.mxu1 %v16385_v20  ;;  %10473 = vmatmul.mubr.f32.vlgmr.msra.gmra.mrb[6].mxu0 %v3084_v33  ;;  %v16388_v33 = vand.u32 4294901760, %v13934_v50 }
 0x124   :  { %12068 = vmatprep.subr.bf16.mxu1 %v16249_v19  ;;  %12211 = vmatpush3.bf16.msra.mxu0 %v14339_v35 }
 0x125   :  { %10479 = vmatprep.subr.mxu0 %v12946_v31  ;;  %10481 = vmatprep.mubr.msk.f32.mxu0 %vm12945_vm3, %v12946_v31 }
 0x127   :  { %12070 = vmatpush1.bf16.msra.mxu1 %v16386_v54 }
 0x128   :  { %12071 = vmatprep.subr.bf16.mxu1 %v16249_v19  ;;  %10480 = vmatpush3.msra.mxu0 %v14318_v15 }
 0x129   :  { %12212 = vmatprep.subr.bf16.mxu0 %v16249_v19 }
 0x12b   :  { %12073 = vmatpush1.bf16.msra.mxu1 %v16387_v27  ;;  %10482 = vmatmul.mubr.f32.vlgmr.msra.gmra.mrb[6].mxu0 %v3085_v10  ;;  %v16389_v10 = vand.u32 4294901760, %v13943_v48 }
 0x12c   :  { %12074 = vmatprep.subr.bf16.mxu1 %v16249_v19  ;;  %12214 = vmatpush3.bf16.msra.mxu0 %v14413_v36 }
 0x12d   :  { %10488 = vmatprep.subr.mxu0 %v12946_v31  ;;  %10490 = vmatprep.mubr.msk.f32.mxu0 %vm12945_vm3, %v12946_v31  ;;  %v12087_v53 = vpack.c.bf16 %v16389_v10, %v16388_v33  ;;  %v12111_v33 = vpack.c.bf16 %v16403_v5, %v16402_v43 }
 0x12f   :  { %12076 = vmatpush1.bf16.msra.mxu1 %v13950_v62 }
 0x130   :  { %12077 = vmatprep.subr.bf16.mxu1 %v16249_v19  ;;  %10489 = vmatpush3.msra.mxu0 %v14349_v29 }
 0x131   :  { %12215 = vmatprep.subr.bf16.mxu0 %v16249_v19 }
 0x133   :  { %12079 = vmatpush1.bf16.msra.mxu1 %v13993_v25  ;;  %10491 = vmatmul.mubr.f32.vlgmr.msra.gmra.mrb[6].mxu0 %v14448_v24 }
 0x134   :  { %12080 = vmatprep.subr.bf16.mxu1 %v16249_v19  ;;  %12217 = vmatpush3.bf16.msra.mxu0 %v14339_v35 }
 0x135   :  { %10497 = vmatprep.subr.mxu0 %v12946_v31  ;;  %10499 = vmatprep.mubr.msk.f32.mxu0 %vm12945_vm3, %v12946_v31 }
 0x137   :  { %12082 = vmatpush1.bf16.msra.mxu1 %v14032_v18 }
 0x138   :  { %12083 = vmatprep.subr.bf16.mxu1 %v16249_v19  ;;  %10498 = vmatpush3.msra.mxu0 %v14318_v15 }
 0x139   :  { %12236 = vmatprep.subr.bf16.mxu0 %v16249_v19 }
 0x13b   :  { %12085 = vmatpush1.bf16.msra.mxu1 %v14060_v9  ;;  %10500 = vmatmul.mubr.f32.vlgmr.msra.gmra.mrb[6].mxu0 %v14448_v24 }
 0x13c   :  { %12086 = vmatprep.subr.bf16.mxu1 %v16249_v19  ;;  %10588 = vmatprep.mubr.msk.f32.mxu0 %vm12945_vm3, %v12946_v31 }
 0x13e   :  { %1781 = vmatmul.mubr.f32.vlgmr.msra.gmra.mrb[8].mxu1 %v16390_v52  ;;  %v12093_v52 = vpack.c.bf16 %v1394_v21, %v1387_v57  ;;  %v12102_v57 = vpack.c.bf16 %v16397_v41, %v16396_v39  ;;  %v12105_v21 = vpack.c.bf16 %v16399_v42, %v16398_v28  ;;  %v9739_v39 = vld [vmem:[%s15905_s2 + $0x28] sm:$0xff] }
 0x13f   :  { %12088 = vmatpush1.bf16.msra.mxu1 %v12087_v53  ;;  %1929 = vmatprep.mubr.f32.mxu1 %v13369_v60  ;;  %v5093_v41 = vsel %vm2057_vm2, %v9739_v39, 0  ;;  %v14957_v39 = vld [vmem:[%s15906_s5 + $0x60] sm:$0xff] }
 0x140   :  { %12089 = vmatprep.subr.bf16.mxu1 %v16249_v19  ;;  %v14771_v42 = vand.u32 4294901760, %v5093_v41 }
 0x141   :  { %v14552_v50 = vpop.f32.mrb[0].mxu1 }
 0x142   :  { %v14554_v48 = vpop.f32.mrb[1].mxu1 }
 0x143   :  { %12091 = vmatpush1.bf16.msra.mxu1 %v12090_v51  ;;  %v16395_v51 = vand.u32 4294901760, %v14088_v26  ;;  %v16401_v26 = vand.u32 4294901760, %v14154_v63  ;;  %v16406_v63 = vand.u32 4294901760, %v14217_v45 }
 0x144   :  { %12092 = vmatprep.subr.bf16.mxu1 %v16249_v19 }
 0x145   :  { %v12099_v53 = vpack.c.bf16 %v16395_v51, %v16394_v58  ;;  %v12108_v24 = vpack.c.bf16 %v16401_v26, %v16400_v1  ;;  %v12117_v10 = vpack.c.bf16 %v16406_v63, %v16405_v56  ;;  %v3972_v56 = vand.u32 4294901760, %v14807_v8 }
 0x147   :  { %12094 = vmatpush1.bf16.msra.mxu1 %v12093_v52  ;;  %v12120_v52 = vpack.c.bf16 %v16408_v3, %v16407_v16  ;;  %v14826_v16 = vld [vmem:[%s15906_s5 + $0x18] sm:$0xff] }
 0x148   :  { %12095 = vmatprep.subr.bf16.mxu1 %v16249_v19  ;;  %v3981_v44 = vand.u32 4294901760, %v14826_v16 }
 0x14b   :  { %12097 = vmatpush1.bf16.msra.mxu1 %v12096_v46 }
 0x14c   :  { %12098 = vmatprep.subr.bf16.mxu1 %v16249_v19 }
 0x14f   :  { %12100 = vmatpush1.bf16.msra.mxu1 %v12099_v53 }
 0x150   :  { %12101 = vmatprep.subr.bf16.mxu1 %v16249_v19 }
 0x153   :  { %12103 = vmatpush1.bf16.msra.mxu1 %v12102_v57 }
 0x154   :  { %12104 = vmatprep.subr.bf16.mxu1 %v16249_v19 }
 0x157   :  { %12106 = vmatpush1.bf16.msra.mxu1 %v12105_v21 }
 0x158   :  { %12107 = vmatprep.subr.bf16.mxu1 %v16249_v19 }
 0x15b   :  { %12109 = vmatpush1.bf16.msra.mxu1 %v12108_v24  ;;  %v5164_v24 = vsub.f32 %v5093_v41, %v14771_v42  ;;  %v14962_v41 = vld [vmem:[%s15906_s5 + $0x68] sm:$0xff] }
 0x15c   :  { %12110 = vmatprep.subr.bf16.mxu1 %v16249_v19 }
 0x15d   :  { %v5165_v43 = vand.u32 4294901760, %v5164_v24 }
 0x15f   :  { %12112 = vmatpush1.bf16.msra.mxu1 %v12111_v33  ;;  %v5166_v5 = vsub.f32 %v5164_v24, %v5165_v43 }
 0x160   :  { %12113 = vmatprep.subr.bf16.mxu1 %v16249_v19 }
 0x161   :  { %v5167_v33 = vand.u32 4294901760, %v5166_v5  ;;  %v14992_v5 = vsub.f32 %v14807_v8, %v3972_v56 }
 0x163   :  { %12115 = vmatpush1.bf16.msra.mxu1 %v12114_v32  ;;  %v14812_v32 = vld [vmem:[%s15906_s5 + $0x8] sm:$0xff] }
 0x164   :  { %12116 = vmatprep.subr.bf16.mxu1 %v16249_v19  ;;  %v3975_v63 = vand.u32 4294901760, %v14812_v32 }
 0x166   :  { %v14832_v3 = vpack.c.bf16 %v3975_v63, %v3972_v56 }
 0x167   :  { %12118 = vmatpush1.bf16.msra.mxu1 %v12117_v10  ;;  %v14821_v10 = vld [vmem:[%s15906_s5 + $0x10] sm:$0xff] }
 0x168   :  { %12119 = vmatprep.subr.bf16.mxu1 %v16249_v19  ;;  %12238 = vmatpush3.bf16.msra.mxu0 %v14832_v3 }
 0x169   :  { %12239 = vmatprep.subr.bf16.mxu0 %v16249_v19 }
 0x16b   :  { %12121 = vmatpush1.bf16.msra.mxu1 %v12120_v52  ;;  %v3978_v52 = vand.u32 4294901760, %v14821_v10 }
 0x16c   :  { %12122 = vmatprep.subr.bf16.mxu1 %v16249_v19 }
 0x16d   :  { %v14845_v13 = vpack.c.bf16 %v3981_v44, %v3978_v52  ;;  %v15016_v56 = vsub.f32 %v14821_v10, %v3978_v52 }
 0x16f   :  { %12124 = vmatpush1.bf16.msra.mxu1 %v12123_v11  ;;  %v9740_v11 = vld [vmem:[%s15905_s2 + $0x30] sm:$0xff]  ;;  %12241 = vmatpush3.bf16.msra.mxu0 %v14845_v13  ;;  %v16102_v10 = vand.u32 4294901760, %v15016_v56 }
 0x170   :  { %12125 = vmatprep.subr.bf16.mxu1 %v16249_v19  ;;  %12242 = vmatprep.subr.bf16.mxu0 %v16249_v19 }
 0x172   :  { %1931 = vmatmul.mubr.f32.vlgmr.msra.gmra.mrb[10].mxu1 %v16244_v14 }
 0x173   :  { %12127 = vmatpush1.bf16.msra.mxu1 %v16378_v22  ;;  %2027 = vmatprep.mubr.f32.mxu1 %v13369_v60 }
 0x174   :  { %12128 = vmatprep.subr.bf16.mxu1 %v16249_v19 }
 0x175   :  { %v1352_v45 = vpop.f32.mrb[2].mxu1 }
 0x176   :  { %v1354_v55 = vpop.f32.mrb[3].mxu1 }
 0x177   :  { %12130 = vmatpush1.bf16.msra.mxu1 %v16380_v0  ;;  %v14859_v55 = vld [vmem:[%s15906_s5 + $0x28] sm:$0xff] }
 0x178   :  { %12131 = vmatprep.subr.bf16.mxu1 %v16249_v19 }
 0x17b   :  { %12133 = vmatpush1.bf16.msra.mxu1 %v16381_v23 }
 0x17c   :  { %12134 = vmatprep.subr.bf16.mxu1 %v16249_v19 }
 0x17f   :  { %12136 = vmatpush1.bf16.msra.mxu1 %v16382_v37 }
 0x180   :  { %12137 = vmatprep.subr.bf16.mxu1 %v16249_v19 }
 0x183   :  { %12139 = vmatpush1.bf16.msra.mxu1 %v16383_v40  ;;  %v9738_v40 = vld [vmem:[%s15905_s2 + $0x20] sm:$0xff] }
 0x184   :  { %12140 = vmatprep.subr.bf16.mxu1 %v16249_v19 }
 0x187   :  { %12142 = vmatpush1.bf16.msra.mxu1 %v16384_v30 }
 0x188   :  { %12143 = vmatprep.subr.bf16.mxu1 %v16249_v19 }
 0x18b   :  { %12145 = vmatpush1.bf16.msra.mxu1 %v16385_v20 }
 0x18c   :  { %12146 = vmatprep.subr.bf16.mxu1 %v16249_v19 }
 0x18f   :  { %12148 = vmatpush1.bf16.msra.mxu1 %v16386_v54 }
 0x190   :  { %12149 = vmatprep.subr.bf16.mxu1 %v16249_v19 }
 0x193   :  { %12151 = vmatpush1.bf16.msra.mxu1 %v16387_v27  ;;  %v3560_v27 = vand.u32 4294901760, %v3490_v47 }
 0x194   :  { %12152 = vmatprep.subr.bf16.mxu1 %v16249_v19 }
 0x195   :  { %v3561_v22 = vsub.f32 %v3490_v47, %v3560_v27 }
 0x197   :  { %12154 = vmatpush1.bf16.msra.mxu1 %v13950_v62 }
 0x198   :  { %12155 = vmatprep.subr.bf16.mxu1 %v16249_v19 }
 0x19b   :  { %12157 = vmatpush1.bf16.msra.mxu1 %v13993_v25 }
 0x19c   :  { %12158 = vmatprep.subr.bf16.mxu1 %v16249_v19 }
 0x19f   :  { %12160 = vmatpush1.bf16.msra.mxu1 %v14032_v18 }
 0x1a0   :  { %12161 = vmatprep.subr.bf16.mxu1 %v16249_v19 }
 0x1a3   :  { %12163 = vmatpush1.bf16.msra.mxu1 %v14060_v9 }
 0x1a4   :  { %12185 = vmatprep.subr.bf16.mxu1 %v16249_v19 }
 0x1a6   :  { %2029 = vmatmul.mubr.f32.vlgmr.msra.gmra.mrb[12].mxu1 %v16244_v14 }
 0x1a7   :  { %12187 = vmatpush3.bf16.msra.mxu1 %v14360_v38  ;;  %10409 = vmatprep.mubr.msk.f32.mxu1 %vm12945_vm3, %v12946_v31 }
 0x1a8   :  { %10407 = vmatprep.subr.mxu1 %v12946_v31 }
 0x1a9   :  { %v1554_v60 = vpop.f32.mrb[4].mxu1 }
 0x1aa   :  { %v1555_v62 = vadd.f32 %v1554_v60, %v1352_v45  ;;  %v1556_v25 = vpop.f32.mrb[5].mxu1  ;;  %v14854_v45 = vld [vmem:[%s15906_s5 + $0x20] sm:$0xff] }
 0x1ab   :  { %v1245_v61 = vpop.f32.mrb[0].mxu0  ;;  %10408 = vmatpush3.msra.mxu1 %v14370_v12  ;;  %v3984_v60 = vand.u32 4294901760, %v14854_v45  ;;  %v5570_v25 = vsel %vm2057_vm2, %v9740_v11, 0 }
 0x1ac   :  { %v14647_v18 = vadd.f32 %v1245_v61, %v14552_v50  ;;  %v1247_v9 = vpop.f32.mrb[1].mxu0  ;;  %10410 = vmatmul.mubr.f32.vlgmr.msra.gmra.mrb[14].mxu1 %v14430_v49  ;;  %12188 = vmatprep.subr.bf16.mxu1 %v16249_v19  ;;  %v4616_v50 = vsel %vm2057_vm2, %v9738_v40, 0 }
 0x1ad   :  { %v14652_v14 = vadd.f32 %v1247_v9, %v14554_v48  ;;  %12190 = vmatpush3.bf16.msra.mxu1 %v14381_v59  ;;  %10418 = vmatprep.mubr.msk.f32.mxu1 %vm12945_vm3, %v12946_v31  ;;  %v14717_v48 = vand.u32 4294901760, %v4616_v50  ;;  %v14877_v9 = vld [vmem:[%s15906_s5 + $0x30] sm:$0xff] }
 0x1ae   :  { %10416 = vmatprep.subr.mxu1 %v12946_v31  ;;  %v3990_v47 = vand.u32 4294901760, %v14877_v9 }
 0x1af   :  { %v4687_v2 = vsub.f32 %v4616_v50, %v14717_v48 }
 0x1b1   :  { %10417 = vmatpush3.msra.mxu1 %v14335_v4  ;;  %v4688_v17 = vand.u32 4294901760, %v4687_v2 }
 0x1b2   :  { %12191 = vmatprep.subr.bf16.mxu1 %v16249_v19 }
 0x1b3   :  { %v4689_v46 = vsub.f32 %v4687_v2, %v4688_v17 }
 0x1b4   :  { %10419 = vmatmul.mubr.f32.vlgmr.msra.gmra.mrb[14].mxu1 %v14442_v6  ;;  %v3562_v6 = vand.u32 4294901760, %v3561_v22 }
 0x1b5   :  { %12193 = vmatpush3.bf16.msra.mxu1 %v14339_v35  ;;  %10427 = vmatprep.mubr.msk.f32.mxu1 %vm12945_vm3, %v12946_v31  ;;  %v4690_v58 = vand.u32 4294901760, %v4689_v46 }
 0x1b6   :  { %10425 = vmatprep.subr.mxu1 %v12946_v31  ;;  %v3563_v0 = vsub.f32 %v3561_v22, %v3562_v6 }
 0x1b8   :  { %v3564_v23 = vand.u32 4294901760, %v3563_v0 }
 0x1b9   :  { %10426 = vmatpush3.msra.mxu1 %v14318_v15 }
 0x1ba   :  { %12194 = vmatprep.subr.bf16.mxu1 %v16249_v19 }
 0x1bc   :  { %10428 = vmatmul.mubr.f32.vlgmr.msra.gmra.mrb[14].mxu1 %v16411_v34  ;;  %v3993_v34 = vand.u32 4294901760, %v14882_v7 }
 0x1bd   :  { %12196 = vmatpush3.bf16.msra.mxu1 %v14413_v36  ;;  %10436 = vmatprep.mubr.msk.f32.mxu1 %vm12945_vm3, %v12946_v31 }
 0x1be   :  { %10434 = vmatprep.subr.mxu1 %v12946_v31  ;;  %v14908_v0 = vpack.c.bf16 %v3993_v34, %v3990_v47 }
 0x1c1   :  { %10435 = vmatpush3.msra.mxu1 %v14349_v29 }
 0x1c2   :  { %12197 = vmatprep.subr.bf16.mxu1 %v16249_v19 }
 0x1c4   :  { %10437 = vmatmul.mubr.f32.vlgmr.msra.gmra.mrb[14].mxu1 %v14430_v49 }
 0x1c5   :  { %12199 = vmatpush3.bf16.msra.mxu1 %v14339_v35  ;;  %10445 = vmatprep.mubr.msk.f32.mxu1 %vm12945_vm3, %v12946_v31 }
 0x1c6   :  { %10443 = vmatprep.subr.mxu1 %v12946_v31 }
 0x1c9   :  { %10444 = vmatpush3.msra.mxu1 %v14318_v15 }
 0x1ca   :  { %12218 = vmatprep.subr.bf16.mxu1 %v16249_v19 }
 0x1cc   :  { %10446 = vmatmul.mubr.f32.vlgmr.msra.gmra.mrb[14].mxu1 %v14430_v49 }
 0x1cd   :  { %12220 = vmatpush3.bf16.msra.mxu1 %v14339_v35  ;;  %10508 = vmatprep.mubr.msk.f32.mxu1 %vm12945_vm3, %v12946_v31 }
 0x1ce   :  { %10506 = vmatprep.subr.mxu1 %v12946_v31 }
 0x1d1   :  { %10507 = vmatpush3.msra.mxu1 %v14318_v15 }
 0x1d2   :  { %10509 = vmatmul.mubr.f32.vlgmr.msra.gmra.mrb[16].mxu1 %v3564_v23  ;;  %12221 = vmatprep.subr.bf16.mxu1 %v16249_v19 }
 0x1d3   :  { %12223 = vmatpush3.bf16.msra.mxu1 %v14360_v38  ;;  %10517 = vmatprep.mubr.msk.f32.mxu1 %vm12945_vm3, %v12946_v31 }
 0x1d4   :  { %10515 = vmatprep.subr.mxu1 %v12946_v31 }
 0x1d7   :  { %10516 = vmatpush3.msra.mxu1 %v14370_v12 }
 0x1d8   :  { %10518 = vmatmul.mubr.f32.vlgmr.msra.gmra.mrb[18].mxu1 %v3560_v27  ;;  %12224 = vmatprep.subr.bf16.mxu1 %v16249_v19 }
 0x1d9   :  { %12226 = vmatpush3.bf16.msra.mxu1 %v14381_v59  ;;  %v14700_v49 = vpop.f32.mrb[2].mxu0  ;;  %10526 = vmatprep.mubr.msk.f32.mxu1 %vm12945_vm3, %v12946_v31 }
 0x1da   :  { %10524 = vmatprep.subr.mxu1 %v12946_v31  ;;  %v10393_v37 = vpop.f32.mrb[3].mxu0 }
 0x1dd   :  { %10525 = vmatpush3.msra.mxu1 %v14335_v4  ;;  %v1680_v30 = vpop.f32.mrb[6].mxu1 }
 0x1de   :  { %v14709_v20 = vadd.f32 %v1680_v30, %v1555_v62  ;;  %10527 = vmatmul.mubr.f32.vlgmr.msra.gmra.mrb[20].mxu1 %v3561_v22  ;;  %12227 = vmatprep.subr.bf16.mxu1 %v16249_v19  ;;  %v1682_v54 = vpop.f32.mrb[7].mxu1  ;;  %v3987_v62 = vand.u32 4294901760, %v14859_v55  ;;  %v14896_v22 = vld [vmem:[%s15906_s5 + $0x40] sm:$0xff] }
 0x1df   :  { %12229 = vmatpush3.bf16.msra.mxu1 %v14339_v35  ;;  %10535 = vmatprep.mubr.msk.f32.mxu1 %vm12945_vm3, %v12946_v31  ;;  %v3996_v23 = vand.u32 4294901760, %v14896_v22  ;;  %v14934_v54 = vld [vmem:[%s15906_s5 + $0x58] sm:$0xff] }
 0x1e0   :  { %10533 = vmatprep.subr.mxu1 %v12946_v31  ;;  %v14746_v51 = vpop.f32.mrb[4].mxu0  ;;  %v14872_v61 = vpack.c.bf16 %v3987_v62, %v3984_v60 }
 0x1e1   :  { %v10402_v53 = vpop.f32.mrb[5].mxu0 }
 0x1e2   :  { %12244 = vmatpush3.bf16.msra.mxu0 %v14872_v61 }
 0x1e3   :  { %10534 = vmatpush3.msra.mxu1 %v14318_v15  ;;  %12245 = vmatprep.subr.bf16.mxu0 %v16249_v19 }
 0x1e4   :  { %10536 = vmatmul.mubr.f32.vlgmr.msra.gmra.mrb[22].mxu1 %v3562_v6  ;;  %12230 = vmatprep.subr.bf16.mxu1 %v16249_v19  ;;  %v14901_v6 = vld [vmem:[%s15906_s5 + $0x48] sm:$0xff] }
 0x1e5   :  { %12232 = vmatpush3.bf16.msra.mxu1 %v14413_v36  ;;  %10544 = vmatprep.mubr.msk.f32.mxu1 %vm12945_vm3, %v12946_v31  ;;  %v3999_v37 = vand.u32 4294901760, %v14901_v6 }
 0x1e6   :  { %10542 = vmatprep.subr.mxu1 %v12946_v31  ;;  %12247 = vmatpush3.bf16.msra.mxu0 %v14908_v0 }
 0x1e7   :  { %v14922_v30 = vpack.c.bf16 %v3999_v37, %v3996_v23  ;;  %12248 = vmatprep.subr.bf16.mxu0 %v16249_v19 }
 0x1e9   :  { %10543 = vmatpush3.msra.mxu1 %v14349_v29 }
 0x1ea   :  { %10545 = vmatmul.mubr.f32.vlgmr.msra.gmra.mrb[24].mxu1 %v3560_v27  ;;  %12233 = vmatprep.subr.bf16.mxu1 %v16249_v19 }
 0x1eb   :  { %12235 = vmatpush3.bf16.msra.mxu1 %v14339_v35  ;;  %10553 = vmatprep.mubr.msk.f32.mxu1 %vm12945_vm3, %v12946_v31 }
 0x1ec   :  { %10551 = vmatprep.subr.mxu1 %v12946_v31  ;;  %12250 = vmatpush3.bf16.msra.mxu0 %v14922_v30 }
 0x1ed   :  { %12251 = vmatprep.subr.bf16.mxu0 %v16249_v19 }
 0x1ef   :  { %10552 = vmatpush3.msra.mxu1 %v14318_v15 }
 0x1f0   :  { %10554 = vmatmul.mubr.f32.vlgmr.msra.gmra.mrb[26].mxu1 %v3560_v27  ;;  %12380 = vmatprep.subr.bf16.mxu1 %v16249_v19  ;;  %v14890_v27 = vand.u32 4294901760, %v5570_v25 }
 0x1f1   :  { %12382 = vmatpush3.bf16.msra.mxu1 %v14339_v35  ;;  %10772 = vmatprep.mubr.msk.f32.mxu1 %vm12945_vm3, %v12946_v31 }
 0x1f2   :  { %10770 = vmatprep.subr.mxu1 %v12946_v31  ;;  %v14915_v40 = vsub.f32 %v5570_v25, %v14890_v27  ;;  %v15000_v25 = vsub.f32 %v14812_v32, %v3975_v63  ;;  %v15021_v63 = vsub.f32 %v14826_v16, %v3981_v44  ;;  %v4080_v44 = vsub.f32 %v15016_v56, %v16102_v10 }
 0x1f4   :  { %v16103_v52 = vand.u32 4294901760, %v15021_v63  ;;  %v4081_v10 = vand.u32 4294901760, %v4080_v44 }
 0x1f5   :  { %10771 = vmatpush3.msra.mxu1 %v14318_v15 }
 0x1f6   :  { %10773 = vmatmul.mubr.f32.vlgmr.msra.gmra.mrb[28].mxu1 %v4690_v58  ;;  %12383 = vmatprep.subr.bf16.mxu1 %v16249_v19  ;;  %v16104_v58 = vand.u32 4294901760, %v14915_v40 }
 0x1f7   :  { %12385 = vmatpush3.bf16.msra.mxu1 %v14360_v38  ;;  %10781 = vmatprep.mubr.msk.f32.mxu1 %vm12945_vm3, %v12946_v31 }
 0x1f8   :  { %10779 = vmatprep.subr.mxu1 %v12946_v31 }
 0x1fb   :  { %10780 = vmatpush3.msra.mxu1 %v14370_v12 }
 0x1fc   :  { %12386 = vmatprep.subr.bf16.mxu1 %v16249_v19 }
 0x1fe   :  { %10782 = vmatmul.mubr.f32.vlgmr.msra.gmra.mrb[28].mxu1 %v14717_v48 }
 0x1ff   :  { %12388 = vmatpush3.bf16.msra.mxu1 %v14381_v59  ;;  %10790 = vmatprep.mubr.msk.f32.mxu1 %vm12945_vm3, %v12946_v31 }
 0x200   :  { %10788 = vmatprep.subr.mxu1 %v12946_v31 }
 0x203   :  { %10789 = vmatpush3.msra.mxu1 %v14335_v4 }
 0x204   :  { %12389 = vmatprep.subr.bf16.mxu1 %v16249_v19 }
 0x206   :  { %10791 = vmatmul.mubr.f32.vlgmr.msra.gmra.mrb[28].mxu1 %v4687_v2  ;;  %v4005_v2 = vand.u32 4294901760, %v14934_v54 }
 0x207   :  { %12391 = vmatpush3.bf16.msra.mxu1 %v14339_v35  ;;  %10799 = vmatprep.mubr.msk.f32.mxu1 %vm12945_vm3, %v12946_v31 }
 0x208   :  { %10797 = vmatprep.subr.mxu1 %v12946_v31 }
 0x20b   :  { %10798 = vmatpush3.msra.mxu1 %v14318_v15 }
 0x20c   :  { %12392 = vmatprep.subr.bf16.mxu1 %v16249_v19 }
 0x20e   :  { %10800 = vmatmul.mubr.f32.vlgmr.msra.gmra.mrb[28].mxu1 %v4688_v17  ;;  %v14765_v57 = vpop.f32.mrb[6].mxu0 }
 0x20f   :  { %12394 = vmatpush3.bf16.msra.mxu1 %v14413_v36  ;;  %10808 = vmatprep.mubr.msk.f32.mxu1 %vm12945_vm3, %v12946_v31  ;;  %v10501_v28 = vpop.f32.mrb[7].mxu0 }
 0x210   :  { %10806 = vmatprep.subr.mxu1 %v12946_v31  ;;  %v4008_v28 = vand.u32 4294901760, %v14957_v39 }
 0x211   :  { %v1782_v21 = vpop.f32.mrb[8].mxu1 }
 0x212   :  { %v14774_v1 = vadd.f32 %v1782_v21, %v14709_v20  ;;  %v1784_v26 = vpop.f32.mrb[9].mxu1  ;;  %v14929_v20 = vld [vmem:[%s15906_s5 + $0x50] sm:$0xff]  ;;  %v4011_v21 = vand.u32 4294901760, %v14962_v41 }
 0x213   :  { %10807 = vmatpush3.msra.mxu1 %v14349_v29  ;;  %v14975_v26 = vld [vmem:[%s15906_s5 + $0x70] sm:$0xff] }
 0x214   :  { %12395 = vmatprep.subr.bf16.mxu1 %v16249_v19 }
 0x216   :  { %10809 = vmatmul.mubr.f32.vlgmr.msra.gmra.mrb[28].mxu1 %v14717_v48 }
 0x217   :  { %12397 = vmatpush3.bf16.msra.mxu1 %v14339_v35  ;;  %10817 = vmatprep.mubr.msk.f32.mxu1 %vm12945_vm3, %v12946_v31 }
 0x218   :  { %10815 = vmatprep.subr.mxu1 %v12946_v31 }
 0x21b   :  { %10816 = vmatpush3.msra.mxu1 %v14318_v15 }
 0x21c   :  { %12398 = vmatprep.subr.bf16.mxu1 %v16249_v19 }
 0x21e   :  { %10818 = vmatmul.mubr.f32.vlgmr.msra.gmra.mrb[28].mxu1 %v14717_v48  ;;  %v4002_v48 = vand.u32 4294901760, %v14929_v20 }
 0x21f   :  { %12400 = vmatpush3.bf16.msra.mxu1 %v14339_v35  ;;  %10826 = vmatprep.mubr.msk.f32.mxu1 %vm12945_vm3, %v12946_v31 }
 0x220   :  { %10824 = vmatprep.subr.mxu1 %v12946_v31  ;;  %v14952_v53 = vpack.c.bf16 %v4005_v2, %v4002_v48 }
 0x222   :  { %12253 = vmatpush3.bf16.msra.mxu0 %v14952_v53 }
 0x223   :  { %10825 = vmatpush3.msra.mxu1 %v14318_v15  ;;  %12254 = vmatprep.subr.bf16.mxu0 %v16249_v19 }
 0x224   :  { %10827 = vmatmul.mubr.f32.vlgmr.msra.gmra.mrb[30].mxu1 %v5167_v33  ;;  %12401 = vmatprep.subr.bf16.mxu1 %v16249_v19  ;;  %v4014_v33 = vand.u32 4294901760, %v14975_v26 }
 0x225   :  { %12403 = vmatpush3.bf16.msra.mxu1 %v14360_v38  ;;  %10835 = vmatprep.mubr.msk.f32.mxu1 %vm12945_vm3, %v12946_v31 }
 0x226   :  { %10833 = vmatprep.subr.mxu1 %v12946_v31 }
 0x229   :  { %10834 = vmatpush3.msra.mxu1 %v14370_v12 }
 0x22a   :  { %12404 = vmatprep.subr.bf16.mxu1 %v16249_v19 }
 0x22c   :  { %10836 = vmatmul.mubr.f32.vlgmr.msra.gmra.mrb[30].mxu1 %v14771_v42 }
 0x22d   :  { %12406 = vmatpush3.bf16.msra.mxu1 %v14381_v59  ;;  %10844 = vmatprep.mubr.msk.f32.mxu1 %vm12945_vm3, %v12946_v31 }
 0x22e   :  { %10842 = vmatprep.subr.mxu1 %v12946_v31 }
 0x231   :  { %10843 = vmatpush3.msra.mxu1 %v14335_v4 }
 0x232   :  { %12407 = vmatprep.subr.bf16.mxu1 %v16249_v19 }
 0x234   :  { %10845 = vmatmul.mubr.f32.vlgmr.msra.gmra.mrb[30].mxu1 %v5164_v24  ;;  %v14980_v24 = vld [vmem:[%s15906_s5 + $0x78] sm:$0xff] }
 0x235   :  { %12409 = vmatpush3.bf16.msra.mxu1 %v14339_v35  ;;  %10853 = vmatprep.mubr.msk.f32.mxu1 %vm12945_vm3, %v12946_v31  ;;  %v4017_v11 = vand.u32 4294901760, %v14980_v24 }
 0x236   :  { %10851 = vmatprep.subr.mxu1 %v12946_v31 }
 0x239   :  { %10852 = vmatpush3.msra.mxu1 %v14318_v15 }
 0x23a   :  { %12410 = vmatprep.subr.bf16.mxu1 %v16249_v19 }
 0x23c   :  { %10854 = vmatmul.mubr.f32.vlgmr.msra.gmra.mrb[30].mxu1 %v5165_v43  ;;  %v14987_v43 = vpack.c.bf16 %v4011_v21, %v4008_v28 }
 0x23d   :  { %12412 = vmatpush3.bf16.msra.mxu1 %v14413_v36  ;;  %10862 = vmatprep.mubr.msk.f32.mxu1 %vm12945_vm3, %v12946_v31 }
 0x23e   :  { %10860 = vmatprep.subr.mxu1 %v12946_v31  ;;  %12256 = vmatpush3.bf16.msra.mxu0 %v14987_v43 }
 0x23f   :  { %12257 = vmatprep.subr.bf16.mxu0 %v16249_v19 }
 0x241   :  { %10861 = vmatpush3.msra.mxu1 %v14349_v29 }
 0x242   :  { %12413 = vmatprep.subr.bf16.mxu1 %v16249_v19 }
 0x244   :  { %10863 = vmatmul.mubr.f32.vlgmr.msra.gmra.mrb[30].mxu1 %v14771_v42 }
 0x245   :  { %12415 = vmatpush3.bf16.msra.mxu1 %v14339_v35  ;;  %v1932_v50 = vpop.f32.mrb[10].mxu1  ;;  %10871 = vmatprep.mubr.msk.f32.mxu1 %vm12945_vm3, %v12946_v31 }
 0x246   :  { %v14942_v17 = vadd.f32 %v1932_v50, %v14774_v1  ;;  %v1934_v46 = vpop.f32.mrb[11].mxu1  ;;  %10869 = vmatprep.subr.mxu1 %v12946_v31  ;;  %v5643_v1 = vsub.f32 %v14915_v40, %v16104_v58  ;;  %v16100_v50 = vand.u32 4294901760, %v14992_v5 }
 0x247   :  { %v15027_v46 = vpack.c.bf16 %v4017_v11, %v4014_v33 }
 0x248   :  { %v5644_v8 = vand.u32 4294901760, %v5643_v1  ;;  %v4066_v32 = vsub.f32 %v14992_v5, %v16100_v50 }
 0x249   :  { %10870 = vmatpush3.msra.mxu1 %v14318_v15  ;;  %12259 = vmatpush3.bf16.msra.mxu0 %v15027_v46 }
 0x24a   :  { %12416 = vmatprep.subr.bf16.mxu1 %v16249_v19  ;;  %v4067_v50 = vand.u32 4294901760, %v4066_v32  ;;  %v4087_v32 = vsub.f32 %v15021_v63, %v16103_v52  ;;  %12260 = vmatprep.subr.bf16.mxu0 %v16249_v19 }
 0x24c   :  { %10872 = vmatmul.mubr.f32.vlgmr.msra.gmra.mrb[30].mxu1 %v14771_v42  ;;  %v16101_v42 = vand.u32 4294901760, %v15000_v25  ;;  %v4088_v52 = vand.u32 4294901760, %v4087_v32 }
 0x24d   :  { %12418 = vmatpush3.bf16.msra.mxu1 %v14339_v35  ;;  %10880 = vmatprep.mubr.msk.f32.mxu1 %vm12945_vm3, %v12946_v31 }
 0x24e   :  { %10878 = vmatprep.subr.mxu1 %v12946_v31  ;;  %v4073_v1 = vsub.f32 %v15000_v25, %v16101_v42  ;;  %v15057_v42 = vsub.f32 %v14859_v55, %v3987_v62  ;;  %v15071_v55 = vsub.f32 %v14877_v9, %v3990_v47  ;;  %v15076_v62 = vsub.f32 %v14882_v7, %v3993_v34 }
 0x24f   :  { %v15097_v34 = vsub.f32 %v14896_v22, %v3996_v23  ;;  %v15118_v23 = vsub.f32 %v14929_v20, %v4002_v48 }
 0x250   :  { %v4074_v16 = vand.u32 4294901760, %v4073_v1  ;;  %v16107_v44 = vand.u32 4294901760, %v15076_v62 }
 0x251   :  { %10879 = vmatpush3.msra.mxu1 %v14318_v15 }
 0x252   :  { %10881 = vmatmul.mubr.f32.vlgmr.msra.gmra.mrb[32].mxu1 %v5644_v8  ;;  %12419 = vmatprep.subr.bf16.mxu1 %v16249_v19  ;;  %v15048_v8 = vsub.f32 %v14854_v45, %v3984_v60  ;;  %v15052_v1 = vpack.c.bf16 %v4074_v16, %v4067_v50  ;;  %v16106_v45 = vand.u32 4294901760, %v15057_v42  ;;  %v15063_v60 = vpack.c.bf16 %v4088_v52, %v4081_v10 }
 0x253   :  { %12421 = vmatpush3.bf16.msra.mxu1 %v14360_v38  ;;  %10889 = vmatprep.mubr.msk.f32.mxu1 %vm12945_vm3, %v12946_v31  ;;  %v16105_v16 = vand.u32 4294901760, %v15071_v55  ;;  %v4115_v47 = vsub.f32 %v15076_v62, %v16107_v44 }
 0x254   :  { %10887 = vmatprep.subr.mxu1 %v12946_v31  ;;  %v16108_v58 = vand.u32 4294901760, %v15048_v8  ;;  %v4101_v10 = vsub.f32 %v15057_v42, %v16106_v45  ;;  %v16116_v45 = vand.u32 4294901760, %v15097_v34 }
 0x255   :  { %v4108_v7 = vsub.f32 %v15071_v55, %v16105_v16  ;;  %v4116_v16 = vand.u32 4294901760, %v4115_v47  ;;  %v15152_v47 = vsub.f32 %v14962_v41, %v4011_v21  ;;  %v15168_v41 = vsub.f32 %v14975_v26, %v4014_v33 }
 0x256   :  { %v4094_v50 = vsub.f32 %v15048_v8, %v16108_v58  ;;  %v4102_v9 = vand.u32 4294901760, %v4101_v10  ;;  %v4122_v22 = vsub.f32 %v15097_v34, %v16116_v45  ;;  %v15173_v21 = vsub.f32 %v14980_v24, %v4017_v11 }
 0x257   :  { %10888 = vmatpush3.msra.mxu1 %v14370_v12  ;;  %v4109_v10 = vand.u32 4294901760, %v4108_v7  ;;  %v16412_v26 = vand.u32 4294901760, %v14915_v40 }
 0x258   :  { %12422 = vmatprep.subr.bf16.mxu1 %v16249_v19  ;;  %v4095_v52 = vand.u32 4294901760, %v4094_v50  ;;  %v15105_v50 = vsub.f32 %v14901_v6, %v3999_v37  ;;  %v15123_v6 = vsub.f32 %v14934_v54, %v4005_v2  ;;  %v15144_v2 = vsub.f32 %v14957_v39, %v4008_v28 }
 0x259   :  { %v15110_v58 = vpack.c.bf16 %v4116_v16, %v4109_v10  ;;  %v16114_v16 = vand.u32 4294901760, %v15118_v23  ;;  %v16112_v39 = vand.u32 4294901760, %v15152_v47 }
 0x25a   :  { %10890 = vmatmul.mubr.f32.vlgmr.msra.gmra.mrb[32].mxu1 %v14890_v27  ;;  %v15100_v32 = vpack.c.bf16 %v4102_v9, %v4095_v52  ;;  %v16115_v44 = vand.u32 4294901760, %v15105_v50  ;;  %v4123_v52 = vand.u32 4294901760, %v4122_v22  ;;  %v16109_v9 = vand.u32 4294901760, %v15123_v6 }
 0x25b   :  { %12424 = vmatpush3.bf16.msra.mxu1 %v14381_v59  ;;  %10898 = vmatprep.mubr.msk.f32.mxu1 %vm12945_vm3, %v12946_v31  ;;  %v4136_v54 = vsub.f32 %v15118_v23, %v16114_v16 }
 0x25c   :  { %10896 = vmatprep.subr.mxu1 %v12946_v31  ;;  %v4129_v37 = vsub.f32 %v15105_v50, %v16115_v44  ;;  %v4143_v48 = vsub.f32 %v15123_v6, %v16109_v9  ;;  %v9741_v9 = vld [vmem:[%s15905_s2 + $0x38] sm:$0xff] }
 0x25d   :  { %v4137_v10 = vand.u32 4294901760, %v4136_v54  ;;  %v6047_v54 = vsel %vm2057_vm2, %v9741_v9, 0 }
 0x25e   :  { %v4130_v20 = vand.u32 4294901760, %v4129_v37  ;;  %v4144_v22 = vand.u32 4294901760, %v4143_v48  ;;  %v16113_v37 = vand.u32 4294901760, %v15144_v2  ;;  %v15194_v9 = vand.u32 4294901760, %v6047_v54 }
 0x25f   :  { %10897 = vmatpush3.msra.mxu1 %v14335_v4 }
 0x260   :  { %12425 = vmatprep.subr.bf16.mxu1 %v16249_v19  ;;  %v15147_v7 = vpack.c.bf16 %v4130_v20, %v4123_v52  ;;  %v15160_v28 = vpack.c.bf16 %v4144_v22, %v4137_v10  ;;  %v4150_v52 = vsub.f32 %v15144_v2, %v16113_v37  ;;  %v4157_v20 = vsub.f32 %v15152_v47, %v16112_v39 }
 0x261   :  { %v16110_v10 = vand.u32 4294901760, %v15168_v41  ;;  %v16111_v22 = vand.u32 4294901760, %v15173_v21  ;;  %v15230_v37 = vpack.c.bf16 %v15076_v62, %v15071_v55 }
 0x262   :  { %10899 = vmatmul.mubr.f32.vlgmr.msra.gmra.mrb[32].mxu1 %v14915_v40  ;;  %v4151_v48 = vand.u32 4294901760, %v4150_v52  ;;  %v4158_v33 = vand.u32 4294901760, %v4157_v20 }
 0x263   :  { %12427 = vmatpush3.bf16.msra.mxu1 %v14339_v35  ;;  %10907 = vmatprep.mubr.msk.f32.mxu1 %vm12945_vm3, %v12946_v31  ;;  %v4164_v24 = vsub.f32 %v15168_v41, %v16110_v10  ;;  %v4171_v11 = vsub.f32 %v15173_v21, %v16111_v22  ;;  %v6118_v10 = vsub.f32 %v6047_v54, %v15194_v9 }
 0x264   :  { %10905 = vmatprep.subr.mxu1 %v12946_v31  ;;  %v15196_v40 = vpack.c.bf16 %v4158_v33, %v4151_v48  ;;  %v15206_v22 = vpack.c.bf16 %v15000_v25, %v14992_v5  ;;  %v15214_v33 = vpack.c.bf16 %v15021_v63, %v15016_v56 }
 0x265   :  { %v4165_v52 = vand.u32 4294901760, %v4164_v24  ;;  %v4172_v20 = vand.u32 4294901760, %v4171_v11  ;;  %v6119_v48 = vand.u32 4294901760, %v6118_v10  ;;  %v15220_v24 = vpack.c.bf16 %v15057_v42, %v15048_v8 }
 0x267   :  { %10906 = vmatpush3.msra.mxu1 %v14318_v15  ;;  %v6120_v54 = vsub.f32 %v6118_v10, %v6119_v48 }
 0x268   :  { %12428 = vmatprep.subr.bf16.mxu1 %v16249_v19 }
 0x269   :  { %v6121_v39 = vand.u32 4294901760, %v6120_v54  ;;  %v15261_v54 = vpack.c.bf16 %v15173_v21, %v15168_v41 }
 0x26a   :  { %10908 = vmatmul.mubr.f32.vlgmr.msra.gmra.mrb[32].mxu1 %v16412_v26  ;;  %v15199_v26 = vpack.c.bf16 %v4172_v20, %v4165_v52 }
 0x26b   :  { %12430 = vmatpush3.bf16.msra.mxu1 %v14413_v36  ;;  %10916 = vmatprep.mubr.msk.f32.mxu1 %vm12945_vm3, %v12946_v31 }
 0x26c   :  { %10914 = vmatprep.subr.mxu1 %v12946_v31 }
 0x26f   :  { %10915 = vmatpush3.msra.mxu1 %v14349_v29 }
 0x270   :  { %12431 = vmatprep.subr.bf16.mxu1 %v16249_v19 }
 0x272   :  { %10917 = vmatmul.mubr.f32.vlgmr.msra.gmra.mrb[32].mxu1 %v14890_v27 }
 0x273   :  { %12433 = vmatpush3.bf16.msra.mxu1 %v14339_v35  ;;  %10925 = vmatprep.mubr.msk.f32.mxu1 %vm12945_vm3, %v12946_v31 }
 0x274   :  { %10923 = vmatprep.subr.mxu1 %v12946_v31 }
 0x277   :  { %10924 = vmatpush3.msra.mxu1 %v14318_v15 }
 0x278   :  { %12434 = vmatprep.subr.bf16.mxu1 %v16249_v19 }
 0x279   :  { %v2030_v11 = vpop.f32.mrb[12].mxu1 }
 0x27a   :  { %10926 = vmatmul.mubr.f32.vlgmr.msra.gmra.mrb[32].mxu1 %v14890_v27  ;;  %v2031_v52 = vadd.f32 %v2030_v11, %v14942_v17  ;;  %v2032_v20 = vpop.f32.mrb[13].mxu1  ;;  %v15236_v27 = vpack.c.bf16 %v15105_v50, %v15097_v34  ;;  %v15244_v17 = vpack.c.bf16 %v15123_v6, %v15118_v23  ;;  %v27_v11 = vld [vmem:[%s15907_s1 + $0x10] sm:$0xff] }
 0x27b   :  { %12436 = vmatpush3.bf16.msra.mxu1 %v14339_v35  ;;  %10934 = vmatprep.mubr.msk.f32.mxu1 %vm12945_vm3, %v12946_v31 }
 0x27c   :  { %10932 = vmatprep.subr.mxu1 %v12946_v31  ;;  %v15301_v45 = vadd.f32 %v2031_v52, %v27_v11 }
 0x27f   :  { %10933 = vmatpush3.msra.mxu1 %v14318_v15 }
 0x280   :  { %12437 = vmatprep.subr.bf16.mxu1 %v16249_v19  ;;  %10935 = vmatmul.mubr.f32.vlgmr.msra.gmra.mrb[34].mxu1 %v6121_v39  ;;  %v15255_v39 = vpack.c.bf16 %v15152_v47, %v15144_v2 }
 0x281   :  { %12439 = vmatpush3.bf16.msra.mxu1 %v14360_v38  ;;  %10943 = vmatprep.mubr.msk.f32.mxu1 %vm12945_vm3, %v12946_v31 }
 0x282   :  { %10941 = vmatprep.subr.mxu1 %v12946_v31 }
 0x285   :  { %10942 = vmatpush3.msra.mxu1 %v14370_v12 }
 0x286   :  { %12440 = vmatprep.subr.bf16.mxu1 %v16249_v19  ;;  %10944 = vmatmul.mubr.f32.vlgmr.msra.gmra.mrb[36].mxu1 %v15194_v9 }
 0x287   :  { %12442 = vmatpush3.bf16.msra.mxu1 %v14381_v59  ;;  %10952 = vmatprep.mubr.msk.f32.mxu1 %vm12945_vm3, %v12946_v31 }
 0x288   :  { %10950 = vmatprep.subr.mxu1 %v12946_v31 }
 0x28b   :  { %10951 = vmatpush3.msra.mxu1 %v14335_v4 }
 0x28c   :  { %12443 = vmatprep.subr.bf16.mxu1 %v16249_v19  ;;  %10953 = vmatmul.mubr.f32.vlgmr.msra.gmra.mrb[38].mxu1 %v6118_v10  ;;  %v25_v10 = vld [vmem:[%s15907_s1] sm:$0xff] }
 0x28d   :  { %12445 = vmatpush3.bf16.msra.mxu1 %v14339_v35  ;;  %10961 = vmatprep.mubr.msk.f32.mxu1 %vm12945_vm3, %v12946_v31  ;;  %v15296_v16 = vadd.f32 %v14647_v18, %v25_v10  ;;  %v3967_v18 = vmul.f32 %v14765_v57, %v15301_v45 }
 0x28e   :  { %10959 = vmatprep.subr.mxu1 %v12946_v31 }
 0x291   :  { %10960 = vmatpush3.msra.mxu1 %v14318_v15 }
 0x292   :  { %12446 = vmatprep.subr.bf16.mxu1 %v16249_v19  ;;  %10962 = vmatmul.mubr.f32.vlgmr.msra.gmra.mrb[40].mxu1 %v6119_v48  ;;  %v26_v48 = vld [vmem:[%s15907_s1 + $0x8] sm:$0xff] }
 0x293   :  { %12448 = vmatpush3.bf16.msra.mxu1 %v14413_v36  ;;  %10970 = vmatprep.mubr.msk.f32.mxu1 %vm12945_vm3, %v12946_v31  ;;  %v15299_v44 = vadd.f32 %v14652_v14, %v26_v48 }
 0x294   :  { %10968 = vmatprep.subr.mxu1 %v12946_v31 }
 0x297   :  { %10969 = vmatpush3.msra.mxu1 %v14349_v29 }
 0x298   :  { %12449 = vmatprep.subr.bf16.mxu1 %v16249_v19  ;;  %10971 = vmatmul.mubr.f32.vlgmr.msra.gmra.mrb[42].mxu1 %v15194_v9 }
 0x299   :  { %12451 = vmatpush3.bf16.msra.mxu1 %v14339_v35  ;;  %10979 = vmatprep.mubr.msk.f32.mxu1 %vm12945_vm3, %v12946_v31 }
 0x29a   :  { %10977 = vmatprep.subr.mxu1 %v12946_v31 }
 0x29d   :  { %10978 = vmatpush3.msra.mxu1 %v14318_v15 }
 0x29e   :  { %10980 = vmatmul.mubr.f32.vlgmr.msra.gmra.mrb[44].mxu1 %v15194_v9  ;;  %12452 = vmatprep.subr.bf16.mxu1 %v16249_v19  ;;  %v3964_v9 = vmul.f32 %v14700_v49, %v15296_v16 }
 0x29f   :  { %v3006_v20 = vpop.f32.mrb[14].mxu1  ;;  %12454 = vmatpush3.bf16.msra.mxu1 %v14832_v3  ;;  %11014 = vmatprep.mubr.msk.f32.mxu1 %vm12945_vm3, %v12946_v31 }
 0x2a0   :  { %v12814_v29 = vadd.f32 %v3006_v20, %v14746_v51  ;;  %v10447_v36 = vpop.f32.mrb[15].mxu1  ;;  %12455 = vmatprep.subr.bf16.mxu1 %v16249_v19 }
 0x2a2   :  { %v3965_v4 = vmul.f32 %v12814_v29, %v15299_v44 }
 0x2a3   :  { %12457 = vmatpush3.bf16.msra.mxu1 %v14845_v13 }
 0x2a4   :  { %v3966_v10 = vadd.f32 %v3965_v4, %v3964_v9  ;;  %12458 = vmatprep.subr.bf16.mxu1 %v16249_v19 }
 0x2a5   :  { %v3566_v14 = vpop.f32.mrb[16].mxu1 }
 0x2a6   :  { %v10510_v52 = vpop.f32.mrb[17].mxu1  ;;  %v3968_v48 = vadd.f32 %v3967_v18, %v3966_v10 }
 0x2a7   :  { %12460 = vmatpush3.bf16.msra.mxu1 %v14872_v61 }
 0x2a8   :  { %12461 = vmatprep.subr.bf16.mxu1 %v16249_v19 }
 0x2ab   :  { %v3652_v36 = vpop.f32.mrb[18].mxu1  ;;  %12463 = vmatpush3.bf16.msra.mxu1 %v14908_v0 }
 0x2ac   :  { %v3653_v49 = vadd.f32 %v3652_v36, %v3566_v14  ;;  %v10519_v29 = vpop.f32.mrb[19].mxu1  ;;  %12464 = vmatprep.subr.bf16.mxu1 %v16249_v19 }
 0x2af   :  { %12466 = vmatpush3.bf16.msra.mxu1 %v14922_v30 }
 0x2b0   :  { %12467 = vmatprep.subr.bf16.mxu1 %v16249_v19 }
 0x2b1   :  { %v3730_v4 = vpop.f32.mrb[20].mxu1 }
 0x2b2   :  { %v3731_v51 = vadd.f32 %v3730_v4, %v3653_v49  ;;  %v10528_v57 = vpop.f32.mrb[21].mxu1 }
 0x2b3   :  { %12469 = vmatpush3.bf16.msra.mxu1 %v14952_v53 }
 0x2b4   :  { %12470 = vmatprep.subr.bf16.mxu1 %v16249_v19 }
 0x2b7   :  { %v3806_v11 = vpop.f32.mrb[22].mxu1  ;;  %12472 = vmatpush3.bf16.msra.mxu1 %v14987_v43 }
 0x2b8   :  { %v3807_v20 = vadd.f32 %v3806_v11, %v3731_v51  ;;  %v10537_v9 = vpop.f32.mrb[23].mxu1  ;;  %12473 = vmatprep.subr.bf16.mxu1 %v16249_v19 }
 0x2bb   :  { %12475 = vmatpush3.bf16.msra.mxu1 %v15027_v46 }
 0x2bc   :  { %12476 = vmatprep.subr.bf16.mxu1 %v16249_v19 }
 0x2bd   :  { %v3886_v18 = vpop.f32.mrb[24].mxu1 }
 0x2be   :  { %v3887_v10 = vadd.f32 %v3886_v18, %v3807_v20  ;;  %v10546_v14 = vpop.f32.mrb[25].mxu1 }
 0x2c3   :  { %v3960_v52 = vpop.f32.mrb[26].mxu1 }
 0x2c4   :  { %v3961_v36 = vadd.f32 %v3960_v52, %v3887_v10  ;;  %v10555_v49 = vpop.f32.mrb[27].mxu1 }
 0x2c5   :  { %v16413_v49 = vand.u32 4294901760, %v14992_v5  ;;  %v16417_v5 = vand.u32 4294901760, %v15048_v8  ;;  %v16421_v8 = vand.u32 4294901760, %v15097_v34  ;;  %v16425_v34 = vand.u32 4294901760, %v15144_v2 }
 0x2c6   :  { %v3969_v29 = vadd.f32 %v3968_v48, %v3961_v36 }
 0x2c8   :  { %3970 = vst [vmem:[%s15908_s6] sm:$0xff] %v3969_v29  ;;  %v15327_v4 = vand.u32 4294901760, %v3969_v29 }
 0x2ca   :  { %v15330_v51 = vsub.f32 %v3969_v29, %v15327_v4  ;;  %v16414_v29 = vand.u32 4294901760, %v15000_v25  ;;  %v16418_v25 = vand.u32 4294901760, %v15057_v42  ;;  %v16422_v42 = vand.u32 4294901760, %v15105_v50 }
 0x2cb   :  { %v16426_v50 = vand.u32 4294901760, %v15152_v47 }
 0x2cc   :  { %v4054_v57 = vand.u32 4294901760, %v15330_v51 }
 0x2ce   :  { %v4055_v11 = vsub.f32 %v15330_v51, %v4054_v57 }
 0x2d0   :  { %v4056_v20 = vand.u32 4294901760, %v4055_v11  ;;  %v15397_v11 = vpack.c.bf16 %v16414_v29, %v16413_v49 }
 0x2d2   :  { %10589 = vmatmul.mubr.f32.vlgmr.msra.gmra.mrb[8].mxu0 %v4056_v20  ;;  %v16415_v20 = vand.u32 4294901760, %v15016_v56  ;;  %v16419_v56 = vand.u32 4294901760, %v15071_v55  ;;  %v16423_v55 = vand.u32 4294901760, %v15118_v23  ;;  %v16427_v23 = vand.u32 4294901760, %v15168_v41 }
 0x2d3   :  { %12262 = vmatpush3.bf16.msra.mxu0 %v15052_v1  ;;  %10623 = vmatprep.mubr.msk.f32.mxu0 %vm12945_vm3, %v12946_v31 }
 0x2d4   :  { %12263 = vmatprep.subr.bf16.mxu0 %v16249_v19 }
 0x2d7   :  { %12265 = vmatpush3.bf16.msra.mxu0 %v15063_v60 }
 0x2d8   :  { %12266 = vmatprep.subr.bf16.mxu0 %v16249_v19 }
 0x2db   :  { %12268 = vmatpush3.bf16.msra.mxu0 %v15100_v32 }
 0x2dc   :  { %12269 = vmatprep.subr.bf16.mxu0 %v16249_v19 }
 0x2df   :  { %12271 = vmatpush3.bf16.msra.mxu0 %v15110_v58 }
 0x2e0   :  { %12272 = vmatprep.subr.bf16.mxu0 %v16249_v19 }
 0x2e3   :  { %12274 = vmatpush3.bf16.msra.mxu0 %v15147_v7 }
 0x2e4   :  { %12275 = vmatprep.subr.bf16.mxu0 %v16249_v19 }
 0x2e7   :  { %12277 = vmatpush3.bf16.msra.mxu0 %v15160_v28 }
 0x2e8   :  { %12278 = vmatprep.subr.bf16.mxu0 %v16249_v19 }
 0x2eb   :  { %12280 = vmatpush3.bf16.msra.mxu0 %v15196_v40 }
 0x2ec   :  { %12281 = vmatprep.subr.bf16.mxu0 %v16249_v19 }
 0x2ef   :  { %12283 = vmatpush3.bf16.msra.mxu0 %v15199_v26 }
 0x2f0   :  { %12284 = vmatprep.subr.bf16.mxu0 %v16249_v19 }
 0x2f1   :  { %v5086_v48 = vpop.f32.mrb[28].mxu1 }
 0x2f2   :  { %10624 = vmatmul.mubr.f32.vlgmr.msra.gmra.mrb[8].mxu0 %v15327_v4  ;;  %v10819_v9 = vpop.f32.mrb[29].mxu1  ;;  %v6521_v10 = vmul.f32 %v5086_v48, %v15296_v16  ;;  %v16416_v48 = vand.u32 4294901760, %v15021_v63  ;;  %v16420_v63 = vand.u32 4294901760, %v15076_v62  ;;  %v16424_v62 = vand.u32 4294901760, %v15123_v6 }
 0x2f3   :  { %12286 = vmatpush3.bf16.msra.mxu0 %v15206_v22  ;;  %10658 = vmatprep.mubr.msk.f32.mxu0 %vm12945_vm3, %v12946_v31  ;;  %v16428_v6 = vand.u32 4294901760, %v15173_v21 }
 0x2f4   :  { %12287 = vmatprep.subr.bf16.mxu0 %v16249_v19  ;;  %v15407_v9 = vpack.c.bf16 %v16416_v48, %v16415_v20 }
 0x2f7   :  { %12289 = vmatpush3.bf16.msra.mxu0 %v15214_v33 }
 0x2f8   :  { %12290 = vmatprep.subr.bf16.mxu0 %v16249_v19 }
 0x2fb   :  { %12292 = vmatpush3.bf16.msra.mxu0 %v15220_v24 }
 0x2fc   :  { %12293 = vmatprep.subr.bf16.mxu0 %v16249_v19 }
 0x2ff   :  { %12295 = vmatpush3.bf16.msra.mxu0 %v15230_v37 }
 0x300   :  { %12296 = vmatprep.subr.bf16.mxu0 %v16249_v19 }
 0x303   :  { %12298 = vmatpush3.bf16.msra.mxu0 %v15236_v27 }
 0x304   :  { %12299 = vmatprep.subr.bf16.mxu0 %v16249_v19 }
 0x307   :  { %12301 = vmatpush3.bf16.msra.mxu0 %v15244_v17 }
 0x308   :  { %12302 = vmatprep.subr.bf16.mxu0 %v16249_v19 }
 0x30b   :  { %12304 = vmatpush3.bf16.msra.mxu0 %v15255_v39 }
 0x30c   :  { %12305 = vmatprep.subr.bf16.mxu0 %v16249_v19 }
 0x30f   :  { %12307 = vmatpush3.bf16.msra.mxu0 %v15261_v54 }
 0x310   :  { %12308 = vmatprep.subr.bf16.mxu0 %v16249_v19 }
 0x312   :  { %10659 = vmatmul.mubr.f32.vlgmr.msra.gmra.mrb[8].mxu0 %v15330_v51  ;;  %v15417_v51 = vpack.c.bf16 %v16418_v25, %v16417_v5  ;;  %v9742_v5 = vld [vmem:[%s15905_s2 + $0x40] sm:$0xff] }
 0x313   :  { %12310 = vmatpush3.bf16.msra.mxu0 %v14832_v3  ;;  %10693 = vmatprep.mubr.msk.f32.mxu0 %vm12945_vm3, %v12946_v31 }
 0x314   :  { %12311 = vmatprep.subr.bf16.mxu0 %v16249_v19 }
 0x317   :  { %12313 = vmatpush3.bf16.msra.mxu0 %v14845_v13 }
 0x318   :  { %12314 = vmatprep.subr.bf16.mxu0 %v16249_v19 }
 0x31b   :  { %12316 = vmatpush3.bf16.msra.mxu0 %v14872_v61 }
 0x31c   :  { %12317 = vmatprep.subr.bf16.mxu0 %v16249_v19 }
 0x31f   :  { %12319 = vmatpush3.bf16.msra.mxu0 %v14908_v0  ;;  %v5563_v18 = vpop.f32.mrb[30].mxu1 }
 0x320   :  { %v6522_v14 = vmul.f32 %v5563_v18, %v15299_v44  ;;  %12320 = vmatprep.subr.bf16.mxu0 %v16249_v19  ;;  %v10873_v52 = vpop.f32.mrb[31].mxu1  ;;  %v15433_v18 = vpack.c.bf16 %v16422_v42, %v16421_v8  ;;  %v7173_v8 = vsel %vm2057_vm2, %v9742_v5, 0 }
 0x321   :  { %v15457_v52 = vpack.c.bf16 %v16428_v6, %v16427_v23  ;;  %v15480_v42 = vand.u32 4294901760, %v7173_v8 }
 0x322   :  { %v6523_v36 = vadd.f32 %v6522_v14, %v6521_v10  ;;  %v15441_v10 = vpack.c.bf16 %v16424_v62, %v16423_v55  ;;  %v15449_v14 = vpack.c.bf16 %v16426_v50, %v16425_v34 }
 0x323   :  { %12322 = vmatpush3.bf16.msra.mxu0 %v14922_v30  ;;  %v7244_v50 = vsub.f32 %v7173_v8, %v15480_v42  ;;  %v9743_v8 = vld [vmem:[%s15905_s2 + $0x48] sm:$0xff] }
 0x324   :  { %12323 = vmatprep.subr.bf16.mxu0 %v16249_v19 }
 0x327   :  { %12325 = vmatpush3.bf16.msra.mxu0 %v14952_v53 }
 0x328   :  { %12326 = vmatprep.subr.bf16.mxu0 %v16249_v19 }
 0x32b   :  { %12328 = vmatpush3.bf16.msra.mxu0 %v14987_v43 }
 0x32c   :  { %12329 = vmatprep.subr.bf16.mxu0 %v16249_v19 }
 0x32f   :  { %12331 = vmatpush3.bf16.msra.mxu0 %v15027_v46 }
 0x330   :  { %12332 = vmatprep.subr.bf16.mxu0 %v16249_v19 }
 0x332   :  { %10694 = vmatmul.mubr.f32.vlgmr.msra.gmra.mrb[8].mxu0 %v4054_v57  ;;  %v15425_v57 = vpack.c.bf16 %v16420_v63, %v16419_v56 }
 0x333   :  { %12334 = vmatpush3.bf16.msra.mxu0 %v15397_v11  ;;  %10728 = vmatprep.mubr.msk.f32.mxu0 %vm12945_vm3, %v12946_v31 }
 0x334   :  { %12335 = vmatprep.subr.bf16.mxu0 %v16249_v19 }
 0x337   :  { %12337 = vmatpush3.bf16.msra.mxu0 %v15407_v9 }
 0x338   :  { %12338 = vmatprep.subr.bf16.mxu0 %v16249_v19 }
 0x33b   :  { %12340 = vmatpush3.bf16.msra.mxu0 %v15417_v51 }
 0x33c   :  { %12341 = vmatprep.subr.bf16.mxu0 %v16249_v19 }
 0x33f   :  { %12343 = vmatpush3.bf16.msra.mxu0 %v15425_v57 }
 0x340   :  { %12344 = vmatprep.subr.bf16.mxu0 %v16249_v19 }
 0x343   :  { %12346 = vmatpush3.bf16.msra.mxu0 %v15433_v18 }
 0x344   :  { %12347 = vmatprep.subr.bf16.mxu0 %v16249_v19 }
 0x347   :  { %12349 = vmatpush3.bf16.msra.mxu0 %v15441_v10 }
 0x348   :  { %12350 = vmatprep.subr.bf16.mxu0 %v16249_v19 }
 0x34b   :  { %12352 = vmatpush3.bf16.msra.mxu0 %v15449_v14 }
 0x34c   :  { %12353 = vmatprep.subr.bf16.mxu0 %v16249_v19 }
 0x34d   :  { %v6040_v49 = vpop.f32.mrb[32].mxu1 }
 0x34e   :  { %v6524_v29 = vmul.f32 %v6040_v49, %v15301_v45  ;;  %v10927_v2 = vpop.f32.mrb[33].mxu1 }
 0x34f   :  { %12355 = vmatpush3.bf16.msra.mxu0 %v15457_v52 }
 0x350   :  { %v6525_v47 = vadd.f32 %v6524_v29, %v6523_v36  ;;  %12356 = vmatprep.subr.bf16.mxu0 %v16249_v19  ;;  %v7245_v29 = vand.u32 4294901760, %v7244_v50 }
 0x352   :  { %10729 = vmatmul.mubr.f32.vlgmr.msra.gmra.mrb[8].mxu0 %v15327_v4  ;;  %v7246_v2 = vsub.f32 %v7244_v50, %v7245_v29 }
 0x353   :  { %12358 = vmatpush3.bf16.msra.mxu0 %v14832_v3  ;;  %v6123_v41 = vpop.f32.mrb[34].mxu1  ;;  %10763 = vmatprep.mubr.msk.f32.mxu0 %vm12945_vm3, %v12946_v31 }
 0x354   :  { %12359 = vmatprep.subr.bf16.mxu0 %v16249_v19  ;;  %v10936_v21 = vpop.f32.mrb[35].mxu1 }
 0x357   :  { %12361 = vmatpush3.bf16.msra.mxu0 %v14845_v13 }
 0x358   :  { %12362 = vmatprep.subr.bf16.mxu0 %v16249_v19 }
 0x359   :  { %v6209_v20 = vpop.f32.mrb[36].mxu1 }
 0x35a   :  { %v6210_v48 = vadd.f32 %v6209_v20, %v6123_v41  ;;  %v10945_v36 = vpop.f32.mrb[37].mxu1 }
 0x35b   :  { %12364 = vmatpush3.bf16.msra.mxu0 %v14872_v61  ;;  %v7247_v36 = vand.u32 4294901760, %v7246_v2 }
 0x35c   :  { %12365 = vmatprep.subr.bf16.mxu0 %v16249_v19 }
 0x35f   :  { %12367 = vmatpush3.bf16.msra.mxu0 %v14908_v0  ;;  %v6287_v25 = vpop.f32.mrb[38].mxu1 }
 0x360   :  { %12368 = vmatprep.subr.bf16.mxu0 %v16249_v19  ;;  %v6288_v56 = vadd.f32 %v6287_v25, %v6210_v48  ;;  %v10954_v63 = vpop.f32.mrb[39].mxu1 }
 0x361   :  { %v16429_v63 = vld [vmem:[#allocation37_spill] sm:$0xff] }
 0x363   :  { %12370 = vmatpush3.bf16.msra.mxu0 %v14922_v30 }
 0x364   :  { %12371 = vmatprep.subr.bf16.mxu0 %v16249_v19 }
 0x365   :  { %v6363_v55 = vpop.f32.mrb[40].mxu1 }
 0x366   :  { %v6364_v62 = vadd.f32 %v6363_v55, %v6288_v56  ;;  %v10963_v34 = vpop.f32.mrb[41].mxu1  ;;  %v7650_v55 = vsel %vm2057_vm2, %v9743_v8, 0 }
 0x367   :  { %12373 = vmatpush3.bf16.msra.mxu0 %v14952_v53  ;;  %v15545_v34 = vand.u32 4294901760, %v7650_v55 }
 0x368   :  { %12374 = vmatprep.subr.bf16.mxu0 %v16249_v19 }
 0x36b   :  { %12376 = vmatpush3.bf16.msra.mxu0 %v14987_v43  ;;  %v6443_v23 = vpop.f32.mrb[42].mxu1 }
 0x36c   :  { %v6444_v6 = vadd.f32 %v6443_v23, %v6364_v62  ;;  %12377 = vmatprep.subr.bf16.mxu0 %v16249_v19  ;;  %v10972_v49 = vpop.f32.mrb[43].mxu1  ;;  %v16430_v62 = vld [vmem:[#allocation49_spill] sm:$0xff]  ;;  %v7721_v23 = vsub.f32 %v7650_v55, %v15545_v34 }
 0x36f   :  { %12379 = vmatpush3.bf16.msra.mxu0 %v15027_v46 }
 0x370   :  { %12596 = vmatprep.subr.bf16.mxu0 %v16249_v19 }
 0x371   :  { %v6517_v41 = vpop.f32.mrb[44].mxu1 }
 0x372   :  { %v6518_v21 = vadd.f32 %v6517_v41, %v6444_v6  ;;  %10764 = vmatmul.mubr.f32.vlgmr.msra.gmra.mrb[8].mxu0 %v15327_v4  ;;  %v10981_v20 = vpop.f32.mrb[45].mxu1  ;;  %v7722_v6 = vand.u32 4294901760, %v7721_v23 }
 0x373   :  { %12598 = vmatpush3.bf16.msra.mxu0 %v14339_v35  ;;  %11198 = vmatprep.mubr.msk.f32.mxu0 %vm12945_vm3, %v12946_v31 }
 0x374   :  { %v6526_v48 = vadd.f32 %v6525_v47, %v6518_v21  ;;  %11196 = vmatprep.subr.mxu0 %v12946_v31  ;;  %v7723_v49 = vsub.f32 %v7721_v23, %v7722_v6 }
 0x376   :  { %6527 = vst [vmem:[%s15908_s6 + $0x8] sm:$0xff] %v6526_v48  ;;  %v15497_v5 = vand.u32 4294901760, %v6526_v48 }
 0x377   :  { %11197 = vmatpush3.msra.mxu0 %v14318_v15 }
 0x378   :  { %v15501_v4 = vsub.f32 %v6526_v48, %v15497_v5  ;;  %11199 = vmatmul.mubr.f32.vlgmr.msra.gmra.mrb[10].mxu0 %v7247_v36  ;;  %12599 = vmatprep.subr.bf16.mxu0 %v16249_v19 }
 0x379   :  { %12601 = vmatpush3.bf16.msra.mxu0 %v14360_v38  ;;  %11207 = vmatprep.mubr.msk.f32.mxu0 %vm12945_vm3, %v12946_v31 }
 0x37a   :  { %11205 = vmatprep.subr.mxu0 %v12946_v31  ;;  %v6611_v47 = vand.u32 4294901760, %v15501_v4 }
 0x37c   :  { %v6612_v25 = vsub.f32 %v15501_v4, %v6611_v47 }
 0x37d   :  { %11206 = vmatpush3.msra.mxu0 %v14370_v12 }
 0x37e   :  { %v6613_v56 = vand.u32 4294901760, %v6612_v25  ;;  %12602 = vmatprep.subr.bf16.mxu0 %v16249_v19 }
 0x380   :  { %11015 = vmatmul.mubr.f32.vlgmr.msra.gmra.mrb[46].mxu1 %v6613_v56  ;;  %11208 = vmatmul.mubr.f32.vlgmr.msra.gmra.mrb[10].mxu0 %v15480_v42 }
 0x381   :  { %12478 = vmatpush3.bf16.msra.mxu1 %v15052_v1  ;;  %12604 = vmatpush3.bf16.msra.mxu0 %v14381_v59 }
 0x382   :  { %12479 = vmatprep.subr.bf16.mxu1 %v16249_v19  ;;  %11214 = vmatprep.subr.mxu0 %v12946_v31 }
 0x383   :  { %11216 = vmatprep.mubr.msk.f32.mxu0 %vm12945_vm3, %v12946_v31  ;;  %11049 = vmatprep.mubr.msk.f32.mxu1 %vm12945_vm3, %v12946_v31 }
 0x385   :  { %12481 = vmatpush3.bf16.msra.mxu1 %v15063_v60  ;;  %11215 = vmatpush3.msra.mxu0 %v16429_v63 }
 0x386   :  { %12482 = vmatprep.subr.bf16.mxu1 %v16249_v19  ;;  %12605 = vmatprep.subr.bf16.mxu0 %v16249_v19 }
 0x388   :  { %11217 = vmatmul.mubr.f32.vlgmr.msra.gmra.mrb[10].mxu0 %v7244_v50  ;;  %v16431_v50 = vld [vmem:[#allocation48_spill] sm:$0xff] }
 0x389   :  { %12484 = vmatpush3.bf16.msra.mxu1 %v15100_v32  ;;  %12607 = vmatpush3.bf16.msra.mxu0 %v14339_v35 }
 0x38a   :  { %12485 = vmatprep.subr.bf16.mxu1 %v16249_v19  ;;  %11223 = vmatprep.subr.mxu0 %v12946_v31 }
 0x38b   :  { %11225 = vmatprep.mubr.msk.f32.mxu0 %vm12945_vm3, %v12946_v31 }
 0x38d   :  { %12487 = vmatpush3.bf16.msra.mxu1 %v15110_v58  ;;  %11224 = vmatpush3.msra.mxu0 %v14318_v15 }
 0x38e   :  { %12488 = vmatprep.subr.bf16.mxu1 %v16249_v19  ;;  %12608 = vmatprep.subr.bf16.mxu0 %v16249_v19 }
 0x390   :  { %11226 = vmatmul.mubr.f32.vlgmr.msra.gmra.mrb[10].mxu0 %v7245_v29  ;;  %v7724_v29 = vand.u32 4294901760, %v7723_v49 }
 0x391   :  { %12490 = vmatpush3.bf16.msra.mxu1 %v15147_v7  ;;  %12610 = vmatpush3.bf16.msra.mxu0 %v16430_v62 }
 0x392   :  { %12491 = vmatprep.subr.bf16.mxu1 %v16249_v19  ;;  %11232 = vmatprep.subr.mxu0 %v12946_v31 }
 0x393   :  { %11234 = vmatprep.mubr.msk.f32.mxu0 %vm12945_vm3, %v12946_v31 }
 0x395   :  { %12493 = vmatpush3.bf16.msra.mxu1 %v15160_v28  ;;  %11233 = vmatpush3.msra.mxu0 %v16431_v50 }
 0x396   :  { %12494 = vmatprep.subr.bf16.mxu1 %v16249_v19  ;;  %12611 = vmatprep.subr.bf16.mxu0 %v16249_v19 }
 0x398   :  { %11235 = vmatmul.mubr.f32.vlgmr.msra.gmra.mrb[10].mxu0 %v15480_v42 }
 0x399   :  { %12496 = vmatpush3.bf16.msra.mxu1 %v15196_v40  ;;  %12613 = vmatpush3.bf16.msra.mxu0 %v14339_v35 }
 0x39a   :  { %12497 = vmatprep.subr.bf16.mxu1 %v16249_v19  ;;  %11241 = vmatprep.subr.mxu0 %v12946_v31 }
 0x39b   :  { %11243 = vmatprep.mubr.msk.f32.mxu0 %vm12945_vm3, %v12946_v31 }
 0x39d   :  { %12499 = vmatpush3.bf16.msra.mxu1 %v15199_v26  ;;  %11242 = vmatpush3.msra.mxu0 %v14318_v15 }
 0x39e   :  { %12500 = vmatprep.subr.bf16.mxu1 %v16249_v19  ;;  %12614 = vmatprep.subr.bf16.mxu0 %v16249_v19 }
 0x3a0   :  { %11050 = vmatmul.mubr.f32.vlgmr.msra.gmra.mrb[46].mxu1 %v15497_v5  ;;  %11244 = vmatmul.mubr.f32.vlgmr.msra.gmra.mrb[10].mxu0 %v15480_v42  ;;  %v9744_v42 = vld [vmem:[%s15905_s2 + $0x50] sm:$0xff] }
 0x3a1   :  { %12502 = vmatpush3.bf16.msra.mxu1 %v15206_v22  ;;  %12616 = vmatpush3.bf16.msra.mxu0 %v14339_v35  ;;  %v8127_v2 = vsel %vm2057_vm2, %v9744_v42, 0 }
 0x3a2   :  { %12503 = vmatprep.subr.bf16.mxu1 %v16249_v19  ;;  %11250 = vmatprep.subr.mxu0 %v12946_v31  ;;  %v15619_v41 = vand.u32 4294901760, %v8127_v2 }
 0x3a3   :  { %11252 = vmatprep.mubr.msk.f32.mxu0 %vm12945_vm3, %v12946_v31  ;;  %11084 = vmatprep.mubr.msk.f32.mxu1 %vm12945_vm3, %v12946_v31 }
 0x3a4   :  { %v8198_v21 = vsub.f32 %v8127_v2, %v15619_v41 }
 0x3a5   :  { %12505 = vmatpush3.bf16.msra.mxu1 %v15214_v33  ;;  %11251 = vmatpush3.msra.mxu0 %v14318_v15 }
 0x3a6   :  { %12506 = vmatprep.subr.bf16.mxu1 %v16249_v19  ;;  %11253 = vmatmul.mubr.f32.vlgmr.msra.gmra.mrb[12].mxu0 %v7724_v29  ;;  %v8199_v20 = vand.u32 4294901760, %v8198_v21 }
 0x3a7   :  { %12617 = vmatprep.subr.bf16.mxu0 %v16249_v19  ;;  %11261 = vmatprep.mubr.msk.f32.mxu0 %vm12945_vm3, %v12946_v31 }
 0x3a8   :  { %12619 = vmatpush3.bf16.msra.mxu0 %v14360_v38  ;;  %v8200_v48 = vsub.f32 %v8198_v21, %v8199_v20 }
 0x3a9   :  { %12508 = vmatpush3.bf16.msra.mxu1 %v15220_v24  ;;  %11259 = vmatprep.subr.mxu0 %v12946_v31 }
 0x3aa   :  { %12509 = vmatprep.subr.bf16.mxu1 %v16249_v19  ;;  %v8201_v36 = vand.u32 4294901760, %v8200_v48 }
 0x3ac   :  { %11260 = vmatpush3.msra.mxu0 %v14370_v12 }
 0x3ad   :  { %12511 = vmatpush3.bf16.msra.mxu1 %v15230_v37  ;;  %12620 = vmatprep.subr.bf16.mxu0 %v16249_v19 }
 0x3ae   :  { %12512 = vmatprep.subr.bf16.mxu1 %v16249_v19  ;;  %11262 = vmatmul.mubr.f32.vlgmr.msra.gmra.mrb[12].mxu0 %v15545_v34 }
 0x3af   :  { %12622 = vmatpush3.bf16.msra.mxu0 %v14381_v59  ;;  %11270 = vmatprep.mubr.msk.f32.mxu0 %vm12945_vm3, %v12946_v31 }
 0x3b0   :  { %11268 = vmatprep.subr.mxu0 %v12946_v31 }
 0x3b1   :  { %12514 = vmatpush3.bf16.msra.mxu1 %v15236_v27 }
 0x3b2   :  { %12515 = vmatprep.subr.bf16.mxu1 %v16249_v19 }
 0x3b3   :  { %11269 = vmatpush3.msra.mxu0 %v16429_v63 }
 0x3b4   :  { %12623 = vmatprep.subr.bf16.mxu0 %v16249_v19 }
 0x3b5   :  { %12517 = vmatpush3.bf16.msra.mxu1 %v15244_v17 }
 0x3b6   :  { %12518 = vmatprep.subr.bf16.mxu1 %v16249_v19  ;;  %11271 = vmatmul.mubr.f32.vlgmr.msra.gmra.mrb[12].mxu0 %v7721_v23 }
 0x3b7   :  { %12625 = vmatpush3.bf16.msra.mxu0 %v14339_v35  ;;  %11279 = vmatprep.mubr.msk.f32.mxu0 %vm12945_vm3, %v12946_v31 }
 0x3b8   :  { %11277 = vmatprep.subr.mxu0 %v12946_v31 }
 0x3b9   :  { %12520 = vmatpush3.bf16.msra.mxu1 %v15255_v39 }
 0x3ba   :  { %12521 = vmatprep.subr.bf16.mxu1 %v16249_v19 }
 0x3bb   :  { %11278 = vmatpush3.msra.mxu0 %v14318_v15 }
 0x3bc   :  { %12626 = vmatprep.subr.bf16.mxu0 %v16249_v19 }
 0x3bd   :  { %12523 = vmatpush3.bf16.msra.mxu1 %v15261_v54 }
 0x3be   :  { %12524 = vmatprep.subr.bf16.mxu1 %v16249_v19  ;;  %11280 = vmatmul.mubr.f32.vlgmr.msra.gmra.mrb[12].mxu0 %v7722_v6 }
 0x3bf   :  { %12628 = vmatpush3.bf16.msra.mxu0 %v16430_v62  ;;  %11288 = vmatprep.mubr.msk.f32.mxu0 %vm12945_vm3, %v12946_v31 }
 0x3c0   :  { %11085 = vmatmul.mubr.f32.vlgmr.msra.gmra.mrb[46].mxu1 %v15501_v4  ;;  %11286 = vmatprep.subr.mxu0 %v12946_v31  ;;  %v9745_v4 = vld [vmem:[%s15905_s2 + $0x58] sm:$0xff] }
 0x3c1   :  { %12526 = vmatpush3.bf16.msra.mxu1 %v14832_v3  ;;  %11119 = vmatprep.mubr.msk.f32.mxu1 %vm12945_vm3, %v12946_v31 }
 0x3c2   :  { %12527 = vmatprep.subr.bf16.mxu1 %v16249_v19 }
 0x3c3   :  { %11287 = vmatpush3.msra.mxu0 %v16431_v50 }
 0x3c4   :  { %12629 = vmatprep.subr.bf16.mxu0 %v16249_v19 }
 0x3c5   :  { %12529 = vmatpush3.bf16.msra.mxu1 %v14845_v13 }
 0x3c6   :  { %12530 = vmatprep.subr.bf16.mxu1 %v16249_v19  ;;  %11289 = vmatmul.mubr.f32.vlgmr.msra.gmra.mrb[12].mxu0 %v15545_v34 }
 0x3c7   :  { %12631 = vmatpush3.bf16.msra.mxu0 %v14339_v35  ;;  %11297 = vmatprep.mubr.msk.f32.mxu0 %vm12945_vm3, %v12946_v31 }
 0x3c8   :  { %11295 = vmatprep.subr.mxu0 %v12946_v31 }
 0x3c9   :  { %12532 = vmatpush3.bf16.msra.mxu1 %v14872_v61 }
 0x3ca   :  { %12533 = vmatprep.subr.bf16.mxu1 %v16249_v19 }
 0x3cb   :  { %11296 = vmatpush3.msra.mxu0 %v14318_v15 }
 0x3cc   :  { %12632 = vmatprep.subr.bf16.mxu0 %v16249_v19 }
 0x3cd   :  { %12535 = vmatpush3.bf16.msra.mxu1 %v14908_v0 }
 0x3ce   :  { %12536 = vmatprep.subr.bf16.mxu1 %v16249_v19  ;;  %11298 = vmatmul.mubr.f32.vlgmr.msra.gmra.mrb[12].mxu0 %v15545_v34 }
 0x3cf   :  { %12634 = vmatpush3.bf16.msra.mxu0 %v14339_v35  ;;  %11306 = vmatprep.mubr.msk.f32.mxu0 %vm12945_vm3, %v12946_v31 }
 0x3d0   :  { %11304 = vmatprep.subr.mxu0 %v12946_v31 }
 0x3d1   :  { %12538 = vmatpush3.bf16.msra.mxu1 %v14922_v30 }
 0x3d2   :  { %12539 = vmatprep.subr.bf16.mxu1 %v16249_v19 }
 0x3d3   :  { %11305 = vmatpush3.msra.mxu0 %v14318_v15 }
 0x3d4   :  { %11307 = vmatmul.mubr.f32.vlgmr.msra.gmra.mrb[14].mxu0 %v8201_v36  ;;  %12635 = vmatprep.subr.bf16.mxu0 %v16249_v19 }
 0x3d5   :  { %12541 = vmatpush3.bf16.msra.mxu1 %v14952_v53  ;;  %12637 = vmatpush3.bf16.msra.mxu0 %v14360_v38 }
 0x3d6   :  { %12542 = vmatprep.subr.bf16.mxu1 %v16249_v19  ;;  %11313 = vmatprep.subr.mxu0 %v12946_v31 }
 0x3d7   :  { %11315 = vmatprep.mubr.msk.f32.mxu0 %vm12945_vm3, %v12946_v31 }
 0x3d9   :  { %12544 = vmatpush3.bf16.msra.mxu1 %v14987_v43  ;;  %11314 = vmatpush3.msra.mxu0 %v14370_v12 }
 0x3da   :  { %12545 = vmatprep.subr.bf16.mxu1 %v16249_v19  ;;  %12638 = vmatprep.subr.bf16.mxu0 %v16249_v19 }
 0x3dc   :  { %11316 = vmatmul.mubr.f32.vlgmr.msra.gmra.mrb[14].mxu0 %v15619_v41 }
 0x3dd   :  { %12547 = vmatpush3.bf16.msra.mxu1 %v15027_v46  ;;  %12640 = vmatpush3.bf16.msra.mxu0 %v14381_v59 }
 0x3de   :  { %12548 = vmatprep.subr.bf16.mxu1 %v16249_v19  ;;  %11322 = vmatprep.subr.mxu0 %v12946_v31 }
 0x3df   :  { %11324 = vmatprep.mubr.msk.f32.mxu0 %vm12945_vm3, %v12946_v31 }
 0x3e0   :  { %11120 = vmatmul.mubr.f32.vlgmr.msra.gmra.mrb[46].mxu1 %v6611_v47  ;;  %v8604_v47 = vsel %vm2057_vm2, %v9745_v4, 0 }
 0x3e1   :  { %12550 = vmatpush3.bf16.msra.mxu1 %v15397_v11  ;;  %11323 = vmatpush3.msra.mxu0 %v16429_v63  ;;  %v15693_v25 = vand.u32 4294901760, %v8604_v47 }
 0x3e2   :  { %12551 = vmatprep.subr.bf16.mxu1 %v16249_v19  ;;  %12641 = vmatprep.subr.bf16.mxu0 %v16249_v19 }
 0x3e3   :  { %11154 = vmatprep.mubr.msk.f32.mxu1 %vm12945_vm3, %v12946_v31  ;;  %v8675_v56 = vsub.f32 %v8604_v47, %v15693_v25 }
 0x3e4   :  { %11325 = vmatmul.mubr.f32.vlgmr.msra.gmra.mrb[14].mxu0 %v8198_v21 }
 0x3e5   :  { %12553 = vmatpush3.bf16.msra.mxu1 %v15407_v9  ;;  %12643 = vmatpush3.bf16.msra.mxu0 %v14339_v35  ;;  %v8676_v8 = vand.u32 4294901760, %v8675_v56 }
 0x3e6   :  { %12554 = vmatprep.subr.bf16.mxu1 %v16249_v19  ;;  %11331 = vmatprep.subr.mxu0 %v12946_v31 }
 0x3e7   :  { %11333 = vmatprep.mubr.msk.f32.mxu0 %vm12945_vm3, %v12946_v31  ;;  %v8677_v55 = vsub.f32 %v8675_v56, %v8676_v8 }
 0x3e9   :  { %12556 = vmatpush3.bf16.msra.mxu1 %v15417_v51  ;;  %11332 = vmatpush3.msra.mxu0 %v14318_v15  ;;  %v8678_v34 = vand.u32 4294901760, %v8677_v55 }
 0x3ea   :  { %12557 = vmatprep.subr.bf16.mxu1 %v16249_v19  ;;  %12644 = vmatprep.subr.bf16.mxu0 %v16249_v19 }
 0x3ec   :  { %11334 = vmatmul.mubr.f32.vlgmr.msra.gmra.mrb[14].mxu0 %v8199_v20 }
 0x3ed   :  { %12559 = vmatpush3.bf16.msra.mxu1 %v15425_v57  ;;  %12646 = vmatpush3.bf16.msra.mxu0 %v16430_v62 }
 0x3ee   :  { %12560 = vmatprep.subr.bf16.mxu1 %v16249_v19  ;;  %11340 = vmatprep.subr.mxu0 %v12946_v31 }
 0x3ef   :  { %11342 = vmatprep.mubr.msk.f32.mxu0 %vm12945_vm3, %v12946_v31 }
 0x3f1   :  { %12562 = vmatpush3.bf16.msra.mxu1 %v15433_v18  ;;  %11341 = vmatpush3.msra.mxu0 %v16431_v50 }
 0x3f2   :  { %12563 = vmatprep.subr.bf16.mxu1 %v16249_v19  ;;  %12647 = vmatprep.subr.bf16.mxu0 %v16249_v19 }
 0x3f4   :  { %11343 = vmatmul.mubr.f32.vlgmr.msra.gmra.mrb[14].mxu0 %v15619_v41 }
 0x3f5   :  { %12565 = vmatpush3.bf16.msra.mxu1 %v15441_v10  ;;  %12649 = vmatpush3.bf16.msra.mxu0 %v14339_v35 }
 0x3f6   :  { %12566 = vmatprep.subr.bf16.mxu1 %v16249_v19  ;;  %11349 = vmatprep.subr.mxu0 %v12946_v31 }
 0x3f7   :  { %11351 = vmatprep.mubr.msk.f32.mxu0 %vm12945_vm3, %v12946_v31 }
 0x3f9   :  { %12568 = vmatpush3.bf16.msra.mxu1 %v15449_v14  ;;  %11350 = vmatpush3.msra.mxu0 %v14318_v15 }
 0x3fa   :  { %12569 = vmatprep.subr.bf16.mxu1 %v16249_v19  ;;  %12650 = vmatprep.subr.bf16.mxu0 %v16249_v19 }
 0x3fc   :  { %11352 = vmatmul.mubr.f32.vlgmr.msra.gmra.mrb[14].mxu0 %v15619_v41 }
 0x3fd   :  { %12571 = vmatpush3.bf16.msra.mxu1 %v15457_v52  ;;  %12652 = vmatpush3.bf16.msra.mxu0 %v14339_v35 }
 0x3fe   :  { %12572 = vmatprep.subr.bf16.mxu1 %v16249_v19  ;;  %11358 = vmatprep.subr.mxu0 %v12946_v31 }
 0x3ff   :  { %11360 = vmatprep.mubr.msk.f32.mxu0 %vm12945_vm3, %v12946_v31 }
 0x400   :  { %11155 = vmatmul.mubr.f32.vlgmr.msra.gmra.mrb[46].mxu1 %v15497_v5 }
 0x401   :  { %12574 = vmatpush3.bf16.msra.mxu1 %v14832_v3  ;;  %11359 = vmatpush3.msra.mxu0 %v14318_v15 }
 0x402   :  { %11361 = vmatmul.mubr.f32.vlgmr.msra.gmra.mrb[16].mxu0 %v8678_v34  ;;  %12653 = vmatprep.subr.bf16.mxu0 %v16249_v19 }
 0x403   :  { %12655 = vmatpush3.bf16.msra.mxu0 %v14360_v38  ;;  %12575 = vmatprep.subr.bf16.mxu1 %v16249_v19 }
 0x404   :  { %11367 = vmatprep.subr.mxu0 %v12946_v31  ;;  %11369 = vmatprep.mubr.msk.f32.mxu0 %vm12945_vm3, %v12946_v31 }
 0x405   :  { %12577 = vmatpush3.bf16.msra.mxu1 %v14845_v13  ;;  %11189 = vmatprep.mubr.msk.f32.mxu1 %vm12945_vm3, %v12946_v31 }
 0x406   :  { %12578 = vmatprep.subr.bf16.mxu1 %v16249_v19 }
 0x407   :  { %11368 = vmatpush3.msra.mxu0 %v14370_v12 }
 0x408   :  { %11370 = vmatmul.mubr.f32.vlgmr.msra.gmra.mrb[18].mxu0 %v15693_v25  ;;  %12656 = vmatprep.subr.bf16.mxu0 %v16249_v19 }
 0x409   :  { %12580 = vmatpush3.bf16.msra.mxu1 %v14872_v61  ;;  %12658 = vmatpush3.bf16.msra.mxu0 %v14381_v59 }
 0x40a   :  { %12581 = vmatprep.subr.bf16.mxu1 %v16249_v19  ;;  %11376 = vmatprep.subr.mxu0 %v12946_v31 }
 0x40b   :  { %11378 = vmatprep.mubr.msk.f32.mxu0 %vm12945_vm3, %v12946_v31 }
 0x40d   :  { %12583 = vmatpush3.bf16.msra.mxu1 %v14908_v0  ;;  %11377 = vmatpush3.msra.mxu0 %v16429_v63 }
 0x40e   :  { %11379 = vmatmul.mubr.f32.vlgmr.msra.gmra.mrb[20].mxu0 %v8675_v56  ;;  %12659 = vmatprep.subr.bf16.mxu0 %v16249_v19 }
 0x40f   :  { %12661 = vmatpush3.bf16.msra.mxu0 %v14339_v35  ;;  %12584 = vmatprep.subr.bf16.mxu1 %v16249_v19 }
 0x410   :  { %11385 = vmatprep.subr.mxu0 %v12946_v31  ;;  %11387 = vmatprep.mubr.msk.f32.mxu0 %vm12945_vm3, %v12946_v31 }
 0x411   :  { %12586 = vmatpush3.bf16.msra.mxu1 %v14922_v30 }
 0x412   :  { %12587 = vmatprep.subr.bf16.mxu1 %v16249_v19 }
 0x413   :  { %11386 = vmatpush3.msra.mxu0 %v14318_v15 }
 0x414   :  { %11388 = vmatmul.mubr.f32.vlgmr.msra.gmra.mrb[22].mxu0 %v8676_v8  ;;  %12662 = vmatprep.subr.bf16.mxu0 %v16249_v19 }
 0x415   :  { %12589 = vmatpush3.bf16.msra.mxu1 %v14952_v53  ;;  %12664 = vmatpush3.bf16.msra.mxu0 %v16430_v62 }
 0x416   :  { %12590 = vmatprep.subr.bf16.mxu1 %v16249_v19  ;;  %11394 = vmatprep.subr.mxu0 %v12946_v31 }
 0x417   :  { %11396 = vmatprep.mubr.msk.f32.mxu0 %vm12945_vm3, %v12946_v31 }
 0x419   :  { %12592 = vmatpush3.bf16.msra.mxu1 %v14987_v43  ;;  %11395 = vmatpush3.msra.mxu0 %v16431_v50 }
 0x41a   :  { %11397 = vmatmul.mubr.f32.vlgmr.msra.gmra.mrb[24].mxu0 %v15693_v25  ;;  %12665 = vmatprep.subr.bf16.mxu0 %v16249_v19 }
 0x41b   :  { %12667 = vmatpush3.bf16.msra.mxu0 %v14339_v35  ;;  %12593 = vmatprep.subr.bf16.mxu1 %v16249_v19 }
 0x41c   :  { %11403 = vmatprep.subr.mxu0 %v12946_v31  ;;  %11405 = vmatprep.mubr.msk.f32.mxu0 %vm12945_vm3, %v12946_v31 }
 0x41d   :  { %12595 = vmatpush3.bf16.msra.mxu1 %v15027_v46 }
 0x41f   :  { %11404 = vmatpush3.msra.mxu0 %v14318_v15 }
 0x420   :  { %11190 = vmatmul.mubr.f32.vlgmr.msra.gmra.mrb[46].mxu1 %v15497_v5  ;;  %11406 = vmatmul.mubr.f32.vlgmr.msra.gmra.mrb[26].mxu0 %v15693_v25 }
 0x421   :  { %12668 = vmatprep.subr.bf16.mxu0 %v16249_v19  ;;  %11440 = vmatprep.mubr.msk.f32.mxu0 %vm12945_vm3, %v12946_v31 }
 0x422   :  { %12670 = vmatpush3.bf16.msra.mxu0 %v14832_v3 }
 0x423   :  { %12671 = vmatprep.subr.bf16.mxu0 %v16249_v19 }
 0x426   :  { %12673 = vmatpush3.bf16.msra.mxu0 %v14845_v13 }
 0x427   :  { %12674 = vmatprep.subr.bf16.mxu0 %v16249_v19 }
 0x42a   :  { %12676 = vmatpush3.bf16.msra.mxu0 %v14872_v61 }
 0x42b   :  { %12677 = vmatprep.subr.bf16.mxu0 %v16249_v19 }
 0x42e   :  { %12679 = vmatpush3.bf16.msra.mxu0 %v14908_v0 }
 0x42f   :  { %12680 = vmatprep.subr.bf16.mxu0 %v16249_v19 }
 0x432   :  { %12682 = vmatpush3.bf16.msra.mxu0 %v14922_v30 }
 0x433   :  { %12683 = vmatprep.subr.bf16.mxu0 %v16249_v19 }
 0x436   :  { %12685 = vmatpush3.bf16.msra.mxu0 %v14952_v53 }
 0x437   :  { %12686 = vmatprep.subr.bf16.mxu0 %v16249_v19 }
 0x43a   :  { %12688 = vmatpush3.bf16.msra.mxu0 %v14987_v43 }
 0x43b   :  { %12689 = vmatprep.subr.bf16.mxu0 %v16249_v19 }
 0x43e   :  { %12691 = vmatpush3.bf16.msra.mxu0 %v15027_v46 }
 0x43f   :  { %12692 = vmatprep.subr.bf16.mxu0 %v16249_v19 }
 0x445   :  { %v4608_v15 = vpop.f32.mrb[8].mxu0 }
 0x446   :  { %4612 = vst [vmem:[%s15909_s7] sm:$0xff] %v4608_v15  ;;  %v10765_v35 = vpop.f32.mrb[9].mxu0 }
 0x473   :  { %v7643_v38 = vpop.f32.mrb[10].mxu0 }
 0x474   :  { %v11245_v12 = vpop.f32.mrb[11].mxu0  ;;  %v9078_v5 = vmul.f32 %v7643_v38, %v15296_v16 }
 0x4a1   :  { %v8120_v59 = vpop.f32.mrb[12].mxu0 }
 0x4a2   :  { %v9079_v63 = vmul.f32 %v8120_v59, %v15299_v44  ;;  %v11299_v62 = vpop.f32.mrb[13].mxu0 }
 0x4a4   :  { %v9080_v50 = vadd.f32 %v9079_v63, %v9078_v5 }
 0x4cf   :  { %v8597_v23 = vpop.f32.mrb[14].mxu0 }
 0x4d0   :  { %v9081_v6 = vmul.f32 %v8597_v23, %v15301_v45  ;;  %v11353_v49 = vpop.f32.mrb[15].mxu0 }
 0x4d2   :  { %v9082_v29 = vadd.f32 %v9081_v6, %v9080_v50 }
 0x4d5   :  { %v8680_v42 = vpop.f32.mrb[16].mxu0 }
 0x4d6   :  { %v11362_v2 = vpop.f32.mrb[17].mxu0 }
 0x4db   :  { %v8766_v41 = vpop.f32.mrb[18].mxu0 }
 0x4dc   :  { %v8767_v21 = vadd.f32 %v8766_v41, %v8680_v42  ;;  %v11371_v20 = vpop.f32.mrb[19].mxu0 }
 0x4e1   :  { %v8844_v48 = vpop.f32.mrb[20].mxu0 }
 0x4e2   :  { %v8845_v36 = vadd.f32 %v8844_v48, %v8767_v21  ;;  %v11380_v4 = vpop.f32.mrb[21].mxu0 }
 0x4e7   :  { %v8920_v47 = vpop.f32.mrb[22].mxu0 }
 0x4e8   :  { %v8921_v25 = vadd.f32 %v8920_v47, %v8845_v36  ;;  %v11389_v16 = vpop.f32.mrb[23].mxu0 }
 0x4ed   :  { %v9000_v56 = vpop.f32.mrb[24].mxu0 }
 0x4ee   :  { %v9001_v44 = vadd.f32 %v9000_v56, %v8921_v25  ;;  %v11398_v8 = vpop.f32.mrb[25].mxu0 }
 0x4f3   :  { %v7165_v55 = vpop.f32.mrb[46].mxu1  ;;  %v9074_v34 = vpop.f32.mrb[26].mxu0 }
 0x4f4   :  { %7169 = vst [vmem:[%s15909_s7 + $0x8] sm:$0xff] %v7165_v55  ;;  %v9075_v45 = vadd.f32 %v9074_v34, %v9001_v44  ;;  %v11191_v15 = vpop.f32.mrb[47].mxu1  ;;  %v11407_v35 = vpop.f32.mrb[27].mxu0 }
 0x4f6   :  { %v9083_v38 = vadd.f32 %v9082_v29, %v9075_v45 }
 0x4f8   :  { %9084 = vst [vmem:[%s15908_s6 + $0x10] sm:$0xff] %v9083_v38  ;;  %v15804_v12 = vand.u32 4294901760, %v9083_v38 }
 0x4fa   :  { %v9167_v59 = vsub.f32 %v9083_v38, %v15804_v12 }
 0x4fc   :  { %v9168_v5 = vand.u32 4294901760, %v9167_v59 }
 0x4fe   :  { %v9169_v63 = vsub.f32 %v9167_v59, %v9168_v5 }
 0x500   :  { %v9170_v62 = vand.u32 4294901760, %v9169_v63 }
 0x502   :  { %11441 = vmatmul.mubr.f32.vlgmr.msra.gmra.mrb[28].mxu0 %v9170_v62 }
 0x503   :  { %12694 = vmatpush3.bf16.msra.mxu0 %v15052_v1  ;;  %11475 = vmatprep.mubr.msk.f32.mxu0 %vm12945_vm3, %v12946_v31 }
 0x504   :  { %12695 = vmatprep.subr.bf16.mxu0 %v16249_v19 }
 0x507   :  { %12697 = vmatpush3.bf16.msra.mxu0 %v15063_v60 }
 0x508   :  { %12698 = vmatprep.subr.bf16.mxu0 %v16249_v19 }
 0x50b   :  { %12700 = vmatpush3.bf16.msra.mxu0 %v15100_v32 }
 0x50c   :  { %12701 = vmatprep.subr.bf16.mxu0 %v16249_v19 }
 0x50f   :  { %12703 = vmatpush3.bf16.msra.mxu0 %v15110_v58 }
 0x510   :  { %12704 = vmatprep.subr.bf16.mxu0 %v16249_v19 }
 0x513   :  { %12706 = vmatpush3.bf16.msra.mxu0 %v15147_v7 }
 0x514   :  { %12707 = vmatprep.subr.bf16.mxu0 %v16249_v19 }
 0x517   :  { %12709 = vmatpush3.bf16.msra.mxu0 %v15160_v28 }
 0x518   :  { %12710 = vmatprep.subr.bf16.mxu0 %v16249_v19 }
 0x51b   :  { %12712 = vmatpush3.bf16.msra.mxu0 %v15196_v40 }
 0x51c   :  { %12713 = vmatprep.subr.bf16.mxu0 %v16249_v19 }
 0x51f   :  { %12715 = vmatpush3.bf16.msra.mxu0 %v15199_v26 }
 0x520   :  { %12716 = vmatprep.subr.bf16.mxu0 %v16249_v19 }
 0x522   :  { %11476 = vmatmul.mubr.f32.vlgmr.msra.gmra.mrb[28].mxu0 %v15804_v12 }
 0x523   :  { %12718 = vmatpush3.bf16.msra.mxu0 %v15206_v22  ;;  %11510 = vmatprep.mubr.msk.f32.mxu0 %vm12945_vm3, %v12946_v31 }
 0x524   :  { %12719 = vmatprep.subr.bf16.mxu0 %v16249_v19 }
 0x527   :  { %12721 = vmatpush3.bf16.msra.mxu0 %v15214_v33 }
 0x528   :  { %12722 = vmatprep.subr.bf16.mxu0 %v16249_v19 }
 0x52b   :  { %12724 = vmatpush3.bf16.msra.mxu0 %v15220_v24 }
 0x52c   :  { %12725 = vmatprep.subr.bf16.mxu0 %v16249_v19 }
 0x52f   :  { %12727 = vmatpush3.bf16.msra.mxu0 %v15230_v37 }
 0x530   :  { %12728 = vmatprep.subr.bf16.mxu0 %v16249_v19 }
 0x533   :  { %12730 = vmatpush3.bf16.msra.mxu0 %v15236_v27 }
 0x534   :  { %12731 = vmatprep.subr.bf16.mxu0 %v16249_v19 }
 0x537   :  { %12733 = vmatpush3.bf16.msra.mxu0 %v15244_v17 }
 0x538   :  { %12734 = vmatprep.subr.bf16.mxu0 %v16249_v19 }
 0x53b   :  { %12736 = vmatpush3.bf16.msra.mxu0 %v15255_v39 }
 0x53c   :  { %12737 = vmatprep.subr.bf16.mxu0 %v16249_v19 }
 0x53f   :  { %12739 = vmatpush3.bf16.msra.mxu0 %v15261_v54 }
 0x540   :  { %12740 = vmatprep.subr.bf16.mxu0 %v16249_v19 }
 0x542   :  { %11511 = vmatmul.mubr.f32.vlgmr.msra.gmra.mrb[28].mxu0 %v9167_v59 }
 0x543   :  { %12742 = vmatpush3.bf16.msra.mxu0 %v14832_v3  ;;  %11545 = vmatprep.mubr.msk.f32.mxu0 %vm12945_vm3, %v12946_v31 }
 0x544   :  { %12743 = vmatprep.subr.bf16.mxu0 %v16249_v19 }
 0x547   :  { %12745 = vmatpush3.bf16.msra.mxu0 %v14845_v13 }
 0x548   :  { %12746 = vmatprep.subr.bf16.mxu0 %v16249_v19 }
 0x54b   :  { %12748 = vmatpush3.bf16.msra.mxu0 %v14872_v61 }
 0x54c   :  { %12749 = vmatprep.subr.bf16.mxu0 %v16249_v19 }
 0x54f   :  { %12751 = vmatpush3.bf16.msra.mxu0 %v14908_v0 }
 0x550   :  { %12752 = vmatprep.subr.bf16.mxu0 %v16249_v19 }
 0x553   :  { %12754 = vmatpush3.bf16.msra.mxu0 %v14922_v30 }
 0x554   :  { %12755 = vmatprep.subr.bf16.mxu0 %v16249_v19 }
 0x557   :  { %12757 = vmatpush3.bf16.msra.mxu0 %v14952_v53 }
 0x558   :  { %12758 = vmatprep.subr.bf16.mxu0 %v16249_v19 }
 0x55b   :  { %12760 = vmatpush3.bf16.msra.mxu0 %v14987_v43 }
 0x55c   :  { %12761 = vmatprep.subr.bf16.mxu0 %v16249_v19 }
 0x55f   :  { %12763 = vmatpush3.bf16.msra.mxu0 %v15027_v46 }
 0x560   :  { %12764 = vmatprep.subr.bf16.mxu0 %v16249_v19 }
 0x562   :  { %11546 = vmatmul.mubr.f32.vlgmr.msra.gmra.mrb[28].mxu0 %v9168_v5 }
 0x563   :  { %12766 = vmatpush3.bf16.msra.mxu0 %v15397_v11  ;;  %11580 = vmatprep.mubr.msk.f32.mxu0 %vm12945_vm3, %v12946_v31 }
 0x564   :  { %12767 = vmatprep.subr.bf16.mxu0 %v16249_v19 }
 0x567   :  { %12769 = vmatpush3.bf16.msra.mxu0 %v15407_v9 }
 0x568   :  { %12770 = vmatprep.subr.bf16.mxu0 %v16249_v19 }
 0x56b   :  { %12772 = vmatpush3.bf16.msra.mxu0 %v15417_v51 }
 0x56c   :  { %12773 = vmatprep.subr.bf16.mxu0 %v16249_v19 }
 0x56f   :  { %12775 = vmatpush3.bf16.msra.mxu0 %v15425_v57 }
 0x570   :  { %12776 = vmatprep.subr.bf16.mxu0 %v16249_v19 }
 0x573   :  { %12778 = vmatpush3.bf16.msra.mxu0 %v15433_v18 }
 0x574   :  { %12779 = vmatprep.subr.bf16.mxu0 %v16249_v19 }
 0x577   :  { %12781 = vmatpush3.bf16.msra.mxu0 %v15441_v10 }
 0x578   :  { %12782 = vmatprep.subr.bf16.mxu0 %v16249_v19 }
 0x57b   :  { %12784 = vmatpush3.bf16.msra.mxu0 %v15449_v14 }
 0x57c   :  { %12785 = vmatprep.subr.bf16.mxu0 %v16249_v19 }
 0x57f   :  { %12787 = vmatpush3.bf16.msra.mxu0 %v15457_v52 }
 0x580   :  { %12788 = vmatprep.subr.bf16.mxu0 %v16249_v19 }
 0x582   :  { %11581 = vmatmul.mubr.f32.vlgmr.msra.gmra.mrb[28].mxu0 %v15804_v12 }
 0x583   :  { %12790 = vmatpush3.bf16.msra.mxu0 %v14832_v3  ;;  %11615 = vmatprep.mubr.msk.f32.mxu0 %vm12945_vm3, %v12946_v31 }
 0x584   :  { %12791 = vmatprep.subr.bf16.mxu0 %v16249_v19 }
 0x587   :  { %12793 = vmatpush3.bf16.msra.mxu0 %v14845_v13 }
 0x588   :  { %12794 = vmatprep.subr.bf16.mxu0 %v16249_v19 }
 0x58b   :  { %12796 = vmatpush3.bf16.msra.mxu0 %v14872_v61 }
 0x58c   :  { %12797 = vmatprep.subr.bf16.mxu0 %v16249_v19 }
 0x58f   :  { %12799 = vmatpush3.bf16.msra.mxu0 %v14908_v0 }
 0x590   :  { %12800 = vmatprep.subr.bf16.mxu0 %v16249_v19 }
 0x593   :  { %12802 = vmatpush3.bf16.msra.mxu0 %v14922_v30 }
 0x594   :  { %12803 = vmatprep.subr.bf16.mxu0 %v16249_v19 }
 0x597   :  { %12805 = vmatpush3.bf16.msra.mxu0 %v14952_v53 }
 0x598   :  { %12806 = vmatprep.subr.bf16.mxu0 %v16249_v19 }
 0x59b   :  { %12808 = vmatpush3.bf16.msra.mxu0 %v14987_v43 }
 0x59c   :  { %12809 = vmatprep.subr.bf16.mxu0 %v16249_v19 }
 0x59f   :  { %12811 = vmatpush3.bf16.msra.mxu0 %v15027_v46 }
 0x5a2   :  { %11616 = vmatmul.mubr.f32.vlgmr.msra.gmra.mrb[28].mxu0 %v15804_v12 }
 0x675   :  { %v9722_v31 = vpop.f32.mrb[28].mxu0 }
 0x676   :  { %9726 = vst [vmem:[%s15909_s7 + $0x10] sm:$0xff] %v9722_v31  ;;  %v11617_v3 = vpop.f32.mrb[29].mxu0 }

</bundles_post_ra>
